<compile_context>
chip_gen: v7x
topology: tpu7x:2x2x1
jax: 0.10.0
libtpu: 0.0.40
codegen_flags: <defaults>
</compile_context>

<pallas_src>
import functools

import jax
import jax.numpy as jnp
import numpy as np
from jax.experimental import pallas as pl
from jax.experimental.pallas import tpu as pltpu


NGF = 8                      # generator base channel count (sublane-aligned)
EPS = 1e-5                   # InstanceNorm eps (PyTorch default)
MXU_DTYPE = jnp.bfloat16     # matmul-operand dtype; accumulation stays f32

CONV_NAMES = ("c1", "r1a", "r1b", "r2a", "r2b", "co")
NUM_CONVS = len(CONV_NAMES)


# ----------------------------------------------------------------------------
# In-kernel helpers (traced inside the Pallas body)
# ----------------------------------------------------------------------------
def _instance_norm(x, n_imgs, hw, relu=False):
    """Per-image InstanceNorm over the lane axis of a (C, n_imgs*hw) f32 tile.

    Single pass: sum and sum-of-squares, var = E[x^2] - mean^2 (+EPS).  Images
    are separated by static, 128-aligned lane slices (hw is a multiple of 128
    in the demo config; correctness does not depend on alignment).
    """
    inv_hw = 1.0 / hw
    parts = []
    for n in range(n_imgs):
        xn = x[:, n * hw:(n + 1) * hw]
        s1 = jnp.sum(xn, axis=1, keepdims=True)
        s2 = jnp.sum(xn * xn, axis=1, keepdims=True)
        mean = s1 * inv_hw
        var = s2 * inv_hw - mean * mean
        parts.append((xn - mean) * jax.lax.rsqrt(var + EPS))
    y = parts[0] if n_imgs == 1 else jnp.concatenate(parts, axis=1)
    if relu:
        y = jnp.maximum(y, 0.0)
    return y


# ----------------------------------------------------------------------------
# Fused generator kernel: one grid step = one generator applied to its batch
# ----------------------------------------------------------------------------
def _generator_kernel(x_ref, w_ref, b_ref, m_ref, o_ref, *, W, n_imgs, hw):
    """x_ref/o_ref: (NGF, L) f32 with L = n_imgs*hw (channels >=3 are zero).

    w_ref: (6, NGF, 9*NGF) bf16 weight slab (tap-major columns, zero-padded
           for cin<NGF / cout<NGF).
    b_ref: (6, NGF, 1) f32 bias slab (zero-padded).
    m_ref: (9*NGF, L) f32 border-validity mask (0/1), per-image coordinates.
    """
    L = n_imgs * hw

    def conv(x, idx):
        # Build the im2col operand: 9 lane rotations of the resident activation
        # (XLU), one mask multiply, one cast, ONE MXU matmul.
        taps = []
        for di in (-1, 0, 1):
            for dj in (-1, 0, 1):
                off = di * W + dj
                if off == 0:
                    taps.append(x)
                else:
                    taps.append(pltpu.roll(x, shift=(-off) % L, axis=1))
        im2col = (jnp.concatenate(taps, axis=0) * m_ref[...]).astype(MXU_DTYPE)
        y = jnp.dot(w_ref[idx], im2col, preferred_element_type=jnp.float32)
        return y + b_ref[idx]                                   # (NGF, L) f32

    inorm = functools.partial(_instance_norm, n_imgs=n_imgs, hw=hw)

    x = x_ref[...]                                              # (NGF, L) f32
    h = inorm(conv(x, 0), relu=True)                            # stem
    # ResBlock 1
    r = inorm(conv(h, 1), relu=True)
    h = inorm(conv(r, 2)) + h
    # ResBlock 2
    r = inorm(conv(h, 3), relu=True)
    h = inorm(conv(r, 4)) + h
    # Output conv + tanh (padded output rows are exactly 0 -> tanh -> 0)
    o_ref[...] = jnp.tanh(conv(h, 5))


def _run_generator_wave(w_slab, b_slab, mask, x, H, W):
    """Apply two independent generators (one per grid step) in one pallas_call.

    x: (2, NGF, L) f32; w_slab: (2, 6, NGF, 9*NGF) bf16; b_slab: (2, 6, NGF, 1)
    f32; mask: (9*NGF, L) f32.  Returns (2, NGF, L) f32.
    """
    G, C, L = x.shape
    hw = H * W
    n_imgs = L // hw
    kernel = functools.partial(_generator_kernel, W=W, n_imgs=n_imgs, hw=hw)

    return pl.pallas_call(
        kernel,
        out_shape=jax.ShapeDtypeStruct((G, C, L), jnp.float32),
        grid_spec=pltpu.PrefetchScalarGridSpec(
            num_scalar_prefetch=0,
            grid=(G,),
            in_specs=[
                pl.BlockSpec((None, C, L), lambda g: (g, 0, 0)),
                pl.BlockSpec((None,) + w_slab.shape[1:], lambda g: (g, 0, 0, 0)),
                pl.BlockSpec((None,) + b_slab.shape[1:], lambda g: (g, 0, 0, 0)),
                pl.BlockSpec(mask.shape, lambda g: (0, 0)),
            ],
            out_specs=pl.BlockSpec((None, C, L), lambda g: (g, 0, 0)),
        ),
        compiler_params=pltpu.CompilerParams(
            dimension_semantics=("parallel",)),
    )(x, w_slab, b_slab, mask)


# ----------------------------------------------------------------------------
# Parameter handling
# ----------------------------------------------------------------------------
def _conv_params(key, kh, kw, cin, cout):
    kw_key, kb_key = jax.random.split(key)
    fan_in = kh * kw * cin
    w = jax.random.normal(kw_key, (kh, kw, cin, cout), jnp.float32) / jnp.sqrt(fan_in)
    b = 0.01 * jax.random.normal(kb_key, (cout,), jnp.float32)
    return w, b


def init_generator_params(key):
    ks = jax.random.split(key, 6)
    p = {}
    p["c1_w"], p["c1_b"] = _conv_params(ks[0], 3, 3, 3, NGF)
    p["r1a_w"], p["r1a_b"] = _conv_params(ks[1], 3, 3, NGF, NGF)
    p["r1b_w"], p["r1b_b"] = _conv_params(ks[2], 3, 3, NGF, NGF)
    p["r2a_w"], p["r2a_b"] = _conv_params(ks[3], 3, 3, NGF, NGF)
    p["r2b_w"], p["r2b_b"] = _conv_params(ks[4], 3, 3, NGF, NGF)
    p["co_w"], p["co_b"] = _conv_params(ks[5], 3, 3, NGF, 3)
    return p


def _pack_generator_params(params):
    """Pack all 6 convs into one weight slab + one bias slab.

    Weights (kh,kw,cin,cout) -> rows (NGF, 9*NGF) bf16 in tap-major column
    order (column = tap*NGF + cin), zero-padded to cin=cout=NGF.  Biases ->
    (NGF, 1) f32, zero-padded.  Slabs: (6, NGF, 9*NGF) bf16 and (6, NGF, 1) f32.
    """
    w_rows, b_rows = [], []
    for name in CONV_NAMES:
        w = params[name + "_w"]                         # (3, 3, cin, cout)
        b = params[name + "_b"]                         # (cout,)
        kh, kw, cin, cout = w.shape
        wm = jnp.transpose(w, (3, 0, 1, 2))             # (cout, 3, 3, cin)
        wm = jnp.pad(wm, ((0, NGF - cout), (0, 0), (0, 0), (0, NGF - cin)))
        w_rows.append(wm.reshape(NGF, 9 * NGF))
        b_rows.append(jnp.pad(b, (0, NGF - cout)))
    w_slab = jnp.stack(w_rows).astype(MXU_DTYPE)        # (6, NGF, 9*NGF)
    b_slab = jnp.stack(b_rows).astype(jnp.float32)[..., None]   # (6, NGF, 1)
    return w_slab, b_slab


def _build_tap_mask(n_imgs, H, W):
    """(9*NGF, n_imgs*H*W) f32 mask of valid (in-image) neighbors per 3x3 tap.

    Built with PER-IMAGE coordinates (pos % HW) so the batch-folded lane axis
    never bleeds pixels between adjacent images or across the wrap-around.
    """
    hw = H * W
    L = n_imgs * hw
    pos = np.arange(L)
    pix = pos % hw
    yy = pix // W
    xx = pix % W
    rows = []
    for di in (-1, 0, 1):
        for dj in (-1, 0, 1):
            valid = ((yy + di >= 0) & (yy + di < H) &
                     (xx + dj >= 0) & (xx + dj < W)).astype(np.float32)
            rows.append(np.broadcast_to(valid, (NGF, L)))
    return jnp.asarray(np.concatenate(rows, axis=0))


# ----------------------------------------------------------------------------
# CycleGAN forward
# ----------------------------------------------------------------------------
@jax.jit
def cyclegan_forward(genAB_params, genBA_params, realA_nchw, realB_nchw):
    """Matches CycleGAN.forward: fakeB, recA, fakeA, recB (NCHW in / NCHW out)."""
    Nb, C, H, W = realA_nchw.shape
    hw = H * W
    L = Nb * hw

    wAB, bAB = _pack_generator_params(genAB_params)
    wBA, bBA = _pack_generator_params(genBA_params)
    mask = _build_tap_mask(Nb, H, W)

    def to_lanes(img):
        # (N, 3, H, W) -> (NGF, N*HW) with channels 3..NGF-1 zero-padded.
        x = img.reshape(Nb, C, hw)
        x = jnp.pad(x, ((0, 0), (0, NGF - C), (0, 0)))
        return jnp.transpose(x, (1, 0, 2)).reshape(NGF, L)

    def from_lanes(y):
        # (NGF, N*HW) -> (N, 3, H, W)
        t = y.reshape(NGF, Nb, hw).transpose(1, 0, 2)[:, :C, :]
        return t.reshape(Nb, C, H, W)

    x1 = jnp.stack([to_lanes(realA_nchw), to_lanes(realB_nchw)])   # (2, NGF, L)

    # Wave 1: fakeB = G_AB(realA), fakeA = G_BA(realB)   (independent)
    y1 = _run_generator_wave(jnp.stack([wAB, wBA]), jnp.stack([bAB, bBA]),
                             mask, x1, H, W)
    # Wave 2: recA = G_BA(fakeB), recB = G_AB(fakeA)     (independent)
    # y1's padded channels are exactly zero (tanh(0)), so it feeds in directly.
    y2 = _run_generator_wave(jnp.stack([wBA, wAB]), jnp.stack([bBA, bAB]),
                             mask, y1, H, W)

    fakeB, fakeA = from_lanes(y1[0]), from_lanes(y1[1])
    recA, recB = from_lanes(y2[0]), from_lanes(y2[1])
    return fakeB, recA, fakeA, recB


# ----------------------------------------------------------------------------
# Plain-JAX reference (independent implementation, for correctness checking)
# ----------------------------------------------------------------------------
def _reference_generator(params, x_nchw):
    def conv(x, w, b):
        y = jax.lax.conv_general_dilated(
            x.astype(MXU_DTYPE), w.astype(MXU_DTYPE),
            window_strides=(1, 1), padding=((1, 1), (1, 1)),
            dimension_numbers=("NCHW", "HWIO", "NCHW"),
            preferred_element_type=jnp.float32)
        return y + b.reshape(1, -1, 1, 1)

    def inorm(x, relu=False):
        mean = jnp.mean(x, axis=(2, 3), keepdims=True)
        var = jnp.mean((x - mean) ** 2, axis=(2, 3), keepdims=True)
        y = (x - mean) * jax.lax.rsqrt(var + EPS)
        return jnp.maximum(y, 0.0) if relu else y

    p = params
    h = inorm(conv(x_nchw, p["c1_w"], p["c1_b"]), relu=True)
    r = inorm(conv(h, p["r1a_w"], p["r1a_b"]), relu=True)
    h = inorm(conv(r, p["r1b_w"], p["r1b_b"])) + h
    r = inorm(conv(h, p["r2a_w"], p["r2a_b"]), relu=True)
    h = inorm(conv(r, p["r2b_w"], p["r2b_b"])) + h
    return jnp.tanh(conv(h, p["co_w"], p["co_b"]))


# ----------------------------------------------------------------------------
if __name__ == "__main__":
    key = jax.random.PRNGKey(0)
    k_ab, k_ba, k_a, k_b = jax.random.split(key, 4)

    genAB = init_generator_params(k_ab)
    genBA = init_generator_params(k_ba)

    realA = jax.random.normal(k_a, (2, 3, 16, 16), jnp.float32)  # NCHW like PyTorch
    realB = jax.random.normal(k_b, (2, 3, 16, 16), jnp.float32)

    fakeB, recA, fakeA, recB = cyclegan_forward(genAB, genBA, realA, realB)
    jax.block_until_ready((fakeB, recA, fakeA, recB))

    assert fakeB.shape == realA.shape and recA.shape == realA.shape
    assert fakeA.shape == realB.shape and recB.shape == realB.shape

    # Per-generator-pass correctness check against an independent plain-JAX
    # reference.  Loose atol accounts for bf16 MXU-operand rounding / f32
    # reduction-order differences; structural bugs would show up as O(0.3+).
    refB = _reference_generator(genAB, realA)
    refA = _reference_generator(genBA, realB)
    ref_recA = _reference_generator(genBA, fakeB)
    ref_recB = _reference_generator(genAB, fakeA)
    np.testing.assert_allclose(np.asarray(fakeB), np.asarray(refB), atol=0.05, rtol=0)
    np.testing.assert_allclose(np.asarray(fakeA), np.asarray(refA), atol=0.05, rtol=0)
    np.testing.assert_allclose(np.asarray(recA), np.asarray(ref_recA), atol=0.05, rtol=0)
    np.testing.assert_allclose(np.asarray(recB), np.asarray(ref_recB), atol=0.05, rtol=0)

    print("KERNEL_OK")
</pallas_src>

<mosaic_0001>
module attributes {stable_mosaic.version = 11 : i64} {
  func.func @_generator_kernel(%arg0: i32, %arg1: memref<1x8x512xf32, #tpu.memory_space<vmem>>, %arg2: memref<1x6x8x72xbf16, #tpu.memory_space<vmem>>, %arg3: memref<1x6x8x1xf32, #tpu.memory_space<vmem>>, %arg4: memref<72x512xf32, #tpu.memory_space<vmem>>, %arg5: memref<1x8x512xf32, #tpu.memory_space<vmem>>) attributes {dimension_semantics = [#tpu.dimension_semantics<parallel>], iteration_bounds = array<i64: 2>, scalar_prefetch = 0 : i64, scratch_operands = 0 : i64, tpu.core_type = #tpu.core_type<tc>, window_params = [{transform_indices = @transform_0, window_bounds = array<i64: 1, 8, 512>}, {transform_indices = @transform_1, window_bounds = array<i64: 1, 6, 8, 72>}, {transform_indices = @transform_2, window_bounds = array<i64: 1, 6, 8, 1>}, {pipeline_mode = #tpu.pipeline_mode<synchronous>, transform_indices = @transform_3, window_bounds = array<i64: 72, 512>}, {transform_indices = @transform_4, window_bounds = array<i64: 1, 8, 512>}]} {
    %c0 = arith.constant 0 : index
    %c0_0 = arith.constant 0 : index
    %c0_1 = arith.constant 0 : index
    %0 = vector.load %arg1[%c0, %c0_0, %c0_1] : memref<1x8x512xf32, #tpu.memory_space<vmem>>, vector<1x8x512xf32>
    %1 = vector.shape_cast %0 : vector<1x8x512xf32> to vector<8x512xf32>
    %c17_i32 = arith.constant 17 : i32
    %2 = tpu.dynamic_rotate %1 by %c17_i32 dim 1 : vector<8x512xf32>, i32 -> vector<8x512xf32>
    %c16_i32 = arith.constant 16 : i32
    %3 = tpu.dynamic_rotate %1 by %c16_i32 dim 1 : vector<8x512xf32>, i32 -> vector<8x512xf32>
    %c15_i32 = arith.constant 15 : i32
    %4 = tpu.dynamic_rotate %1 by %c15_i32 dim 1 : vector<8x512xf32>, i32 -> vector<8x512xf32>
    %c1_i32 = arith.constant 1 : i32
    %5 = tpu.dynamic_rotate %1 by %c1_i32 dim 1 : vector<8x512xf32>, i32 -> vector<8x512xf32>
    %c511_i32 = arith.constant 511 : i32
    %6 = tpu.dynamic_rotate %1 by %c511_i32 dim 1 : vector<8x512xf32>, i32 -> vector<8x512xf32>
    %c497_i32 = arith.constant 497 : i32
    %7 = tpu.dynamic_rotate %1 by %c497_i32 dim 1 : vector<8x512xf32>, i32 -> vector<8x512xf32>
    %c496_i32 = arith.constant 496 : i32
    %8 = tpu.dynamic_rotate %1 by %c496_i32 dim 1 : vector<8x512xf32>, i32 -> vector<8x512xf32>
    %c495_i32 = arith.constant 495 : i32
    %9 = tpu.dynamic_rotate %1 by %c495_i32 dim 1 : vector<8x512xf32>, i32 -> vector<8x512xf32>
    %10 = tpu.concatenate %2, %3, %4, %5, %1, %6, %7, %8, %9 in 0 : vector<8x512xf32>, vector<8x512xf32>, vector<8x512xf32>, vector<8x512xf32>, vector<8x512xf32>, vector<8x512xf32>, vector<8x512xf32>, vector<8x512xf32>, vector<8x512xf32> -> vector<72x512xf32>
    %c0_2 = arith.constant 0 : index
    %c0_3 = arith.constant 0 : index
    %11 = vector.load %arg4[%c0_2, %c0_3] : memref<72x512xf32, #tpu.memory_space<vmem>>, vector<72x512xf32>
    %12 = arith.mulf %10, %11 : vector<72x512xf32>
    %13 = arith.truncf %12 : vector<72x512xf32> to vector<72x512xbf16>
    %c0_4 = arith.constant 0 : index
    %c0_5 = arith.constant 0 : index
    %c0_6 = arith.constant 0 : index
    %c0_7 = arith.constant 0 : index
    %14 = vector.load %arg2[%c0_4, %c0_5, %c0_6, %c0_7] : memref<1x6x8x72xbf16, #tpu.memory_space<vmem>>, vector<1x1x8x72xbf16>
    %15 = vector.shape_cast %14 : vector<1x1x8x72xbf16> to vector<8x72xbf16>
    %cst = arith.constant dense<0.000000e+00> : vector<8x512xf32>
    %16 = tpu.matmul %15, %13, %cst {dimension_numbers = #tpu.dot_dimension_numbers<[1], [0], [0], [1], [0, 0, 1, 1], [], []>} : vector<8x72xbf16>, vector<72x512xbf16>, vector<8x512xf32> -> vector<8x512xf32>
    %c0_8 = arith.constant 0 : index
    %c0_9 = arith.constant 0 : index
    %c0_10 = arith.constant 0 : index
    %c0_11 = arith.constant 0 : index
    %17 = vector.load %arg3[%c0_8, %c0_9, %c0_10, %c0_11] : memref<1x6x8x1xf32, #tpu.memory_space<vmem>>, vector<1x1x8x1xf32>
    %18 = vector.shape_cast %17 : vector<1x1x8x1xf32> to vector<8x1xf32>
    %19 = vector.broadcast %18 : vector<8x1xf32> to vector<8x512xf32>
    %20 = arith.addf %16, %19 : vector<8x512xf32>
    %21 = vector.extract_strided_slice %20 {offsets = [0, 0], sizes = [8, 256], strides = [1, 1]} : vector<8x512xf32> to vector<8x256xf32>
    %cst_12 = arith.constant dense<0.000000e+00> : vector<8xf32>
    %22 = vector.multi_reduction <add>, %21, %cst_12 [1] : vector<8x256xf32> to vector<8xf32>
    %23 = vector.shape_cast %22 : vector<8xf32> to vector<8x1xf32>
    %24 = arith.mulf %21, %21 : vector<8x256xf32>
    %cst_13 = arith.constant dense<0.000000e+00> : vector<8xf32>
    %25 = vector.multi_reduction <add>, %24, %cst_13 [1] : vector<8x256xf32> to vector<8xf32>
    %26 = vector.shape_cast %25 : vector<8xf32> to vector<8x1xf32>
    %cst_14 = arith.constant 3.906250e-03 : f32
    %27 = vector.broadcast %cst_14 : f32 to vector<8x1xf32>
    %28 = arith.mulf %23, %27 : vector<8x1xf32>
    %cst_15 = arith.constant 3.906250e-03 : f32
    %29 = vector.broadcast %cst_15 : f32 to vector<8x1xf32>
    %30 = arith.mulf %26, %29 : vector<8x1xf32>
    %31 = arith.mulf %28, %28 : vector<8x1xf32>
    %32 = arith.subf %30, %31 : vector<8x1xf32>
    %33 = vector.broadcast %28 : vector<8x1xf32> to vector<8x256xf32>
    %34 = arith.subf %21, %33 : vector<8x256xf32>
    %cst_16 = arith.constant 9.99999974E-6 : f32
    %35 = vector.broadcast %cst_16 : f32 to vector<8x1xf32>
    %36 = arith.addf %32, %35 : vector<8x1xf32>
    %37 = math.rsqrt %36 : vector<8x1xf32>
    %38 = vector.broadcast %37 : vector<8x1xf32> to vector<8x256xf32>
    %39 = arith.mulf %34, %38 : vector<8x256xf32>
    %40 = vector.extract_strided_slice %20 {offsets = [0, 256], sizes = [8, 256], strides = [1, 1]} : vector<8x512xf32> to vector<8x256xf32>
    %cst_17 = arith.constant dense<0.000000e+00> : vector<8xf32>
    %41 = vector.multi_reduction <add>, %40, %cst_17 [1] : vector<8x256xf32> to vector<8xf32>
    %42 = vector.shape_cast %41 : vector<8xf32> to vector<8x1xf32>
    %43 = arith.mulf %40, %40 : vector<8x256xf32>
    %cst_18 = arith.constant dense<0.000000e+00> : vector<8xf32>
    %44 = vector.multi_reduction <add>, %43, %cst_18 [1] : vector<8x256xf32> to vector<8xf32>
    %45 = vector.shape_cast %44 : vector<8xf32> to vector<8x1xf32>
    %cst_19 = arith.constant 3.906250e-03 : f32
    %46 = vector.broadcast %cst_19 : f32 to vector<8x1xf32>
    %47 = arith.mulf %42, %46 : vector<8x1xf32>
    %cst_20 = arith.constant 3.906250e-03 : f32
    %48 = vector.broadcast %cst_20 : f32 to vector<8x1xf32>
    %49 = arith.mulf %45, %48 : vector<8x1xf32>
    %50 = arith.mulf %47, %47 : vector<8x1xf32>
    %51 = arith.subf %49, %50 : vector<8x1xf32>
    %52 = vector.broadcast %47 : vector<8x1xf32> to vector<8x256xf32>
    %53 = arith.subf %40, %52 : vector<8x256xf32>
    %cst_21 = arith.constant 9.99999974E-6 : f32
    %54 = vector.broadcast %cst_21 : f32 to vector<8x1xf32>
    %55 = arith.addf %51, %54 : vector<8x1xf32>
    %56 = math.rsqrt %55 : vector<8x1xf32>
    %57 = vector.broadcast %56 : vector<8x1xf32> to vector<8x256xf32>
    %58 = arith.mulf %53, %57 : vector<8x256xf32>
    %59 = tpu.concatenate %39, %58 in 1 : vector<8x256xf32>, vector<8x256xf32> -> vector<8x512xf32>
    %cst_22 = arith.constant 0.000000e+00 : f32
    %60 = vector.broadcast %cst_22 : f32 to vector<8x512xf32>
    %61 = arith.maximumf %59, %60 : vector<8x512xf32>
    %c17_i32_23 = arith.constant 17 : i32
    %62 = tpu.dynamic_rotate %61 by %c17_i32_23 dim 1 : vector<8x512xf32>, i32 -> vector<8x512xf32>
    %c16_i32_24 = arith.constant 16 : i32
    %63 = tpu.dynamic_rotate %61 by %c16_i32_24 dim 1 : vector<8x512xf32>, i32 -> vector<8x512xf32>
    %c15_i32_25 = arith.constant 15 : i32
    %64 = tpu.dynamic_rotate %61 by %c15_i32_25 dim 1 : vector<8x512xf32>, i32 -> vector<8x512xf32>
    %c1_i32_26 = arith.constant 1 : i32
    %65 = tpu.dynamic_rotate %61 by %c1_i32_26 dim 1 : vector<8x512xf32>, i32 -> vector<8x512xf32>
    %c511_i32_27 = arith.constant 511 : i32
    %66 = tpu.dynamic_rotate %61 by %c511_i32_27 dim 1 : vector<8x512xf32>, i32 -> vector<8x512xf32>
    %c497_i32_28 = arith.constant 497 : i32
    %67 = tpu.dynamic_rotate %61 by %c497_i32_28 dim 1 : vector<8x512xf32>, i32 -> vector<8x512xf32>
    %c496_i32_29 = arith.constant 496 : i32
    %68 = tpu.dynamic_rotate %61 by %c496_i32_29 dim 1 : vector<8x512xf32>, i32 -> vector<8x512xf32>
    %c495_i32_30 = arith.constant 495 : i32
    %69 = tpu.dynamic_rotate %61 by %c495_i32_30 dim 1 : vector<8x512xf32>, i32 -> vector<8x512xf32>
    %70 = tpu.concatenate %62, %63, %64, %65, %61, %66, %67, %68, %69 in 0 : vector<8x512xf32>, vector<8x512xf32>, vector<8x512xf32>, vector<8x512xf32>, vector<8x512xf32>, vector<8x512xf32>, vector<8x512xf32>, vector<8x512xf32>, vector<8x512xf32> -> vector<72x512xf32>
    %c0_31 = arith.constant 0 : index
    %c0_32 = arith.constant 0 : index
    %71 = vector.load %arg4[%c0_31, %c0_32] : memref<72x512xf32, #tpu.memory_space<vmem>>, vector<72x512xf32>
    %72 = arith.mulf %70, %71 : vector<72x512xf32>
    %73 = arith.truncf %72 : vector<72x512xf32> to vector<72x512xbf16>
    %c0_33 = arith.constant 0 : index
    %c1 = arith.constant 1 : index
    %c0_34 = arith.constant 0 : index
    %c0_35 = arith.constant 0 : index
    %74 = vector.load %arg2[%c0_33, %c1, %c0_34, %c0_35] : memref<1x6x8x72xbf16, #tpu.memory_space<vmem>>, vector<1x1x8x72xbf16>
    %75 = vector.shape_cast %74 : vector<1x1x8x72xbf16> to vector<8x72xbf16>
    %cst_36 = arith.constant dense<0.000000e+00> : vector<8x512xf32>
    %76 = tpu.matmul %75, %73, %cst_36 {dimension_numbers = #tpu.dot_dimension_numbers<[1], [0], [0], [1], [0, 0, 1, 1], [], []>} : vector<8x72xbf16>, vector<72x512xbf16>, vector<8x512xf32> -> vector<8x512xf32>
    %c0_37 = arith.constant 0 : index
    %c1_38 = arith.constant 1 : index
    %c0_39 = arith.constant 0 : index
    %c0_40 = arith.constant 0 : index
    %77 = vector.load %arg3[%c0_37, %c1_38, %c0_39, %c0_40] : memref<1x6x8x1xf32, #tpu.memory_space<vmem>>, vector<1x1x8x1xf32>
    %78 = vector.shape_cast %77 : vector<1x1x8x1xf32> to vector<8x1xf32>
    %79 = vector.broadcast %78 : vector<8x1xf32> to vector<8x512xf32>
    %80 = arith.addf %76, %79 : vector<8x512xf32>
    %81 = vector.extract_strided_slice %80 {offsets = [0, 0], sizes = [8, 256], strides = [1, 1]} : vector<8x512xf32> to vector<8x256xf32>
    %cst_41 = arith.constant dense<0.000000e+00> : vector<8xf32>
    %82 = vector.multi_reduction <add>, %81, %cst_41 [1] : vector<8x256xf32> to vector<8xf32>
    %83 = vector.shape_cast %82 : vector<8xf32> to vector<8x1xf32>
    %84 = arith.mulf %81, %81 : vector<8x256xf32>
    %cst_42 = arith.constant dense<0.000000e+00> : vector<8xf32>
    %85 = vector.multi_reduction <add>, %84, %cst_42 [1] : vector<8x256xf32> to vector<8xf32>
    %86 = vector.shape_cast %85 : vector<8xf32> to vector<8x1xf32>
    %cst_43 = arith.constant 3.906250e-03 : f32
    %87 = vector.broadcast %cst_43 : f32 to vector<8x1xf32>
    %88 = arith.mulf %83, %87 : vector<8x1xf32>
    %cst_44 = arith.constant 3.906250e-03 : f32
    %89 = vector.broadcast %cst_44 : f32 to vector<8x1xf32>
    %90 = arith.mulf %86, %89 : vector<8x1xf32>
    %91 = arith.mulf %88, %88 : vector<8x1xf32>
    %92 = arith.subf %90, %91 : vector<8x1xf32>
    %93 = vector.broadcast %88 : vector<8x1xf32> to vector<8x256xf32>
    %94 = arith.subf %81, %93 : vector<8x256xf32>
    %cst_45 = arith.constant 9.99999974E-6 : f32
    %95 = vector.broadcast %cst_45 : f32 to vector<8x1xf32>
    %96 = arith.addf %92, %95 : vector<8x1xf32>
    %97 = math.rsqrt %96 : vector<8x1xf32>
    %98 = vector.broadcast %97 : vector<8x1xf32> to vector<8x256xf32>
    %99 = arith.mulf %94, %98 : vector<8x256xf32>
    %100 = vector.extract_strided_slice %80 {offsets = [0, 256], sizes = [8, 256], strides = [1, 1]} : vector<8x512xf32> to vector<8x256xf32>
    %cst_46 = arith.constant dense<0.000000e+00> : vector<8xf32>
    %101 = vector.multi_reduction <add>, %100, %cst_46 [1] : vector<8x256xf32> to vector<8xf32>
    %102 = vector.shape_cast %101 : vector<8xf32> to vector<8x1xf32>
    %103 = arith.mulf %100, %100 : vector<8x256xf32>
    %cst_47 = arith.constant dense<0.000000e+00> : vector<8xf32>
    %104 = vector.multi_reduction <add>, %103, %cst_47 [1] : vector<8x256xf32> to vector<8xf32>
    %105 = vector.shape_cast %104 : vector<8xf32> to vector<8x1xf32>
    %cst_48 = arith.constant 3.906250e-03 : f32
    %106 = vector.broadcast %cst_48 : f32 to vector<8x1xf32>
    %107 = arith.mulf %102, %106 : vector<8x1xf32>
    %cst_49 = arith.constant 3.906250e-03 : f32
    %108 = vector.broadcast %cst_49 : f32 to vector<8x1xf32>
    %109 = arith.mulf %105, %108 : vector<8x1xf32>
    %110 = arith.mulf %107, %107 : vector<8x1xf32>
    %111 = arith.subf %109, %110 : vector<8x1xf32>
    %112 = vector.broadcast %107 : vector<8x1xf32> to vector<8x256xf32>
    %113 = arith.subf %100, %112 : vector<8x256xf32>
    %cst_50 = arith.constant 9.99999974E-6 : f32
    %114 = vector.broadcast %cst_50 : f32 to vector<8x1xf32>
    %115 = arith.addf %111, %114 : vector<8x1xf32>
    %116 = math.rsqrt %115 : vector<8x1xf32>
    %117 = vector.broadcast %116 : vector<8x1xf32> to vector<8x256xf32>
    %118 = arith.mulf %113, %117 : vector<8x256xf32>
    %119 = tpu.concatenate %99, %118 in 1 : vector<8x256xf32>, vector<8x256xf32> -> vector<8x512xf32>
    %cst_51 = arith.constant 0.000000e+00 : f32
    %120 = vector.broadcast %cst_51 : f32 to vector<8x512xf32>
    %121 = arith.maximumf %119, %120 : vector<8x512xf32>
    %c17_i32_52 = arith.constant 17 : i32
    %122 = tpu.dynamic_rotate %121 by %c17_i32_52 dim 1 : vector<8x512xf32>, i32 -> vector<8x512xf32>
    %c16_i32_53 = arith.constant 16 : i32
    %123 = tpu.dynamic_rotate %121 by %c16_i32_53 dim 1 : vector<8x512xf32>, i32 -> vector<8x512xf32>
    %c15_i32_54 = arith.constant 15 : i32
    %124 = tpu.dynamic_rotate %121 by %c15_i32_54 dim 1 : vector<8x512xf32>, i32 -> vector<8x512xf32>
    %c1_i32_55 = arith.constant 1 : i32
    %125 = tpu.dynamic_rotate %121 by %c1_i32_55 dim 1 : vector<8x512xf32>, i32 -> vector<8x512xf32>
    %c511_i32_56 = arith.constant 511 : i32
    %126 = tpu.dynamic_rotate %121 by %c511_i32_56 dim 1 : vector<8x512xf32>, i32 -> vector<8x512xf32>
    %c497_i32_57 = arith.constant 497 : i32
    %127 = tpu.dynamic_rotate %121 by %c497_i32_57 dim 1 : vector<8x512xf32>, i32 -> vector<8x512xf32>
    %c496_i32_58 = arith.constant 496 : i32
    %128 = tpu.dynamic_rotate %121 by %c496_i32_58 dim 1 : vector<8x512xf32>, i32 -> vector<8x512xf32>
    %c495_i32_59 = arith.constant 495 : i32
    %129 = tpu.dynamic_rotate %121 by %c495_i32_59 dim 1 : vector<8x512xf32>, i32 -> vector<8x512xf32>
    %130 = tpu.concatenate %122, %123, %124, %125, %121, %126, %127, %128, %129 in 0 : vector<8x512xf32>, vector<8x512xf32>, vector<8x512xf32>, vector<8x512xf32>, vector<8x512xf32>, vector<8x512xf32>, vector<8x512xf32>, vector<8x512xf32>, vector<8x512xf32> -> vector<72x512xf32>
    %c0_60 = arith.constant 0 : index
    %c0_61 = arith.constant 0 : index
    %131 = vector.load %arg4[%c0_60, %c0_61] : memref<72x512xf32, #tpu.memory_space<vmem>>, vector<72x512xf32>
    %132 = arith.mulf %130, %131 : vector<72x512xf32>
    %133 = arith.truncf %132 : vector<72x512xf32> to vector<72x512xbf16>
    %c0_62 = arith.constant 0 : index
    %c2 = arith.constant 2 : index
    %c0_63 = arith.constant 0 : index
    %c0_64 = arith.constant 0 : index
    %134 = vector.load %arg2[%c0_62, %c2, %c0_63, %c0_64] : memref<1x6x8x72xbf16, #tpu.memory_space<vmem>>, vector<1x1x8x72xbf16>
    %135 = vector.shape_cast %134 : vector<1x1x8x72xbf16> to vector<8x72xbf16>
    %cst_65 = arith.constant dense<0.000000e+00> : vector<8x512xf32>
    %136 = tpu.matmul %135, %133, %cst_65 {dimension_numbers = #tpu.dot_dimension_numbers<[1], [0], [0], [1], [0, 0, 1, 1], [], []>} : vector<8x72xbf16>, vector<72x512xbf16>, vector<8x512xf32> -> vector<8x512xf32>
    %c0_66 = arith.constant 0 : index
    %c2_67 = arith.constant 2 : index
    %c0_68 = arith.constant 0 : index
    %c0_69 = arith.constant 0 : index
    %137 = vector.load %arg3[%c0_66, %c2_67, %c0_68, %c0_69] : memref<1x6x8x1xf32, #tpu.memory_space<vmem>>, vector<1x1x8x1xf32>
    %138 = vector.shape_cast %137 : vector<1x1x8x1xf32> to vector<8x1xf32>
    %139 = vector.broadcast %138 : vector<8x1xf32> to vector<8x512xf32>
    %140 = arith.addf %136, %139 : vector<8x512xf32>
    %141 = vector.extract_strided_slice %140 {offsets = [0, 0], sizes = [8, 256], strides = [1, 1]} : vector<8x512xf32> to vector<8x256xf32>
    %cst_70 = arith.constant dense<0.000000e+00> : vector<8xf32>
    %142 = vector.multi_reduction <add>, %141, %cst_70 [1] : vector<8x256xf32> to vector<8xf32>
    %143 = vector.shape_cast %142 : vector<8xf32> to vector<8x1xf32>
    %144 = arith.mulf %141, %141 : vector<8x256xf32>
    %cst_71 = arith.constant dense<0.000000e+00> : vector<8xf32>
    %145 = vector.multi_reduction <add>, %144, %cst_71 [1] : vector<8x256xf32> to vector<8xf32>
    %146 = vector.shape_cast %145 : vector<8xf32> to vector<8x1xf32>
    %cst_72 = arith.constant 3.906250e-03 : f32
    %147 = vector.broadcast %cst_72 : f32 to vector<8x1xf32>
    %148 = arith.mulf %143, %147 : vector<8x1xf32>
    %cst_73 = arith.constant 3.906250e-03 : f32
    %149 = vector.broadcast %cst_73 : f32 to vector<8x1xf32>
    %150 = arith.mulf %146, %149 : vector<8x1xf32>
    %151 = arith.mulf %148, %148 : vector<8x1xf32>
    %152 = arith.subf %150, %151 : vector<8x1xf32>
    %153 = vector.broadcast %148 : vector<8x1xf32> to vector<8x256xf32>
    %154 = arith.subf %141, %153 : vector<8x256xf32>
    %cst_74 = arith.constant 9.99999974E-6 : f32
    %155 = vector.broadcast %cst_74 : f32 to vector<8x1xf32>
    %156 = arith.addf %152, %155 : vector<8x1xf32>
    %157 = math.rsqrt %156 : vector<8x1xf32>
    %158 = vector.broadcast %157 : vector<8x1xf32> to vector<8x256xf32>
    %159 = arith.mulf %154, %158 : vector<8x256xf32>
    %160 = vector.extract_strided_slice %140 {offsets = [0, 256], sizes = [8, 256], strides = [1, 1]} : vector<8x512xf32> to vector<8x256xf32>
    %cst_75 = arith.constant dense<0.000000e+00> : vector<8xf32>
    %161 = vector.multi_reduction <add>, %160, %cst_75 [1] : vector<8x256xf32> to vector<8xf32>
    %162 = vector.shape_cast %161 : vector<8xf32> to vector<8x1xf32>
    %163 = arith.mulf %160, %160 : vector<8x256xf32>
    %cst_76 = arith.constant dense<0.000000e+00> : vector<8xf32>
    %164 = vector.multi_reduction <add>, %163, %cst_76 [1] : vector<8x256xf32> to vector<8xf32>
    %165 = vector.shape_cast %164 : vector<8xf32> to vector<8x1xf32>
    %cst_77 = arith.constant 3.906250e-03 : f32
    %166 = vector.broadcast %cst_77 : f32 to vector<8x1xf32>
    %167 = arith.mulf %162, %166 : vector<8x1xf32>
    %cst_78 = arith.constant 3.906250e-03 : f32
    %168 = vector.broadcast %cst_78 : f32 to vector<8x1xf32>
    %169 = arith.mulf %165, %168 : vector<8x1xf32>
    %170 = arith.mulf %167, %167 : vector<8x1xf32>
    %171 = arith.subf %169, %170 : vector<8x1xf32>
    %172 = vector.broadcast %167 : vector<8x1xf32> to vector<8x256xf32>
    %173 = arith.subf %160, %172 : vector<8x256xf32>
    %cst_79 = arith.constant 9.99999974E-6 : f32
    %174 = vector.broadcast %cst_79 : f32 to vector<8x1xf32>
    %175 = arith.addf %171, %174 : vector<8x1xf32>
    %176 = math.rsqrt %175 : vector<8x1xf32>
    %177 = vector.broadcast %176 : vector<8x1xf32> to vector<8x256xf32>
    %178 = arith.mulf %173, %177 : vector<8x256xf32>
    %179 = tpu.concatenate %159, %178 in 1 : vector<8x256xf32>, vector<8x256xf32> -> vector<8x512xf32>
    %180 = arith.addf %179, %61 : vector<8x512xf32>
    %c17_i32_80 = arith.constant 17 : i32
    %181 = tpu.dynamic_rotate %180 by %c17_i32_80 dim 1 : vector<8x512xf32>, i32 -> vector<8x512xf32>
    %c16_i32_81 = arith.constant 16 : i32
    %182 = tpu.dynamic_rotate %180 by %c16_i32_81 dim 1 : vector<8x512xf32>, i32 -> vector<8x512xf32>
    %c15_i32_82 = arith.constant 15 : i32
    %183 = tpu.dynamic_rotate %180 by %c15_i32_82 dim 1 : vector<8x512xf32>, i32 -> vector<8x512xf32>
    %c1_i32_83 = arith.constant 1 : i32
    %184 = tpu.dynamic_rotate %180 by %c1_i32_83 dim 1 : vector<8x512xf32>, i32 -> vector<8x512xf32>
    %c511_i32_84 = arith.constant 511 : i32
    %185 = tpu.dynamic_rotate %180 by %c511_i32_84 dim 1 : vector<8x512xf32>, i32 -> vector<8x512xf32>
    %c497_i32_85 = arith.constant 497 : i32
    %186 = tpu.dynamic_rotate %180 by %c497_i32_85 dim 1 : vector<8x512xf32>, i32 -> vector<8x512xf32>
    %c496_i32_86 = arith.constant 496 : i32
    %187 = tpu.dynamic_rotate %180 by %c496_i32_86 dim 1 : vector<8x512xf32>, i32 -> vector<8x512xf32>
    %c495_i32_87 = arith.constant 495 : i32
    %188 = tpu.dynamic_rotate %180 by %c495_i32_87 dim 1 : vector<8x512xf32>, i32 -> vector<8x512xf32>
    %189 = tpu.concatenate %181, %182, %183, %184, %180, %185, %186, %187, %188 in 0 : vector<8x512xf32>, vector<8x512xf32>, vector<8x512xf32>, vector<8x512xf32>, vector<8x512xf32>, vector<8x512xf32>, vector<8x512xf32>, vector<8x512xf32>, vector<8x512xf32> -> vector<72x512xf32>
    %c0_88 = arith.constant 0 : index
    %c0_89 = arith.constant 0 : index
    %190 = vector.load %arg4[%c0_88, %c0_89] : memref<72x512xf32, #tpu.memory_space<vmem>>, vector<72x512xf32>
    %191 = arith.mulf %189, %190 : vector<72x512xf32>
    %192 = arith.truncf %191 : vector<72x512xf32> to vector<72x512xbf16>
    %c0_90 = arith.constant 0 : index
    %c3 = arith.constant 3 : index
    %c0_91 = arith.constant 0 : index
    %c0_92 = arith.constant 0 : index
    %193 = vector.load %arg2[%c0_90, %c3, %c0_91, %c0_92] : memref<1x6x8x72xbf16, #tpu.memory_space<vmem>>, vector<1x1x8x72xbf16>
    %194 = vector.shape_cast %193 : vector<1x1x8x72xbf16> to vector<8x72xbf16>
    %cst_93 = arith.constant dense<0.000000e+00> : vector<8x512xf32>
    %195 = tpu.matmul %194, %192, %cst_93 {dimension_numbers = #tpu.dot_dimension_numbers<[1], [0], [0], [1], [0, 0, 1, 1], [], []>} : vector<8x72xbf16>, vector<72x512xbf16>, vector<8x512xf32> -> vector<8x512xf32>
    %c0_94 = arith.constant 0 : index
    %c3_95 = arith.constant 3 : index
    %c0_96 = arith.constant 0 : index
    %c0_97 = arith.constant 0 : index
    %196 = vector.load %arg3[%c0_94, %c3_95, %c0_96, %c0_97] : memref<1x6x8x1xf32, #tpu.memory_space<vmem>>, vector<1x1x8x1xf32>
    %197 = vector.shape_cast %196 : vector<1x1x8x1xf32> to vector<8x1xf32>
    %198 = vector.broadcast %197 : vector<8x1xf32> to vector<8x512xf32>
    %199 = arith.addf %195, %198 : vector<8x512xf32>
    %200 = vector.extract_strided_slice %199 {offsets = [0, 0], sizes = [8, 256], strides = [1, 1]} : vector<8x512xf32> to vector<8x256xf32>
    %cst_98 = arith.constant dense<0.000000e+00> : vector<8xf32>
    %201 = vector.multi_reduction <add>, %200, %cst_98 [1] : vector<8x256xf32> to vector<8xf32>
    %202 = vector.shape_cast %201 : vector<8xf32> to vector<8x1xf32>
    %203 = arith.mulf %200, %200 : vector<8x256xf32>
    %cst_99 = arith.constant dense<0.000000e+00> : vector<8xf32>
    %204 = vector.multi_reduction <add>, %203, %cst_99 [1] : vector<8x256xf32> to vector<8xf32>
    %205 = vector.shape_cast %204 : vector<8xf32> to vector<8x1xf32>
    %cst_100 = arith.constant 3.906250e-03 : f32
    %206 = vector.broadcast %cst_100 : f32 to vector<8x1xf32>
    %207 = arith.mulf %202, %206 : vector<8x1xf32>
    %cst_101 = arith.constant 3.906250e-03 : f32
    %208 = vector.broadcast %cst_101 : f32 to vector<8x1xf32>
    %209 = arith.mulf %205, %208 : vector<8x1xf32>
    %210 = arith.mulf %207, %207 : vector<8x1xf32>
    %211 = arith.subf %209, %210 : vector<8x1xf32>
    %212 = vector.broadcast %207 : vector<8x1xf32> to vector<8x256xf32>
    %213 = arith.subf %200, %212 : vector<8x256xf32>
    %cst_102 = arith.constant 9.99999974E-6 : f32
    %214 = vector.broadcast %cst_102 : f32 to vector<8x1xf32>
    %215 = arith.addf %211, %214 : vector<8x1xf32>
    %216 = math.rsqrt %215 : vector<8x1xf32>
    %217 = vector.broadcast %216 : vector<8x1xf32> to vector<8x256xf32>
    %218 = arith.mulf %213, %217 : vector<8x256xf32>
    %219 = vector.extract_strided_slice %199 {offsets = [0, 256], sizes = [8, 256], strides = [1, 1]} : vector<8x512xf32> to vector<8x256xf32>
    %cst_103 = arith.constant dense<0.000000e+00> : vector<8xf32>
    %220 = vector.multi_reduction <add>, %219, %cst_103 [1] : vector<8x256xf32> to vector<8xf32>
    %221 = vector.shape_cast %220 : vector<8xf32> to vector<8x1xf32>
    %222 = arith.mulf %219, %219 : vector<8x256xf32>
    %cst_104 = arith.constant dense<0.000000e+00> : vector<8xf32>
    %223 = vector.multi_reduction <add>, %222, %cst_104 [1] : vector<8x256xf32> to vector<8xf32>
    %224 = vector.shape_cast %223 : vector<8xf32> to vector<8x1xf32>
    %cst_105 = arith.constant 3.906250e-03 : f32
    %225 = vector.broadcast %cst_105 : f32 to vector<8x1xf32>
    %226 = arith.mulf %221, %225 : vector<8x1xf32>
    %cst_106 = arith.constant 3.906250e-03 : f32
    %227 = vector.broadcast %cst_106 : f32 to vector<8x1xf32>
    %228 = arith.mulf %224, %227 : vector<8x1xf32>
    %229 = arith.mulf %226, %226 : vector<8x1xf32>
    %230 = arith.subf %228, %229 : vector<8x1xf32>
    %231 = vector.broadcast %226 : vector<8x1xf32> to vector<8x256xf32>
    %232 = arith.subf %219, %231 : vector<8x256xf32>
    %cst_107 = arith.constant 9.99999974E-6 : f32
    %233 = vector.broadcast %cst_107 : f32 to vector<8x1xf32>
    %234 = arith.addf %230, %233 : vector<8x1xf32>
    %235 = math.rsqrt %234 : vector<8x1xf32>
    %236 = vector.broadcast %235 : vector<8x1xf32> to vector<8x256xf32>
    %237 = arith.mulf %232, %236 : vector<8x256xf32>
    %238 = tpu.concatenate %218, %237 in 1 : vector<8x256xf32>, vector<8x256xf32> -> vector<8x512xf32>
    %cst_108 = arith.constant 0.000000e+00 : f32
    %239 = vector.broadcast %cst_108 : f32 to vector<8x512xf32>
    %240 = arith.maximumf %238, %239 : vector<8x512xf32>
    %c17_i32_109 = arith.constant 17 : i32
    %241 = tpu.dynamic_rotate %240 by %c17_i32_109 dim 1 : vector<8x512xf32>, i32 -> vector<8x512xf32>
    %c16_i32_110 = arith.constant 16 : i32
    %242 = tpu.dynamic_rotate %240 by %c16_i32_110 dim 1 : vector<8x512xf32>, i32 -> vector<8x512xf32>
    %c15_i32_111 = arith.constant 15 : i32
    %243 = tpu.dynamic_rotate %240 by %c15_i32_111 dim 1 : vector<8x512xf32>, i32 -> vector<8x512xf32>
    %c1_i32_112 = arith.constant 1 : i32
    %244 = tpu.dynamic_rotate %240 by %c1_i32_112 dim 1 : vector<8x512xf32>, i32 -> vector<8x512xf32>
    %c511_i32_113 = arith.constant 511 : i32
    %245 = tpu.dynamic_rotate %240 by %c511_i32_113 dim 1 : vector<8x512xf32>, i32 -> vector<8x512xf32>
    %c497_i32_114 = arith.constant 497 : i32
    %246 = tpu.dynamic_rotate %240 by %c497_i32_114 dim 1 : vector<8x512xf32>, i32 -> vector<8x512xf32>
    %c496_i32_115 = arith.constant 496 : i32
    %247 = tpu.dynamic_rotate %240 by %c496_i32_115 dim 1 : vector<8x512xf32>, i32 -> vector<8x512xf32>
    %c495_i32_116 = arith.constant 495 : i32
    %248 = tpu.dynamic_rotate %240 by %c495_i32_116 dim 1 : vector<8x512xf32>, i32 -> vector<8x512xf32>
    %249 = tpu.concatenate %241, %242, %243, %244, %240, %245, %246, %247, %248 in 0 : vector<8x512xf32>, vector<8x512xf32>, vector<8x512xf32>, vector<8x512xf32>, vector<8x512xf32>, vector<8x512xf32>, vector<8x512xf32>, vector<8x512xf32>, vector<8x512xf32> -> vector<72x512xf32>
    %c0_117 = arith.constant 0 : index
    %c0_118 = arith.constant 0 : index
    %250 = vector.load %arg4[%c0_117, %c0_118] : memref<72x512xf32, #tpu.memory_space<vmem>>, vector<72x512xf32>
    %251 = arith.mulf %249, %250 : vector<72x512xf32>
    %252 = arith.truncf %251 : vector<72x512xf32> to vector<72x512xbf16>
    %c0_119 = arith.constant 0 : index
    %c4 = arith.constant 4 : index
    %c0_120 = arith.constant 0 : index
    %c0_121 = arith.constant 0 : index
    %253 = vector.load %arg2[%c0_119, %c4, %c0_120, %c0_121] : memref<1x6x8x72xbf16, #tpu.memory_space<vmem>>, vector<1x1x8x72xbf16>
    %254 = vector.shape_cast %253 : vector<1x1x8x72xbf16> to vector<8x72xbf16>
    %cst_122 = arith.constant dense<0.000000e+00> : vector<8x512xf32>
    %255 = tpu.matmul %254, %252, %cst_122 {dimension_numbers = #tpu.dot_dimension_numbers<[1], [0], [0], [1], [0, 0, 1, 1], [], []>} : vector<8x72xbf16>, vector<72x512xbf16>, vector<8x512xf32> -> vector<8x512xf32>
    %c0_123 = arith.constant 0 : index
    %c4_124 = arith.constant 4 : index
    %c0_125 = arith.constant 0 : index
    %c0_126 = arith.constant 0 : index
    %256 = vector.load %arg3[%c0_123, %c4_124, %c0_125, %c0_126] : memref<1x6x8x1xf32, #tpu.memory_space<vmem>>, vector<1x1x8x1xf32>
    %257 = vector.shape_cast %256 : vector<1x1x8x1xf32> to vector<8x1xf32>
    %258 = vector.broadcast %257 : vector<8x1xf32> to vector<8x512xf32>
    %259 = arith.addf %255, %258 : vector<8x512xf32>
    %260 = vector.extract_strided_slice %259 {offsets = [0, 0], sizes = [8, 256], strides = [1, 1]} : vector<8x512xf32> to vector<8x256xf32>
    %cst_127 = arith.constant dense<0.000000e+00> : vector<8xf32>
    %261 = vector.multi_reduction <add>, %260, %cst_127 [1] : vector<8x256xf32> to vector<8xf32>
    %262 = vector.shape_cast %261 : vector<8xf32> to vector<8x1xf32>
    %263 = arith.mulf %260, %260 : vector<8x256xf32>
    %cst_128 = arith.constant dense<0.000000e+00> : vector<8xf32>
    %264 = vector.multi_reduction <add>, %263, %cst_128 [1] : vector<8x256xf32> to vector<8xf32>
    %265 = vector.shape_cast %264 : vector<8xf32> to vector<8x1xf32>
    %cst_129 = arith.constant 3.906250e-03 : f32
    %266 = vector.broadcast %cst_129 : f32 to vector<8x1xf32>
    %267 = arith.mulf %262, %266 : vector<8x1xf32>
    %cst_130 = arith.constant 3.906250e-03 : f32
    %268 = vector.broadcast %cst_130 : f32 to vector<8x1xf32>
    %269 = arith.mulf %265, %268 : vector<8x1xf32>
    %270 = arith.mulf %267, %267 : vector<8x1xf32>
    %271 = arith.subf %269, %270 : vector<8x1xf32>
    %272 = vector.broadcast %267 : vector<8x1xf32> to vector<8x256xf32>
    %273 = arith.subf %260, %272 : vector<8x256xf32>
    %cst_131 = arith.constant 9.99999974E-6 : f32
    %274 = vector.broadcast %cst_131 : f32 to vector<8x1xf32>
    %275 = arith.addf %271, %274 : vector<8x1xf32>
    %276 = math.rsqrt %275 : vector<8x1xf32>
    %277 = vector.broadcast %276 : vector<8x1xf32> to vector<8x256xf32>
    %278 = arith.mulf %273, %277 : vector<8x256xf32>
    %279 = vector.extract_strided_slice %259 {offsets = [0, 256], sizes = [8, 256], strides = [1, 1]} : vector<8x512xf32> to vector<8x256xf32>
    %cst_132 = arith.constant dense<0.000000e+00> : vector<8xf32>
    %280 = vector.multi_reduction <add>, %279, %cst_132 [1] : vector<8x256xf32> to vector<8xf32>
    %281 = vector.shape_cast %280 : vector<8xf32> to vector<8x1xf32>
    %282 = arith.mulf %279, %279 : vector<8x256xf32>
    %cst_133 = arith.constant dense<0.000000e+00> : vector<8xf32>
    %283 = vector.multi_reduction <add>, %282, %cst_133 [1] : vector<8x256xf32> to vector<8xf32>
    %284 = vector.shape_cast %283 : vector<8xf32> to vector<8x1xf32>
    %cst_134 = arith.constant 3.906250e-03 : f32
    %285 = vector.broadcast %cst_134 : f32 to vector<8x1xf32>
    %286 = arith.mulf %281, %285 : vector<8x1xf32>
    %cst_135 = arith.constant 3.906250e-03 : f32
    %287 = vector.broadcast %cst_135 : f32 to vector<8x1xf32>
    %288 = arith.mulf %284, %287 : vector<8x1xf32>
    %289 = arith.mulf %286, %286 : vector<8x1xf32>
    %290 = arith.subf %288, %289 : vector<8x1xf32>
    %291 = vector.broadcast %286 : vector<8x1xf32> to vector<8x256xf32>
    %292 = arith.subf %279, %291 : vector<8x256xf32>
    %cst_136 = arith.constant 9.99999974E-6 : f32
    %293 = vector.broadcast %cst_136 : f32 to vector<8x1xf32>
    %294 = arith.addf %290, %293 : vector<8x1xf32>
    %295 = math.rsqrt %294 : vector<8x1xf32>
    %296 = vector.broadcast %295 : vector<8x1xf32> to vector<8x256xf32>
    %297 = arith.mulf %292, %296 : vector<8x256xf32>
    %298 = tpu.concatenate %278, %297 in 1 : vector<8x256xf32>, vector<8x256xf32> -> vector<8x512xf32>
    %299 = arith.addf %298, %180 : vector<8x512xf32>
    %c17_i32_137 = arith.constant 17 : i32
    %300 = tpu.dynamic_rotate %299 by %c17_i32_137 dim 1 : vector<8x512xf32>, i32 -> vector<8x512xf32>
    %c16_i32_138 = arith.constant 16 : i32
    %301 = tpu.dynamic_rotate %299 by %c16_i32_138 dim 1 : vector<8x512xf32>, i32 -> vector<8x512xf32>
    %c15_i32_139 = arith.constant 15 : i32
    %302 = tpu.dynamic_rotate %299 by %c15_i32_139 dim 1 : vector<8x512xf32>, i32 -> vector<8x512xf32>
    %c1_i32_140 = arith.constant 1 : i32
    %303 = tpu.dynamic_rotate %299 by %c1_i32_140 dim 1 : vector<8x512xf32>, i32 -> vector<8x512xf32>
    %c511_i32_141 = arith.constant 511 : i32
    %304 = tpu.dynamic_rotate %299 by %c511_i32_141 dim 1 : vector<8x512xf32>, i32 -> vector<8x512xf32>
    %c497_i32_142 = arith.constant 497 : i32
    %305 = tpu.dynamic_rotate %299 by %c497_i32_142 dim 1 : vector<8x512xf32>, i32 -> vector<8x512xf32>
    %c496_i32_143 = arith.constant 496 : i32
    %306 = tpu.dynamic_rotate %299 by %c496_i32_143 dim 1 : vector<8x512xf32>, i32 -> vector<8x512xf32>
    %c495_i32_144 = arith.constant 495 : i32
    %307 = tpu.dynamic_rotate %299 by %c495_i32_144 dim 1 : vector<8x512xf32>, i32 -> vector<8x512xf32>
    %308 = tpu.concatenate %300, %301, %302, %303, %299, %304, %305, %306, %307 in 0 : vector<8x512xf32>, vector<8x512xf32>, vector<8x512xf32>, vector<8x512xf32>, vector<8x512xf32>, vector<8x512xf32>, vector<8x512xf32>, vector<8x512xf32>, vector<8x512xf32> -> vector<72x512xf32>
    %c0_145 = arith.constant 0 : index
    %c0_146 = arith.constant 0 : index
    %309 = vector.load %arg4[%c0_145, %c0_146] : memref<72x512xf32, #tpu.memory_space<vmem>>, vector<72x512xf32>
    %310 = arith.mulf %308, %309 : vector<72x512xf32>
    %311 = arith.truncf %310 : vector<72x512xf32> to vector<72x512xbf16>
    %c0_147 = arith.constant 0 : index
    %c5 = arith.constant 5 : index
    %c0_148 = arith.constant 0 : index
    %c0_149 = arith.constant 0 : index
    %312 = vector.load %arg2[%c0_147, %c5, %c0_148, %c0_149] : memref<1x6x8x72xbf16, #tpu.memory_space<vmem>>, vector<1x1x8x72xbf16>
    %313 = vector.shape_cast %312 : vector<1x1x8x72xbf16> to vector<8x72xbf16>
    %cst_150 = arith.constant dense<0.000000e+00> : vector<8x512xf32>
    %314 = tpu.matmul %313, %311, %cst_150 {dimension_numbers = #tpu.dot_dimension_numbers<[1], [0], [0], [1], [0, 0, 1, 1], [], []>} : vector<8x72xbf16>, vector<72x512xbf16>, vector<8x512xf32> -> vector<8x512xf32>
    %c0_151 = arith.constant 0 : index
    %c5_152 = arith.constant 5 : index
    %c0_153 = arith.constant 0 : index
    %c0_154 = arith.constant 0 : index
    %315 = vector.load %arg3[%c0_151, %c5_152, %c0_153, %c0_154] : memref<1x6x8x1xf32, #tpu.memory_space<vmem>>, vector<1x1x8x1xf32>
    %316 = vector.shape_cast %315 : vector<1x1x8x1xf32> to vector<8x1xf32>
    %317 = vector.broadcast %316 : vector<8x1xf32> to vector<8x512xf32>
    %318 = arith.addf %314, %317 : vector<8x512xf32>
    %319 = math.tanh %318 : vector<8x512xf32>
    %c0_155 = arith.constant 0 : index
    %c0_156 = arith.constant 0 : index
    %c0_157 = arith.constant 0 : index
    %320 = vector.load %arg5[%c0_155, %c0_156, %c0_157] : memref<1x8x512xf32, #tpu.memory_space<vmem>>, vector<1x8x512xf32>
    %321 = vector.shape_cast %320 : vector<1x8x512xf32> to vector<8x512xf32>
    %322 = vector.shape_cast %319 : vector<8x512xf32> to vector<1x8x512xf32>
    tpu.vector_store %arg5[%c0_155, %c0_156, %c0_157], %322 {strides = array<i32>} : memref<1x8x512xf32, #tpu.memory_space<vmem>>, vector<1x8x512xf32>,
    return
  }
  func.func @transform_0(%arg0: i32) -> (i32, i32, i32) {
    %c0_i32 = arith.constant 0 : i32
    %c0_i32_0 = arith.constant 0 : i32
    %c0_i32_1 = arith.constant 0 : i32
    return %arg0, %c0_i32, %c0_i32_0 : i32, i32, i32
  }
  func.func @transform_1(%arg0: i32) -> (i32, i32, i32, i32) {
    %c0_i32 = arith.constant 0 : i32
    %c0_i32_0 = arith.constant 0 : i32
    %c0_i32_1 = arith.constant 0 : i32
    %c0_i32_2 = arith.constant 0 : i32
    return %arg0, %c0_i32, %c0_i32_0, %c0_i32_1 : i32, i32, i32, i32
  }
  func.func @transform_2(%arg0: i32) -> (i32, i32, i32, i32) {
    %c0_i32 = arith.constant 0 : i32
    %c0_i32_0 = arith.constant 0 : i32
    %c0_i32_1 = arith.constant 0 : i32
    %c0_i32_2 = arith.constant 0 : i32
    return %arg0, %c0_i32, %c0_i32_0, %c0_i32_1 : i32, i32, i32, i32
  }
  func.func @transform_3(%arg0: i32) -> (i32, i32) {
    %c0_i32 = arith.constant 0 : i32
    %c0_i32_0 = arith.constant 0 : i32
    %c0_i32_1 = arith.constant 0 : i32
    return %c0_i32, %c0_i32_0 : i32, i32
  }
  func.func @transform_4(%arg0: i32) -> (i32, i32, i32) {
    %c0_i32 = arith.constant 0 : i32
    %c0_i32_0 = arith.constant 0 : i32
    %c0_i32_1 = arith.constant 0 : i32
    return %arg0, %c0_i32, %c0_i32_0 : i32, i32, i32
  }
}

</mosaic_0001>

<bundles_post_ra>
// kernel: cyclegan_forward.2
= control target key start
LH: loop header
LB: loop body
LE: loop exit
PB: predicated region body
PF: predicated region fallthrough
CT: control target
= control target key end

     0   :  { %s2318_s15 = smov 0   ;;  %s3886_s0 = inlined_call_operand.vmem [shape: f32[2,8,512], index: 0, kind: input, shape index: {}]   ;;  %s3887_s1 = inlined_call_operand.vmem [shape: bf16[2,6,8,72], index: 1, kind: input, shape index: {}]   ;;  %s3888_s2 = inlined_call_operand.vmem [shape: f32[2,6,8,1], index: 2, kind: input, shape index: {}]   ;;  %s3889_s3 = inlined_call_operand.vmem [shape: f32[72,512], index: 3, kind: input, shape index: {}]   ;;  %s3890_s4 = inlined_call_operand.vmem [shape: f32[2,8,512], index: 4, kind: output, shape index: {}]  }
   0x1 LB: > { %s2124_s16 = sadd.s32 4294967295, %s2282_s15   ;;  %p2128_p0 = scmp.ge.s32.totalorder %s2282_s15, 1  ;;  %s2282_s15 = sphi %s2318_s15, %s14_s15  }
   0x2   : > { %p182_p1 = scmp.lt.s32.totalorder %s2282_s15, 3 }
   0x4   : > { %p183_p2 = pnand %p2128_p0, %p182_p1 }
   0x6   : > { %186 = sbr.rel (%p183_p2) target bundleno = 3283 (0xcd3), region = 36 }
   0xd   : > { %p218_p3 = scmp.lt.s32.totalorder %s2124_s16, 1  ;;  %s2284_s21 = smov 17   ;;  %v3891_v4 = vmov 0   ;;  %v251_v6 = vlaneseq  ;;  %v2426_v13 = vld [vmem:[%s3889_s3 + $0x8] sm:$0xff]  ;;  %v2440_v19 = vld [vmem:[%s3889_s3] sm:$0xff]  ;;  %v2449_v23 = vld [vmem:[%s3889_s3 + $0x18] sm:$0xff] }
   0xe   : > { %s2285_s22 = smov 16   ;;  %s2286_s23 = smov 15   ;;  %497 = vmatprep.mubr.bf16.mxu0 %v3891_v4  ;;  %538 = vmatprep.mubr.bf16.mxu1 %v3891_v4  ;;  %v2431_v14 = vld [vmem:[%s3889_s3 + $0x28] sm:$0xff]  ;;  %v2454_v24 = vld [vmem:[%s3889_s3 + $0x10] sm:$0xff]  ;;  %v2461_v26 = vld [vmem:[%s3889_s3 + $0x20] sm:$0xff]  ;;  %vm452_vm8 = vcmask 1043456  }
   0xf   : > { %s3904_s16 = smov (!%p218_p3, %s2124_s16), 1  ;;  %s2287_s24 = smov 1   ;;  %2192 = vset.pattern.permute.xlu0 %v3891_v4  ;;  %2193 = vset.pattern.permute.xlu1 %v3891_v4  ;;  %v2417_v9 = vand.u32 127, %v251_v6  ;;  %v2466_v27 = vld [vmem:[%s3889_s3 + $0x38] sm:$0xff]  ;;  %v2471_v28 = vld [vmem:[%s3889_s3 + $0x30] sm:$0xff]  ;;  %v2490_v48 = vld [vmem:[%s3889_s3 + $0x48] sm:$0xff] }
  0x10   : > { %s2171_s17 = sshll.u32 %s3904_s16, 5  ;;  %s2288_s25 = smov 127   ;;  %v2497_v50 = vld [vmem:[%s3889_s3 + $0x68] sm:$0xff]  ;;  %v2502_v53 = vld [vmem:[%s3889_s3 + $0x40] sm:$0xff]  ;;  %v2512_v57 = vld [vmem:[%s3889_s3 + $0x50] sm:$0xff]  ;;  %vm448_vm9 = vcmask 588800  }
  0x11   : > { %s222_s20 = scalar_lea.vmem %s3886_s0, %s2171_s17  ;;  %s2289_s26 = smov 113   ;;  %vm253_vm0 = vcmp.lt.s32.totalorder %v2417_v9, 17  ;;  %vm266_vm1 = vcmp.lt.s32.totalorder %v2417_v9, 16  ;;  %vm279_vm2 = vcmp.lt.s32.totalorder %v2417_v9, 15  ;;  %vm292_vm3 = vcmp.lt.s32.totalorder %v2417_v9, 1  ;;  %v2517_v58 = vld [vmem:[%s3889_s3 + $0x58] sm:$0xff] }
  0x12   : > { %v2334_v0 = vld [vmem:[%s222_s20 + $0x10] sm:$0xff]  ;;  %v2336_v1 = vld [vmem:[%s222_s20] sm:$0xff]  ;;  %v2342_v2 = vld [vmem:[%s222_s20 + $0x18] sm:$0xff]  ;;  %s2290_s27 = smov 112   ;;  %s2292_s28 = smov 111   ;;  %vm305_vm4 = vcmp.lt.s32.totalorder %v2417_v9, 127 }
  0x13   : > { %247 = vrot.lane.b32.xlu1 %v2334_v0, %s2284_s21  ;;  %243 = vrot.lane.b32.xlu0 %v2336_v1, %s2284_s21  ;;  %v2344_v3 = vld [vmem:[%s222_s20 + $0x8] sm:$0xff]  ;;  %s2174_s29 = smul.u32 48, %s3904_s16  ;;  %v2527_v62 = vld [vmem:[%s3889_s3 + $0x60] sm:$0xff]  ;;  %vm331_vm5 = vcmp.lt.s32.totalorder %v2417_v9, 112  ;;  %vm318_vm6 = vcmp.lt.s32.totalorder %v2417_v9, 113  ;;  %vm344_vm7 = vcmp.lt.s32.totalorder %v2417_v9, 111  ;;  %s237_s13 = scalar_lea.vmem %s3890_s4, %s2171_s17 }
  0x14   : > { %v2532_v63 = vld [vmem:[%s3889_s3 + $0x70] sm:$0xff]  ;;  %s2173_s9 = smul.u32 24, %s3904_s16 }
  0x15   : > { %s2410_s6 = scalar_lea.vmem %s3888_s2, %s2174_s29 }
  0x16   : > { %v442_v5 = vld [vmem:[%s2410_s6] sm:$0xff]  ;;  %s2715_s12 = scalar_lea.vmem %s3887_s1, %s2173_s9 }
  0x17   : > { %249 = vrot.lane.b32.xlu1 %v2342_v2, %s2284_s21  ;;  %245 = vrot.lane.b32.xlu0 %v2344_v3, %s2284_s21 }
  0x1b   : > { %260 = vrot.lane.b32.xlu1 %v2344_v3, %s2285_s22  ;;  %258 = vrot.lane.b32.xlu0 %v2336_v1, %s2285_s22 }
  0x1f   : > { %264 = vrot.lane.b32.xlu1 %v2342_v2, %s2285_s22  ;;  %262 = vrot.lane.b32.xlu0 %v2334_v0, %s2285_s22 }
  0x23   : > { %273 = vrot.lane.b32.xlu1 %v2344_v3, %s2286_s23  ;;  %271 = vrot.lane.b32.xlu0 %v2336_v1, %s2286_s23 }
  0x27   : > { %277 = vrot.lane.b32.xlu1 %v2342_v2, %s2286_s23  ;;  %275 = vrot.lane.b32.xlu0 %v2334_v0, %s2286_s23 }
  0x2b   : > { %286 = vrot.lane.b32.xlu1 %v2344_v3, %s2287_s24  ;;  %284 = vrot.lane.b32.xlu0 %v2336_v1, %s2287_s24 }
  0x2f   : > { %290 = vrot.lane.b32.xlu1 %v2342_v2, %s2287_s24  ;;  %288 = vrot.lane.b32.xlu0 %v2334_v0, %s2287_s24 }
  0x33   : > { %299 = vrot.lane.b32.xlu1 %v2344_v3, %s2288_s25  ;;  %297 = vrot.lane.b32.xlu0 %v2336_v1, %s2288_s25 }
  0x37   : > { %303 = vrot.lane.b32.xlu1 %v2342_v2, %s2288_s25  ;;  %301 = vrot.lane.b32.xlu0 %v2334_v0, %s2288_s25 }
  0x3b   : > { %312 = vrot.lane.b32.xlu1 %v2344_v3, %s2289_s26  ;;  %310 = vrot.lane.b32.xlu0 %v2336_v1, %s2289_s26 }
  0x3f   : > { %316 = vrot.lane.b32.xlu1 %v2342_v2, %s2289_s26  ;;  %314 = vrot.lane.b32.xlu0 %v2334_v0, %s2289_s26 }
  0x43   : > { %325 = vrot.lane.b32.xlu1 %v2344_v3, %s2290_s27  ;;  %323 = vrot.lane.b32.xlu0 %v2336_v1, %s2290_s27 }
  0x47   : > { %329 = vrot.lane.b32.xlu1 %v2342_v2, %s2290_s27  ;;  %327 = vrot.lane.b32.xlu0 %v2334_v0, %s2290_s27 }
  0x4b   : > { %338 = vrot.lane.b32.xlu1 %v2344_v3, %s2292_s28  ;;  %336 = vrot.lane.b32.xlu0 %v2336_v1, %s2292_s28 }
  0x4f   : > { %342 = vrot.lane.b32.xlu1 %v2342_v2, %s2292_s28  ;;  %340 = vrot.lane.b32.xlu0 %v2334_v0, %s2292_s28 }
  0x53   : > { %445 = vperm.xlu0 %2192, %v442_v5   ;;  %v2537_v5 = vld [vmem:[%s3889_s3 + $0x78] sm:$0xff] }
  0x85   : > { %v248_v7 = vpop.permute.xlu1 %247  ;;  %v244_v8 = vpop.permute.xlu0 %243 }
  0x89   : > { %v250_v10 = vpop.permute.xlu1 %249  ;;  %v246_v11 = vpop.permute.xlu0 %245 }
  0x8a   : > { %v256_v12 = vsel %vm253_vm0, %v244_v8, %v246_v11  ;;  %v257_v17 = vsel %vm253_vm0, %v250_v10, %v244_v8  ;;  %v254_v22 = vsel %vm253_vm0, %v248_v7, %v250_v10  ;;  %v255_v25 = vsel %vm253_vm0, %v246_v11, %v248_v7 }
  0x8b   : > { %v386_v20 = vmul.f32 %v2426_v13, %v256_v12  ;;  %v385_v32 = vmul.f32 %v2440_v19, %v257_v17  ;;  %v388_v36 = vmul.f32 %v2449_v23, %v254_v22  ;;  %v387_v39 = vmul.f32 %v2454_v24, %v255_v25 }
  0x8d   : > { %v261_v15 = vpop.permute.xlu1 %260  ;;  %v259_v16 = vpop.permute.xlu0 %258 }
  0x8e   : > { %v269_v18 = vsel %vm266_vm1, %v259_v16, %v261_v15 }
  0x8f   : > { %v390_v21 = vmul.f32 %v2431_v14, %v269_v18 }
  0x91   : > { %v265_v29 = vpop.permute.xlu1 %264  ;;  %v263_v30 = vpop.permute.xlu0 %262  ;;  %v422_v31 = vpack.c.bf16 %v390_v21, %v386_v20 }
  0x92   : > { %v270_v33 = vsel %vm266_vm1, %v265_v29, %v259_v16  ;;  %v268_v34 = vsel %vm266_vm1, %v261_v15, %v263_v30  ;;  %v267_v35 = vsel %vm266_vm1, %v263_v30, %v265_v29 }
  0x93   : > { %465 = vmatprep.subr.bf16.mxu0 %v422_v31  ;;  %v389_v37 = vmul.f32 %v2461_v26, %v270_v33  ;;  %v392_v38 = vmul.f32 %v2466_v27, %v267_v35  ;;  %v391_v40 = vmul.f32 %v2471_v28, %v268_v34  ;;  %v2560_v33 = vld [vmem:[%s3889_s3 + $0x88] sm:$0xff]  ;;  %v2565_v34 = vld [vmem:[%s3889_s3 + $0x98] sm:$0xff]  ;;  %v2570_v35 = vld [vmem:[%s3889_s3 + $0x90] sm:$0xff] }
  0x95   : > { %v274_v41 = vpop.permute.xlu1 %273  ;;  %v272_v42 = vpop.permute.xlu0 %271  ;;  %v421_v43 = vpack.c.bf16 %v389_v37, %v385_v32  ;;  %v424_v44 = vpack.c.bf16 %v392_v38, %v388_v36  ;;  %v423_v45 = vpack.c.bf16 %v391_v40, %v387_v39  ;;  %v2555_v32 = vld [vmem:[%s3889_s3 + $0x80] sm:$0xff]  ;;  %v2582_v38 = vld [vmem:[%s3889_s3 + $0xb8] sm:$0xff]  ;;  %v2587_v39 = vld [vmem:[%s3889_s3 + $0xa8] sm:$0xff] }
  0x96   : > { %v282_v49 = vsel %vm279_vm2, %v272_v42, %v274_v41  ;;  %v2575_v36 = vld [vmem:[%s3889_s3 + $0xa0] sm:$0xff]  ;;  %v2592_v40 = vld [vmem:[%s3889_s3 + $0xb0] sm:$0xff] }
  0x97   : > { %466 = vmatpush1.bf16.msra.mxu0 %v421_v43  ;;  %506 = vmatprep.subr.bf16.mxu1 %v424_v44  ;;  %v394_v56 = vmul.f32 %v2490_v48, %v282_v49  ;;  %v402_v43 = vmul.f32 %v2560_v33, %v2344_v3  ;;  %v404_v44 = vmul.f32 %v2565_v34, %v2342_v2 }
  0x98   : > { %507 = vmatpush1.bf16.msra.mxu1 %v423_v45  ;;  %v401_v45 = vmul.f32 %v2555_v32, %v2336_v1 }
  0x99   : > { %v278_v46 = vpop.permute.xlu1 %277  ;;  %v276_v47 = vpop.permute.xlu0 %275 }
  0x9a   : > { %v283_v54 = vsel %vm279_vm2, %v278_v46, %v272_v42  ;;  %v281_v59 = vsel %vm279_vm2, %v274_v41, %v276_v47  ;;  %v280_v61 = vsel %vm279_vm2, %v276_v47, %v278_v46  ;;  %v403_v46 = vmul.f32 %v2570_v35, %v2334_v0 }
  0x9b   : > { %v393_v6 = vmul.f32 %v2502_v53, %v283_v54  ;;  %v395_v11 = vmul.f32 %v2512_v57, %v281_v59  ;;  %v396_v17 = vmul.f32 %v2517_v58, %v280_v61 }
  0x9d   : > { %v287_v51 = vpop.permute.xlu1 %286  ;;  %v285_v52 = vpop.permute.xlu0 %284 }
  0x9e   : > { %v295_v55 = vsel %vm292_vm3, %v285_v52, %v287_v51 }
  0x9f   : > { %v398_v60 = vmul.f32 %v2497_v50, %v295_v55 }
  0xa1   : > { %v291_v7 = vpop.permute.xlu1 %290  ;;  %v289_v8 = vpop.permute.xlu0 %288  ;;  %v426_v10 = vpack.c.bf16 %v398_v60, %v394_v56 }
  0xa2   : > { %v296_v12 = vsel %vm292_vm3, %v291_v7, %v285_v52  ;;  %v293_v15 = vsel %vm292_vm3, %v289_v8, %v291_v7  ;;  %v294_v16 = vsel %vm292_vm3, %v287_v51, %v289_v8 }
  0xa3   : > { %v397_v18 = vmul.f32 %v2527_v62, %v296_v12  ;;  %v399_v20 = vmul.f32 %v2532_v63, %v294_v16  ;;  %v400_v21 = vmul.f32 %v2537_v5, %v293_v15  ;;  %467 = vmatprep.subr.bf16.mxu0 %v426_v10  ;;  %v2617_v10 = vld [vmem:[%s3889_s3 + $0xd8] sm:$0xff]  ;;  %v2624_v12 = vld [vmem:[%s3889_s3 + $0xc8] sm:$0xff]  ;;  %v2631_v16 = vld [vmem:[%s3889_s3 + $0xd0] sm:$0xff] }
  0xa5   : > { %v300_v22 = vpop.permute.xlu1 %299  ;;  %v298_v25 = vpop.permute.xlu0 %297  ;;  %v425_v29 = vpack.c.bf16 %v397_v18, %v393_v6  ;;  %v428_v30 = vpack.c.bf16 %v400_v21, %v396_v17  ;;  %v427_v31 = vpack.c.bf16 %v399_v20, %v395_v11  ;;  %v2636_v17 = vld [vmem:[%s3889_s3 + $0xe0] sm:$0xff]  ;;  %v2645_v21 = vld [vmem:[%s3889_s3 + $0xf8] sm:$0xff] }
  0xa6   : > { %v308_v37 = vsel %vm305_vm4, %v298_v25, %v300_v22 }
  0xa7   : > { %468 = vmatpush1.bf16.msra.mxu0 %v425_v29  ;;  %508 = vmatprep.subr.bf16.mxu1 %v428_v30  ;;  %v405_v47 = vmul.f32 %v2575_v36, %v308_v37  ;;  %v2660_v29 = vld [vmem:[%s3889_s3 + $0xc0] sm:$0xff] }
  0xa8   : > { %509 = vmatpush1.bf16.msra.mxu1 %v427_v31 }
  0xa9   : > { %v304_v41 = vpop.permute.xlu1 %303  ;;  %v302_v42 = vpop.permute.xlu0 %301  ;;  %v429_v60 = vpack.c.bf16 %v405_v47, %v401_v45 }
  0xaa   : > { %v309_v49 = vsel %vm305_vm4, %v304_v41, %v298_v25  ;;  %v306_v51 = vsel %vm305_vm4, %v302_v42, %v304_v41  ;;  %v307_v3 = vsel %vm305_vm4, %v300_v22, %v302_v42  ;;  %v2650_v22 = vld [vmem:[%s3889_s3 + $0xe8] sm:$0xff]  ;;  %v2655_v25 = vld [vmem:[%s3889_s3 + $0xf0] sm:$0xff] }
  0xab   : > { %v408_v52 = vmul.f32 %v2582_v38, %v309_v49  ;;  %v406_v2 = vmul.f32 %v2587_v39, %v307_v3  ;;  %v407_v1 = vmul.f32 %v2592_v40, %v306_v51 }
  0xad   : > { %v313_v54 = vpop.permute.xlu1 %312  ;;  %v311_v55 = vpop.permute.xlu0 %310  ;;  %v430_v0 = vpack.c.bf16 %v406_v2, %v402_v43  ;;  %v432_v56 = vpack.c.bf16 %v408_v52, %v404_v44  ;;  %v431_v59 = vpack.c.bf16 %v407_v1, %v403_v46  ;;  %v2682_v2 = vld [vmem:[%s3889_s3 + $0x100] sm:$0xff] }
  0xae   : > { %v321_v30 = vsel %vm318_vm6, %v311_v55, %v313_v54 }
  0xaf   : > { %469 = vmatprep.subr.bf16.mxu0 %v430_v0  ;;  %510 = vmatprep.subr.bf16.mxu1 %v432_v56  ;;  %v409_v52 = vmul.f32 %v2660_v29, %v321_v30 }
  0xb0   : > { %470 = vmatpush1.bf16.msra.mxu0 %v429_v60  ;;  %511 = vmatpush1.bf16.msra.mxu1 %v431_v59 }
  0xb1   : > { %v317_v61 = vpop.permute.xlu1 %316  ;;  %v315_v6 = vpop.permute.xlu0 %314 }
  0xb2   : > { %v322_v11 = vsel %vm318_vm6, %v317_v61, %v311_v55  ;;  %v320_v15 = vsel %vm318_vm6, %v313_v54, %v315_v6  ;;  %v319_v20 = vsel %vm318_vm6, %v315_v6, %v317_v61  ;;  %v2690_v6 = vld [vmem:[%s3889_s3 + $0x118] sm:$0xff] }
  0xb3   : > { %v412_v31 = vmul.f32 %v2617_v10, %v322_v11  ;;  %v410_v37 = vmul.f32 %v2624_v12, %v320_v15  ;;  %v411_v47 = vmul.f32 %v2631_v16, %v319_v20 }
  0xb5   : > { %v326_v7 = vpop.permute.xlu1 %325  ;;  %v324_v8 = vpop.permute.xlu0 %323 }
  0xb6   : > { %v334_v18 = vsel %vm331_vm5, %v324_v8, %v326_v7 }
  0xb7   : > { %v413_v43 = vmul.f32 %v2636_v17, %v334_v18 }
  0xb9   : > { %v330_v41 = vpop.permute.xlu1 %329  ;;  %v328_v42 = vpop.permute.xlu0 %327  ;;  %v433_v60 = vpack.c.bf16 %v413_v43, %v409_v52 }
  0xba   : > { %v335_v44 = vsel %vm331_vm5, %v330_v41, %v324_v8  ;;  %v332_v45 = vsel %vm331_vm5, %v328_v42, %v330_v41  ;;  %v333_v46 = vsel %vm331_vm5, %v326_v7, %v328_v42  ;;  %v2695_v7 = vld [vmem:[%s3889_s3 + $0x108] sm:$0xff]  ;;  %v2700_v8 = vld [vmem:[%s3889_s3 + $0x110] sm:$0xff] }
  0xbb   : > { %v416_v49 = vmul.f32 %v2645_v21, %v335_v44  ;;  %v414_v51 = vmul.f32 %v2650_v22, %v333_v46  ;;  %v415_v3 = vmul.f32 %v2655_v25, %v332_v45 }
  0xbd   : > { %v339_v1 = vpop.permute.xlu1 %338  ;;  %v337_v54 = vpop.permute.xlu0 %336  ;;  %v434_v55 = vpack.c.bf16 %v414_v51, %v410_v37  ;;  %v436_v0 = vpack.c.bf16 %v416_v49, %v412_v31  ;;  %v435_v56 = vpack.c.bf16 %v415_v3, %v411_v47  ;;  %v441_v49 = vld [vmem:[%s2715_s12] sm:$0xf] }
  0xbe   : > { %v347_v59 = vsel %vm344_vm7, %v337_v54, %v339_v1 }
  0xbf   : > { %471 = vmatprep.subr.bf16.mxu0 %v434_v55  ;;  %512 = vmatprep.subr.bf16.mxu1 %v436_v0  ;;  %v417_v61 = vmul.f32 %v2682_v2, %v347_v59 }
  0xc0   : > { %472 = vmatpush1.bf16.msra.mxu0 %v433_v60  ;;  %513 = vmatpush1.bf16.msra.mxu1 %v435_v56 }
  0xc1   : > { %v343_v11 = vpop.permute.xlu1 %342  ;;  %v341_v15 = vpop.permute.xlu0 %340  ;;  %v437_v41 = vpack.c.bf16 %v417_v61, %v417_v61 }
  0xc2   : > { %v348_v18 = vsel %vm344_vm7, %v343_v11, %v337_v54  ;;  %v345_v20 = vsel %vm344_vm7, %v341_v15, %v343_v11  ;;  %v346_v30 = vsel %vm344_vm7, %v339_v1, %v341_v15 }
  0xc3   : > { %v420_v31 = vmul.f32 %v2690_v6, %v348_v18  ;;  %v418_v37 = vmul.f32 %v2695_v7, %v346_v30  ;;  %v419_v42 = vmul.f32 %v2700_v8, %v345_v20  ;;  %v454_v46 = vsel %vm452_vm8, %v437_v41, 0 }
  0xc5   : > { %v440_v43 = vpack.c.bf16 %v420_v31, %v420_v31  ;;  %v438_v44 = vpack.c.bf16 %v418_v37, %v418_v37  ;;  %v439_v45 = vpack.c.bf16 %v419_v42, %v419_v42 }
  0xc7   : > { %2135 = vmatprep.subr.msk.bf16.mxu0 %vm452_vm8, %v438_v44  ;;  %2137 = vmatprep.subr.msk.bf16.mxu1 %vm452_vm8, %v440_v43  ;;  %v460_v47 = vsel %vm452_vm8, %v439_v45, 0 }
  0xc8   : > { %474 = vmatpush1.bf16.msra.mxu0 %v454_v46  ;;  %515 = vmatpush1.bf16.msra.mxu1 %v460_v47 }
  0xcb   : > { %2136 = vmatmul.mubr.msk.bf16.vlgmr.msra.gmra.mrb[0].mxu0 %vm448_vm9, %v441_v49  ;;  %2138 = vmatmul.mubr.msk.bf16.vlgmr.msra.gmra.mrb[0].mxu1 %vm448_vm9, %v441_v49 }
  0xcc   : > { %795 = vmatprep.mubr.bf16.mxu0 %v3891_v4  ;;  %836 = vmatprep.mubr.bf16.mxu1 %v3891_v4 }
  0xd2   : > { %v446_v51 = vpop.permute.xlu0 %445 }
 0x19e   : > { %v540_v3 = vpop.f32.mrb[0].mxu1  ;;  %v499_v52 = vpop.f32.mrb[0].mxu0 }
 0x19f   : > { %v500_v1 = vadd.f32 %v499_v52, %v446_v51  ;;  %v501_v54 = vpop.f32.mrb[1].mxu0  ;;  %v542_v55 = vpop.f32.mrb[1].mxu1  ;;  %v541_v0 = vadd.f32 %v540_v3, %v446_v51 }
 0x1a0   : > { %v502_v56 = vadd.f32 %v501_v54, %v446_v51  ;;  %v543_v59 = vadd.f32 %v542_v55, %v446_v51  ;;  %v503_v60 = vpop.f32.mrb[2].mxu0  ;;  %v544_v61 = vpop.f32.mrb[2].mxu1 }
 0x1a1   : > { %v504_v11 = vpop.f32.mrb[3].mxu0  ;;  %v545_v15 = vpop.f32.mrb[3].mxu1  ;;  %v568_v18 = vmul.f32 %v541_v0, %v541_v0  ;;  %v550_v20 = vmul.f32 %v500_v1, %v500_v1 }
 0x1a2   : > { %v565_v30 = vadd.f32 %v543_v59, %v541_v0  ;;  %v547_v31 = vadd.f32 %v502_v56, %v500_v1  ;;  %v569_v37 = vmul.f32 %v543_v59, %v543_v59  ;;  %v551_v41 = vmul.f32 %v502_v56, %v502_v56 }
 0x1a4   : > { %566 = vadd.xlane.f32.xlu0 %v565_v30  ;;  %548 = vadd.xlane.f32.xlu1 %v547_v31  ;;  %v570_v42 = vadd.f32 %v569_v37, %v568_v18  ;;  %v552_v43 = vadd.f32 %v551_v41, %v550_v20 }
 0x1a8   : > { %571 = vadd.xlane.f32.xlu0 %v570_v42  ;;  %553 = vadd.xlane.f32.xlu1 %v552_v43 }
 0x231   : > { %v567_v44 = vpop.xlane.xlu0 %566  ;;  %v549_v45 = vpop.xlane.xlu1 %548 }
 0x232   : > { %v573_v46 = vmul.f32 0.00390625, %v567_v44  ;;  %v555_v47 = vmul.f32 0.00390625, %v549_v45 }
 0x234   : > { %v575_v3 = vmul.f32 %v573_v46, %v573_v46  ;;  %v557_v54 = vmul.f32 %v555_v47, %v555_v47  ;;  %v559_v20 = vsub.f32 %v500_v1, %v555_v47  ;;  %v560_v30 = vsub.f32 %v502_v56, %v555_v47 }
 0x235   : > { %v572_v49 = vpop.xlane.xlu0 %571  ;;  %v554_v51 = vpop.xlane.xlu1 %553  ;;  %v577_v37 = vsub.f32 %v541_v0, %v573_v46  ;;  %v2140_v0 = vld [vmem:[%s2410_s6 + $0x8] sm:$0xff] }
 0x236   : > { %v574_v52 = vmul.f32 0.00390625, %v572_v49  ;;  %v556_v55 = vmul.f32 0.00390625, %v554_v51  ;;  %v578_v49 = vsub.f32 %v543_v59, %v573_v46 }
 0x238   : > { %v576_v60 = vsub.f32 %v574_v52, %v575_v3  ;;  %v558_v61 = vsub.f32 %v556_v55, %v557_v54 }
 0x23a   : > { %v579_v11 = vadd.f32 1e-05, %v576_v60  ;;  %v561_v15 = vadd.f32 1e-05, %v558_v61 }
 0x23c   : > { %2194 = vrsqrt.f32 %v579_v11 }
 0x23d   : > { %2196 = vrsqrt.f32 %v561_v15 }
 0x246   : > { %v2195_v18 = vpop.eup %2194 }
 0x247   : > { %v2197_v31 = vpop.eup %2196  ;;  %v581_v43 = vmul.f32 %v2195_v18, %v577_v37  ;;  %v582_v51 = vmul.f32 %v2195_v18, %v578_v49 }
 0x248   : > { %v563_v41 = vmul.f32 %v2197_v31, %v559_v20  ;;  %v564_v42 = vmul.f32 %v2197_v31, %v560_v30 }
 0x249   : > { %v2734_v3 = vmax.f32 %v581_v43, 0.0  ;;  %v2740_v1 = vmax.f32 %v582_v51, 0.0 }
 0x24a   : > { %v2726_v44 = vmax.f32 %v563_v41, 0.0  ;;  %v2728_v45 = vmax.f32 %v564_v42, 0.0 }
 0x24c   : > { %589 = vrot.lane.b32.xlu0 %v2728_v45, %s2284_s21  ;;  %587 = vrot.lane.b32.xlu1 %v2726_v44, %s2284_s21 }
 0x250   : > { %599 = vrot.lane.b32.xlu0 %v2726_v44, %s2285_s22  ;;  %591 = vrot.lane.b32.xlu1 %v2734_v3, %s2284_s21 }
 0x254   : > { %603 = vrot.lane.b32.xlu0 %v2734_v3, %s2285_s22  ;;  %593 = vrot.lane.b32.xlu1 %v2740_v1, %s2284_s21 }
 0x258   : > { %611 = vrot.lane.b32.xlu0 %v2726_v44, %s2286_s23  ;;  %601 = vrot.lane.b32.xlu1 %v2728_v45, %s2285_s22 }
 0x25c   : > { %615 = vrot.lane.b32.xlu0 %v2734_v3, %s2286_s23  ;;  %605 = vrot.lane.b32.xlu1 %v2740_v1, %s2285_s22 }
 0x260   : > { %623 = vrot.lane.b32.xlu0 %v2726_v44, %s2287_s24  ;;  %613 = vrot.lane.b32.xlu1 %v2728_v45, %s2286_s23 }
 0x264   : > { %627 = vrot.lane.b32.xlu0 %v2734_v3, %s2287_s24  ;;  %617 = vrot.lane.b32.xlu1 %v2740_v1, %s2286_s23 }
 0x268   : > { %635 = vrot.lane.b32.xlu0 %v2726_v44, %s2288_s25  ;;  %625 = vrot.lane.b32.xlu1 %v2728_v45, %s2287_s24 }
 0x26c   : > { %639 = vrot.lane.b32.xlu0 %v2734_v3, %s2288_s25  ;;  %629 = vrot.lane.b32.xlu1 %v2740_v1, %s2287_s24 }
 0x270   : > { %647 = vrot.lane.b32.xlu0 %v2726_v44, %s2289_s26  ;;  %637 = vrot.lane.b32.xlu1 %v2728_v45, %s2288_s25 }
 0x274   : > { %651 = vrot.lane.b32.xlu0 %v2734_v3, %s2289_s26  ;;  %641 = vrot.lane.b32.xlu1 %v2740_v1, %s2288_s25 }
 0x278   : > { %659 = vrot.lane.b32.xlu0 %v2726_v44, %s2290_s27  ;;  %649 = vrot.lane.b32.xlu1 %v2728_v45, %s2289_s26 }
 0x27c   : > { %663 = vrot.lane.b32.xlu0 %v2734_v3, %s2290_s27  ;;  %653 = vrot.lane.b32.xlu1 %v2740_v1, %s2289_s26 }
 0x280   : > { %671 = vrot.lane.b32.xlu0 %v2726_v44, %s2292_s28  ;;  %661 = vrot.lane.b32.xlu1 %v2728_v45, %s2290_s27 }
 0x284   : > { %675 = vrot.lane.b32.xlu0 %v2734_v3, %s2292_s28  ;;  %665 = vrot.lane.b32.xlu1 %v2740_v1, %s2290_s27 }
 0x288   : > { %745 = vperm.xlu0 %2192, %v2140_v0   ;;  %673 = vrot.lane.b32.xlu1 %v2728_v45, %s2292_s28 }
 0x28c   : > { %677 = vrot.lane.b32.xlu1 %v2740_v1, %s2292_s28 }
 0x2be   : > { %v590_v56 = vpop.permute.xlu0 %589  ;;  %v588_v59 = vpop.permute.xlu1 %587 }
 0x2bf   : > { %v597_v55 = vsel %vm253_vm0, %v588_v59, %v590_v56 }
 0x2c0   : > { %v684_v15 = vmul.f32 %v597_v55, %v2426_v13 }
 0x2c2   : > { %v600_v46 = vpop.permute.xlu0 %599  ;;  %v592_v47 = vpop.permute.xlu1 %591 }
 0x2c3   : > { %v596_v37 = vsel %vm253_vm0, %v590_v56, %v592_v47 }
 0x2c4   : > { %v685_v56 = vmul.f32 %v596_v37, %v2454_v24 }
 0x2c6   : > { %v604_v52 = vpop.permute.xlu0 %603  ;;  %v594_v54 = vpop.permute.xlu1 %593 }
 0x2c7   : > { %v595_v30 = vsel %vm253_vm0, %v592_v47, %v594_v54  ;;  %v598_v31 = vsel %vm253_vm0, %v594_v54, %v588_v59 }
 0x2c8   : > { %v683_v51 = vmul.f32 %v598_v31, %v2440_v19  ;;  %v686_v0 = vmul.f32 %v595_v30, %v2449_v23 }
 0x2ca   : > { %v612_v60 = vpop.permute.xlu0 %611  ;;  %v602_v61 = vpop.permute.xlu1 %601 }
 0x2cb   : > { %v609_v11 = vsel %vm266_vm1, %v600_v46, %v602_v61  ;;  %v608_v18 = vsel %vm266_vm1, %v602_v61, %v604_v52 }
 0x2cc   : > { %v688_v20 = vmul.f32 %v609_v11, %v2431_v14  ;;  %v689_v49 = vmul.f32 %v608_v18, %v2471_v28 }
 0x2ce   : > { %v616_v41 = vpop.permute.xlu0 %615  ;;  %v606_v42 = vpop.permute.xlu1 %605  ;;  %v720_v43 = vpack.c.bf16 %v688_v20, %v684_v15  ;;  %v721_v11 = vpack.c.bf16 %v689_v49, %v685_v56 }
 0x2cf   : > { %v607_v13 = vsel %vm266_vm1, %v604_v52, %v606_v42  ;;  %v610_v14 = vsel %vm266_vm1, %v606_v42, %v600_v46 }
 0x2d0   : > { %v687_v59 = vmul.f32 %v610_v14, %v2461_v26  ;;  %v690_v54 = vmul.f32 %v607_v13, %v2466_v27  ;;  %763 = vmatprep.subr.bf16.mxu0 %v720_v43 }
 0x2d2   : > { %v719_v47 = vpack.c.bf16 %v687_v59, %v683_v51  ;;  %v624_v55 = vpop.permute.xlu0 %623  ;;  %v614_v28 = vpop.permute.xlu1 %613  ;;  %v722_v61 = vpack.c.bf16 %v690_v54, %v686_v0 }
 0x2d3   : > { %v621_v19 = vsel %vm279_vm2, %v612_v60, %v614_v28  ;;  %v620_v31 = vsel %vm279_vm2, %v614_v28, %v616_v41 }
 0x2d4   : > { %764 = vmatpush1.bf16.msra.mxu0 %v719_v47  ;;  %804 = vmatprep.subr.bf16.mxu1 %v722_v61  ;;  %v692_v24 = vmul.f32 %v621_v19, %v2490_v48 }
 0x2d5   : > { %805 = vmatpush1.bf16.msra.mxu1 %v721_v11 }
 0x2d6   : > { %v628_v46 = vpop.permute.xlu0 %627  ;;  %v618_v52 = vpop.permute.xlu1 %617 }
 0x2d7   : > { %v619_v20 = vsel %vm279_vm2, %v616_v41, %v618_v52  ;;  %v622_v30 = vsel %vm279_vm2, %v618_v52, %v612_v60  ;;  %v693_v41 = vmul.f32 %v620_v31, %v2512_v57  ;;  %v700_v57 = vmul.f32 %v2728_v45, %v2560_v33 }
 0x2d8   : > { %v691_v13 = vmul.f32 %v622_v30, %v2502_v53  ;;  %v694_v14 = vmul.f32 %v619_v20, %v2517_v58  ;;  %v699_v58 = vmul.f32 %v2726_v44, %v2555_v32  ;;  %v701_v52 = vmul.f32 %v2734_v3, %v2570_v35 }
 0x2d9   : > { %v702_v33 = vmul.f32 %v2740_v1, %v2565_v34 }
 0x2da   : > { %v636_v23 = vpop.permute.xlu0 %635  ;;  %v626_v26 = vpop.permute.xlu1 %625 }
 0x2db   : > { %v633_v27 = vsel %vm292_vm3, %v624_v55, %v626_v26  ;;  %v632_v15 = vsel %vm292_vm3, %v626_v26, %v628_v46 }
 0x2dc   : > { %v696_v18 = vmul.f32 %v633_v27, %v2497_v50  ;;  %v697_v49 = vmul.f32 %v632_v15, %v2532_v63 }
 0x2de   : > { %v640_v37 = vpop.permute.xlu0 %639  ;;  %v630_v42 = vpop.permute.xlu1 %629  ;;  %v724_v43 = vpack.c.bf16 %v696_v18, %v692_v24  ;;  %v725_v56 = vpack.c.bf16 %v697_v49, %v693_v41 }
 0x2df   : > { %v631_v48 = vsel %vm292_vm3, %v628_v46, %v630_v42  ;;  %v634_v50 = vsel %vm292_vm3, %v630_v42, %v624_v55 }
 0x2e0   : > { %v695_v60 = vmul.f32 %v634_v50, %v2527_v62  ;;  %v698_v51 = vmul.f32 %v631_v48, %v2537_v5  ;;  %765 = vmatprep.subr.bf16.mxu0 %v724_v43 }
 0x2e2   : > { %v723_v0 = vpack.c.bf16 %v695_v60, %v691_v13  ;;  %v648_v59 = vpop.permute.xlu0 %647  ;;  %v638_v63 = vpop.permute.xlu1 %637  ;;  %v726_v54 = vpack.c.bf16 %v698_v51, %v694_v14 }
 0x2e3   : > { %v644_v47 = vsel %vm305_vm4, %v638_v63, %v640_v37  ;;  %v645_v53 = vsel %vm305_vm4, %v636_v23, %v638_v63 }
 0x2e4   : > { %v703_v62 = vmul.f32 %v645_v53, %v2575_v36  ;;  %v704_v5 = vmul.f32 %v644_v47, %v2587_v39  ;;  %766 = vmatpush1.bf16.msra.mxu0 %v723_v0  ;;  %806 = vmatprep.subr.bf16.mxu1 %v726_v54 }
 0x2e5   : > { %807 = vmatpush1.bf16.msra.mxu1 %v725_v56 }
 0x2e6   : > { %v727_v55 = vpack.c.bf16 %v703_v62, %v699_v58  ;;  %v652_v28 = vpop.permute.xlu0 %651  ;;  %v642_v61 = vpop.permute.xlu1 %641  ;;  %v728_v11 = vpack.c.bf16 %v704_v5, %v700_v57 }
 0x2e7   : > { %v643_v46 = vsel %vm305_vm4, %v640_v37, %v642_v61  ;;  %v646_v32 = vsel %vm305_vm4, %v642_v61, %v636_v23 }
 0x2e8   : > { %v705_v19 = vmul.f32 %v643_v46, %v2592_v40  ;;  %v706_v26 = vmul.f32 %v646_v32, %v2582_v38  ;;  %767 = vmatprep.subr.bf16.mxu0 %v728_v11 }
 0x2e9   : > { %768 = vmatpush1.bf16.msra.mxu0 %v727_v55 }
 0x2ea   : > { %v729_v27 = vpack.c.bf16 %v705_v19, %v701_v52  ;;  %v660_v24 = vpop.permute.xlu0 %659  ;;  %v650_v15 = vpop.permute.xlu1 %649  ;;  %v730_v18 = vpack.c.bf16 %v706_v26, %v702_v33 }
 0x2eb   : > { %v656_v30 = vsel %vm318_vm6, %v650_v15, %v652_v28  ;;  %v657_v31 = vsel %vm318_vm6, %v648_v59, %v650_v15 }
 0x2ec   : > { %808 = vmatprep.subr.bf16.mxu1 %v730_v18  ;;  %v707_v49 = vmul.f32 %v657_v31, %v2660_v29  ;;  %v708_v48 = vmul.f32 %v656_v30, %v2624_v12  ;;  %v2139_v18 = vld [vmem:[%s2715_s12 + $0x4] sm:$0xf] }
 0x2ed   : > { %809 = vmatpush1.bf16.msra.mxu1 %v729_v27 }
 0x2ee   : > { %v664_v20 = vpop.permute.xlu0 %663  ;;  %v654_v23 = vpop.permute.xlu1 %653 }
 0x2ef   : > { %v655_v60 = vsel %vm318_vm6, %v652_v28, %v654_v23  ;;  %v658_v51 = vsel %vm318_vm6, %v654_v23, %v648_v59 }
 0x2f0   : > { %v709_v47 = vmul.f32 %v655_v60, %v2631_v16  ;;  %v710_v53 = vmul.f32 %v658_v51, %v2617_v10 }
 0x2f2   : > { %v662_v37 = vpop.permute.xlu1 %661  ;;  %v672_v50 = vpop.permute.xlu0 %671 }
 0x2f3   : > { %v668_v42 = vsel %vm331_vm5, %v662_v37, %v664_v20  ;;  %v669_v43 = vsel %vm331_vm5, %v660_v24, %v662_v37 }
 0x2f4   : > { %v711_v13 = vmul.f32 %v669_v43, %v2636_v17  ;;  %v712_v14 = vmul.f32 %v668_v42, %v2650_v22 }
 0x2f6   : > { %v731_v41 = vpack.c.bf16 %v711_v13, %v707_v49  ;;  %v666_v0 = vpop.permute.xlu1 %665  ;;  %v732_v63 = vpack.c.bf16 %v712_v14, %v708_v48  ;;  %v676_v59 = vpop.permute.xlu0 %675 }
 0x2f7   : > { %v667_v54 = vsel %vm331_vm5, %v664_v20, %v666_v0  ;;  %v670_v56 = vsel %vm331_vm5, %v666_v0, %v660_v24 }
 0x2f8   : > { %v713_v58 = vmul.f32 %v667_v54, %v2655_v25  ;;  %v714_v62 = vmul.f32 %v670_v56, %v2645_v21  ;;  %769 = vmatprep.subr.bf16.mxu0 %v732_v63 }
 0x2f9   : > { %770 = vmatpush1.bf16.msra.mxu0 %v731_v41 }
 0x2fa   : > { %v733_v5 = vpack.c.bf16 %v713_v58, %v709_v47  ;;  %v674_v57 = vpop.permute.xlu1 %673  ;;  %v734_v55 = vpack.c.bf16 %v714_v62, %v710_v53 }
 0x2fb   : > { %v680_v28 = vsel %vm344_vm7, %v674_v57, %v676_v59  ;;  %v681_v61 = vsel %vm344_vm7, %v672_v50, %v674_v57 }
 0x2fc   : > { %v715_v11 = vmul.f32 %v681_v61, %v2682_v2  ;;  %v716_v46 = vmul.f32 %v680_v28, %v2695_v7  ;;  %810 = vmatprep.subr.bf16.mxu1 %v734_v55 }
 0x2fd   : > { %811 = vmatpush1.bf16.msra.mxu1 %v733_v5 }
 0x2fe   : > { %v735_v32 = vpack.c.bf16 %v715_v11, %v715_v11  ;;  %v736_v52 = vpack.c.bf16 %v716_v46, %v716_v46  ;;  %v678_v19 = vpop.permute.xlu1 %677 }
 0x2ff   : > { %v679_v26 = vsel %vm344_vm7, %v676_v59, %v678_v19  ;;  %v682_v33 = vsel %vm344_vm7, %v678_v19, %v672_v50 }
 0x300   : > { %v717_v27 = vmul.f32 %v679_v26, %v2700_v8  ;;  %v718_v24 = vmul.f32 %v682_v33, %v2690_v6  ;;  %2141 = vmatprep.subr.msk.bf16.mxu0 %vm452_vm8, %v736_v52  ;;  %v752_v15 = vsel %vm452_vm8, %v735_v32, 0 }
 0x301   : > { %772 = vmatpush1.bf16.msra.mxu0 %v752_v15 }
 0x302   : > { %v737_v20 = vpack.c.bf16 %v717_v27, %v717_v27  ;;  %v738_v23 = vpack.c.bf16 %v718_v24, %v718_v24 }
 0x304   : > { %2142 = vmatmul.mubr.msk.bf16.vlgmr.msra.gmra.mrb[4].mxu0 %vm448_vm9, %v2139_v18  ;;  %2143 = vmatprep.subr.msk.bf16.mxu1 %vm452_vm8, %v738_v23  ;;  %v758_v30 = vsel %vm452_vm8, %v737_v20, 0 }
 0x305   : > { %813 = vmatpush1.bf16.msra.mxu1 %v758_v30  ;;  %1093 = vmatprep.mubr.bf16.mxu0 %v3891_v4 }
 0x307   : > { %v746_v31 = vpop.permute.xlu0 %745 }
 0x308   : > { %2144 = vmatmul.mubr.msk.bf16.vlgmr.msra.gmra.mrb[4].mxu1 %vm448_vm9, %v2139_v18 }
 0x309   : > { %1134 = vmatprep.mubr.bf16.mxu1 %v3891_v4 }
 0x3d7   : > { %v797_v37 = vpop.f32.mrb[4].mxu0 }
 0x3d8   : > { %v798_v42 = vadd.f32 %v797_v37, %v746_v31  ;;  %v799_v43 = vpop.f32.mrb[5].mxu0 }
 0x3d9   : > { %v800_v49 = vadd.f32 %v799_v43, %v746_v31  ;;  %v801_v48 = vpop.f32.mrb[6].mxu0 }
 0x3da   : > { %v802_v50 = vpop.f32.mrb[7].mxu0  ;;  %v848_v53 = vmul.f32 %v798_v42, %v798_v42 }
 0x3db   : > { %v838_v13 = vpop.f32.mrb[4].mxu1  ;;  %v845_v14 = vadd.f32 %v800_v49, %v798_v42  ;;  %v849_v58 = vmul.f32 %v800_v49, %v800_v49 }
 0x3dc   : > { %v839_v60 = vadd.f32 %v838_v13, %v746_v31  ;;  %v840_v51 = vpop.f32.mrb[5].mxu1 }
 0x3dd   : > { %v841_v41 = vadd.f32 %v840_v51, %v746_v31  ;;  %v842_v0 = vpop.f32.mrb[6].mxu1  ;;  %846 = vadd.xlane.f32.xlu1 %v845_v14  ;;  %v850_v59 = vadd.f32 %v849_v58, %v848_v53 }
 0x3de   : > { %v843_v63 = vpop.f32.mrb[7].mxu1  ;;  %v866_v54 = vmul.f32 %v839_v60, %v839_v60 }
 0x3df   : > { %v863_v56 = vadd.f32 %v841_v41, %v839_v60  ;;  %v867_v47 = vmul.f32 %v841_v41, %v841_v41 }
 0x3e1   : > { %864 = vadd.xlane.f32.xlu0 %v863_v56  ;;  %v868_v62 = vadd.f32 %v867_v47, %v866_v54 }
 0x3e3   : > { %869 = vadd.xlane.f32.xlu1 %v868_v62  ;;  %v2994_v62 = vld [vmem:[%s3889_s3 + $0x8] sm:$0xff] }
 0x3e5   : > { %851 = vadd.xlane.f32.xlu0 %v850_v59 }
 0x46a   : > { %v847_v5 = vpop.xlane.xlu1 %846 }
 0x46b   : > { %v853_v55 = vmul.f32 0.00390625, %v847_v5 }
 0x46d   : > { %v855_v26 = vmul.f32 %v853_v55, %v853_v55  ;;  %v857_v18 = vsub.f32 %v798_v42, %v853_v55  ;;  %v858_v20 = vsub.f32 %v800_v49, %v853_v55  ;;  %v2146_v49 = vld [vmem:[%s2410_s6 + $0x10] sm:$0xff] }
 0x46e   : > { %v865_v57 = vpop.xlane.xlu0 %864 }
 0x46f   : > { %v871_v28 = vmul.f32 0.00390625, %v865_v57  ;;  %v3002_v57 = vld [vmem:[%s3889_s3 + $0x28] sm:$0xff] }
 0x470   : > { %v870_v61 = vpop.xlane.xlu1 %869 }
 0x471   : > { %v873_v11 = vmul.f32 %v871_v28, %v871_v28  ;;  %v872_v46 = vmul.f32 0.00390625, %v870_v61  ;;  %v875_v30 = vsub.f32 %v839_v60, %v871_v28  ;;  %v876_v31 = vsub.f32 %v841_v41, %v871_v28  ;;  %v3010_v61 = vld [vmem:[%s3889_s3] sm:$0xff] }
 0x472   : > { %v852_v32 = vpop.xlane.xlu0 %851 }
 0x473   : > { %v874_v52 = vsub.f32 %v872_v46, %v873_v11  ;;  %v854_v19 = vmul.f32 0.00390625, %v852_v32 }
 0x475   : > { %v877_v33 = vadd.f32 1e-05, %v874_v52  ;;  %v856_v27 = vsub.f32 %v854_v19, %v855_v26  ;;  %v3016_v19 = vld [vmem:[%s3889_s3 + $0x10] sm:$0xff] }
 0x477   : > { %v859_v24 = vadd.f32 1e-05, %v856_v27  ;;  %2198 = vrsqrt.f32 %v877_v33 }
 0x479   : > { %2200 = vrsqrt.f32 %v859_v24 }
 0x481   : > { %v2199_v15 = vpop.eup %2198 }
 0x482   : > { %v879_v48 = vmul.f32 %v2199_v15, %v875_v30  ;;  %v880_v50 = vmul.f32 %v2199_v15, %v876_v31  ;;  %v3028_v15 = vld [vmem:[%s3889_s3 + $0x18] sm:$0xff]  ;;  %v3040_v30 = vld [vmem:[%s3889_s3 + $0x30] sm:$0xff] }
 0x483   : > { %v2201_v23 = vpop.eup %2200 }
 0x484   : > { %v861_v37 = vmul.f32 %v2201_v23, %v857_v18  ;;  %v862_v43 = vmul.f32 %v2201_v23, %v858_v20  ;;  %v2920_v51 = vmax.f32 %v879_v48, 0.0  ;;  %v2922_v42 = vmax.f32 %v880_v50, 0.0  ;;  %v3034_v20 = vld [vmem:[%s3889_s3 + $0x20] sm:$0xff] }
 0x486   : > { %v2912_v13 = vmax.f32 %v861_v37, 0.0  ;;  %v2914_v14 = vmax.f32 %v862_v43, 0.0  ;;  %v3046_v37 = vld [vmem:[%s3889_s3 + $0x38] sm:$0xff] }
 0x488   : > { %887 = vrot.lane.b32.xlu1 %v2914_v14, %s2284_s21  ;;  %885 = vrot.lane.b32.xlu0 %v2912_v13, %s2284_s21 }
 0x48c   : > { %891 = vrot.lane.b32.xlu0 %v2922_v42, %s2284_s21  ;;  %889 = vrot.lane.b32.xlu1 %v2920_v51, %s2284_s21 }
 0x490   : > { %899 = vrot.lane.b32.xlu0 %v2914_v14, %s2285_s22  ;;  %897 = vrot.lane.b32.xlu1 %v2912_v13, %s2285_s22 }
 0x494   : > { %903 = vrot.lane.b32.xlu0 %v2922_v42, %s2285_s22  ;;  %901 = vrot.lane.b32.xlu1 %v2920_v51, %s2285_s22 }
 0x498   : > { %911 = vrot.lane.b32.xlu0 %v2914_v14, %s2286_s23  ;;  %909 = vrot.lane.b32.xlu1 %v2912_v13, %s2286_s23 }
 0x49c   : > { %915 = vrot.lane.b32.xlu0 %v2922_v42, %s2286_s23  ;;  %913 = vrot.lane.b32.xlu1 %v2920_v51, %s2286_s23 }
 0x4a0   : > { %923 = vrot.lane.b32.xlu0 %v2914_v14, %s2287_s24  ;;  %921 = vrot.lane.b32.xlu1 %v2912_v13, %s2287_s24 }
 0x4a4   : > { %927 = vrot.lane.b32.xlu0 %v2922_v42, %s2287_s24  ;;  %925 = vrot.lane.b32.xlu1 %v2920_v51, %s2287_s24 }
 0x4a8   : > { %935 = vrot.lane.b32.xlu0 %v2914_v14, %s2288_s25  ;;  %933 = vrot.lane.b32.xlu1 %v2912_v13, %s2288_s25 }
 0x4ac   : > { %939 = vrot.lane.b32.xlu0 %v2922_v42, %s2288_s25  ;;  %937 = vrot.lane.b32.xlu1 %v2920_v51, %s2288_s25 }
 0x4b0   : > { %947 = vrot.lane.b32.xlu0 %v2914_v14, %s2289_s26  ;;  %945 = vrot.lane.b32.xlu1 %v2912_v13, %s2289_s26 }
 0x4b4   : > { %951 = vrot.lane.b32.xlu0 %v2922_v42, %s2289_s26  ;;  %949 = vrot.lane.b32.xlu1 %v2920_v51, %s2289_s26 }
 0x4b8   : > { %959 = vrot.lane.b32.xlu0 %v2914_v14, %s2290_s27  ;;  %957 = vrot.lane.b32.xlu1 %v2912_v13, %s2290_s27 }
 0x4bc   : > { %963 = vrot.lane.b32.xlu0 %v2922_v42, %s2290_s27  ;;  %961 = vrot.lane.b32.xlu1 %v2920_v51, %s2290_s27 }
 0x4c0   : > { %971 = vrot.lane.b32.xlu0 %v2914_v14, %s2292_s28  ;;  %969 = vrot.lane.b32.xlu1 %v2912_v13, %s2292_s28 }
 0x4c4   : > { %975 = vrot.lane.b32.xlu0 %v2922_v42, %s2292_s28  ;;  %973 = vrot.lane.b32.xlu1 %v2920_v51, %s2292_s28 }
 0x4c8   : > { %1043 = vperm.xlu1 %2193, %v2146_v49  }
 0x4fa   : > { %v886_v60 = vpop.permute.xlu0 %885  ;;  %v888_v41 = vpop.permute.xlu1 %887 }
 0x4fb   : > { %v895_v54 = vsel %vm253_vm0, %v886_v60, %v888_v41 }
 0x4fc   : > { %v982_v59 = vmul.f32 %v2994_v62, %v895_v54 }
 0x4fe   : > { %v892_v0 = vpop.permute.xlu0 %891  ;;  %v890_v63 = vpop.permute.xlu1 %889 }
 0x4ff   : > { %v896_v53 = vsel %vm253_vm0, %v892_v0, %v886_v60  ;;  %v894_v5 = vsel %vm253_vm0, %v888_v41, %v890_v63  ;;  %v893_v28 = vsel %vm253_vm0, %v890_v63, %v892_v0 }
 0x500   : > { %v981_v11 = vmul.f32 %v3010_v61, %v896_v53  ;;  %v983_v26 = vmul.f32 %v3016_v19, %v894_v5  ;;  %v984_v18 = vmul.f32 %v3028_v15, %v893_v28  ;;  %v3066_v28 = vld [vmem:[%s3889_s3 + $0x68] sm:$0xff] }
 0x502   : > { %v900_v56 = vpop.permute.xlu0 %899  ;;  %v898_v47 = vpop.permute.xlu1 %897 }
 0x503   : > { %v907_v58 = vsel %vm266_vm1, %v898_v47, %v900_v56 }
 0x504   : > { %v986_v55 = vmul.f32 %v3002_v57, %v907_v58 }
 0x506   : > { %v904_v46 = vpop.permute.xlu0 %903  ;;  %v902_v32 = vpop.permute.xlu1 %901  ;;  %v1018_v52 = vpack.c.bf16 %v986_v55, %v982_v59  ;;  %v3058_v59 = vld [vmem:[%s3889_s3 + $0x48] sm:$0xff] }
 0x507   : > { %v908_v33 = vsel %vm266_vm1, %v904_v46, %v898_v47  ;;  %v905_v27 = vsel %vm266_vm1, %v902_v32, %v904_v46  ;;  %v906_v24 = vsel %vm266_vm1, %v900_v56, %v902_v32  ;;  %v3074_v32 = vld [vmem:[%s3889_s3 + $0x40] sm:$0xff] }
 0x508   : > { %v985_v23 = vmul.f32 %v3034_v20, %v908_v33  ;;  %v987_v31 = vmul.f32 %v3040_v30, %v906_v24  ;;  %v988_v43 = vmul.f32 %v3046_v37, %v905_v27  ;;  %1061 = vmatprep.subr.bf16.mxu0 %v1018_v52  ;;  %v3080_v24 = vld [vmem:[%s3889_s3 + $0x50] sm:$0xff] }
 0x50a   : > { %v1017_v48 = vpack.c.bf16 %v985_v23, %v981_v11  ;;  %v1019_v50 = vpack.c.bf16 %v987_v31, %v983_v26  ;;  %v912_v49 = vpop.permute.xlu0 %911  ;;  %v910_v60 = vpop.permute.xlu1 %909  ;;  %v1020_v41 = vpack.c.bf16 %v988_v43, %v984_v18 }
 0x50b   : > { %v919_v54 = vsel %vm279_vm2, %v910_v60, %v912_v49 }
 0x50c   : > { %1062 = vmatpush1.bf16.msra.mxu0 %v1017_v48  ;;  %1102 = vmatprep.subr.bf16.mxu1 %v1020_v41  ;;  %v990_v5 = vmul.f32 %v3058_v59, %v919_v54  ;;  %v3092_v48 = vld [vmem:[%s3889_s3 + $0x58] sm:$0xff]  ;;  %v3104_v41 = vld [vmem:[%s3889_s3 + $0x70] sm:$0xff] }
 0x50d   : > { %1103 = vmatpush1.bf16.msra.mxu1 %v1019_v50 }
 0x50e   : > { %v916_v0 = vpop.permute.xlu0 %915  ;;  %v914_v63 = vpop.permute.xlu1 %913 }
 0x50f   : > { %v920_v53 = vsel %vm279_vm2, %v916_v0, %v910_v60  ;;  %v918_v55 = vsel %vm279_vm2, %v912_v49, %v914_v63  ;;  %v917_v46 = vsel %vm279_vm2, %v914_v63, %v916_v0  ;;  %v3098_v49 = vld [vmem:[%s3889_s3 + $0x60] sm:$0xff]  ;;  %v3110_v63 = vld [vmem:[%s3889_s3 + $0x78] sm:$0xff] }
 0x510   : > { %v989_v52 = vmul.f32 %v3074_v32, %v920_v53  ;;  %v991_v18 = vmul.f32 %v3080_v24, %v918_v55  ;;  %v992_v50 = vmul.f32 %v3092_v48, %v917_v46  ;;  %v999_v46 = vmul.f32 %v2920_v51, %v2570_v35  ;;  %v3139_v51 = vld [vmem:[%s3889_s3 + $0x80] sm:$0xff] }
 0x512   : > { %v924_v56 = vpop.permute.xlu0 %923  ;;  %v922_v47 = vpop.permute.xlu1 %921 }
 0x513   : > { %v931_v58 = vsel %vm292_vm3, %v922_v47, %v924_v56 }
 0x514   : > { %v994_v11 = vmul.f32 %v3066_v28, %v931_v58 }
 0x516   : > { %v928_v26 = vpop.permute.xlu0 %927  ;;  %v926_v33 = vpop.permute.xlu1 %925  ;;  %v1022_v27 = vpack.c.bf16 %v994_v11, %v990_v5 }
 0x517   : > { %v932_v23 = vsel %vm292_vm3, %v928_v26, %v922_v47  ;;  %v929_v31 = vsel %vm292_vm3, %v926_v33, %v928_v26  ;;  %v930_v43 = vsel %vm292_vm3, %v924_v56, %v926_v33  ;;  %v1000_v33 = vmul.f32 %v2922_v42, %v2565_v34  ;;  %v3132_v34 = vld [vmem:[%s3889_s3 + $0x88] sm:$0xff] }
 0x518   : > { %v993_v60 = vmul.f32 %v3098_v49, %v932_v23  ;;  %v995_v0 = vmul.f32 %v3104_v41, %v930_v43  ;;  %v996_v54 = vmul.f32 %v3110_v63, %v929_v31  ;;  %1063 = vmatprep.subr.bf16.mxu0 %v1022_v27 }
 0x51a   : > { %v1021_v56 = vpack.c.bf16 %v993_v60, %v989_v52  ;;  %v1023_v47 = vpack.c.bf16 %v995_v0, %v991_v18  ;;  %v936_v53 = vpop.permute.xlu0 %935  ;;  %v934_v58 = vpop.permute.xlu1 %933  ;;  %v1024_v5 = vpack.c.bf16 %v996_v54, %v992_v50 }
 0x51b   : > { %v943_v55 = vsel %vm305_vm4, %v934_v58, %v936_v53 }
 0x51c   : > { %1064 = vmatpush1.bf16.msra.mxu0 %v1021_v56  ;;  %1104 = vmatprep.subr.bf16.mxu1 %v1024_v5  ;;  %v1001_v52 = vmul.f32 %v943_v55, %v2575_v36  ;;  %v998_v36 = vmul.f32 %v3132_v34, %v2914_v14 }
 0x51d   : > { %1105 = vmatpush1.bf16.msra.mxu1 %v1023_v47 }
 0x51e   : > { %v940_v11 = vpop.permute.xlu0 %939  ;;  %v938_v26 = vpop.permute.xlu1 %937 }
 0x51f   : > { %v944_v27 = vsel %vm305_vm4, %v940_v11, %v934_v58  ;;  %v941_v18 = vsel %vm305_vm4, %v938_v26, %v940_v11  ;;  %v942_v23 = vsel %vm305_vm4, %v936_v53, %v938_v26 }
 0x520   : > { %v1004_v31 = vmul.f32 %v944_v27, %v2582_v38  ;;  %v1002_v43 = vmul.f32 %v942_v23, %v2587_v39  ;;  %v1003_v35 = vmul.f32 %v941_v18, %v2592_v40  ;;  %v997_v38 = vmul.f32 %v3139_v51, %v2912_v13 }
 0x522   : > { %v1027_v42 = vpack.c.bf16 %v1003_v35, %v999_v46  ;;  %v948_v39 = vpop.permute.xlu0 %947  ;;  %v946_v50 = vpop.permute.xlu1 %945  ;;  %v1026_v40 = vpack.c.bf16 %v1002_v43, %v998_v36  ;;  %v1028_v60 = vpack.c.bf16 %v1004_v31, %v1000_v33  ;;  %v1025_v0 = vpack.c.bf16 %v1001_v52, %v997_v38 }
 0x523   : > { %v955_v55 = vsel %vm318_vm6, %v946_v50, %v948_v39 }
 0x524   : > { %1065 = vmatprep.subr.bf16.mxu0 %v1026_v40  ;;  %1106 = vmatprep.subr.bf16.mxu1 %v1028_v60  ;;  %v1005_v35 = vmul.f32 %v955_v55, %v2660_v29 }
 0x525   : > { %1066 = vmatpush1.bf16.msra.mxu0 %v1025_v0  ;;  %1107 = vmatpush1.bf16.msra.mxu1 %v1027_v42 }
 0x526   : > { %v952_v54 = vpop.permute.xlu0 %951  ;;  %v950_v14 = vpop.permute.xlu1 %949 }
 0x527   : > { %v956_v53 = vsel %vm318_vm6, %v952_v54, %v946_v50  ;;  %v954_v13 = vsel %vm318_vm6, %v948_v39, %v950_v14  ;;  %v953_v5 = vsel %vm318_vm6, %v950_v14, %v952_v54 }
 0x528   : > { %v1008_v11 = vmul.f32 %v956_v53, %v2617_v10  ;;  %v1006_v46 = vmul.f32 %v954_v13, %v2624_v12  ;;  %v1007_v31 = vmul.f32 %v953_v5, %v2631_v16  ;;  %v2145_v5 = vld [vmem:[%s2715_s12 + $0x8] sm:$0xf] }
 0x52a   : > { %v960_v56 = vpop.permute.xlu0 %959  ;;  %v958_v47 = vpop.permute.xlu1 %957 }
 0x52b   : > { %v967_v58 = vsel %vm331_vm5, %v958_v47, %v960_v56 }
 0x52c   : > { %v1009_v52 = vmul.f32 %v967_v58, %v2636_v17 }
 0x52e   : > { %v964_v26 = vpop.permute.xlu0 %963  ;;  %v962_v33 = vpop.permute.xlu1 %961  ;;  %v1029_v50 = vpack.c.bf16 %v1009_v52, %v1005_v35 }
 0x52f   : > { %v968_v27 = vsel %vm331_vm5, %v964_v26, %v958_v47  ;;  %v965_v18 = vsel %vm331_vm5, %v962_v33, %v964_v26  ;;  %v966_v23 = vsel %vm331_vm5, %v960_v56, %v962_v33 }
 0x530   : > { %v1012_v43 = vmul.f32 %v968_v27, %v2645_v21  ;;  %v1010_v10 = vmul.f32 %v966_v23, %v2650_v22  ;;  %v1011_v12 = vmul.f32 %v965_v18, %v2655_v25 }
 0x532   : > { %v1031_v17 = vpack.c.bf16 %v1011_v12, %v1007_v31  ;;  %v972_v36 = vpop.permute.xlu0 %971  ;;  %v970_v38 = vpop.permute.xlu1 %969  ;;  %v1030_v42 = vpack.c.bf16 %v1010_v10, %v1006_v46  ;;  %v1032_v39 = vpack.c.bf16 %v1012_v43, %v1008_v11 }
 0x533   : > { %v979_v40 = vsel %vm344_vm7, %v970_v38, %v972_v36 }
 0x534   : > { %v1013_v60 = vmul.f32 %v979_v40, %v2682_v2  ;;  %1067 = vmatprep.subr.bf16.mxu0 %v1030_v42  ;;  %1108 = vmatprep.subr.bf16.mxu1 %v1032_v39 }
 0x535   : > { %1068 = vmatpush1.bf16.msra.mxu0 %v1029_v50  ;;  %1109 = vmatpush1.bf16.msra.mxu1 %v1031_v17 }
 0x536   : > { %v976_v16 = vpop.permute.xlu0 %975  ;;  %v974_v21 = vpop.permute.xlu1 %973  ;;  %v1033_v0 = vpack.c.bf16 %v1013_v60, %v1013_v60 }
 0x537   : > { %v980_v22 = vsel %vm344_vm7, %v976_v16, %v970_v38  ;;  %v977_v25 = vsel %vm344_vm7, %v974_v21, %v976_v16  ;;  %v978_v29 = vsel %vm344_vm7, %v972_v36, %v974_v21 }
 0x538   : > { %v1016_v54 = vmul.f32 %v980_v22, %v2690_v6  ;;  %v1014_v2 = vmul.f32 %v978_v29, %v2695_v7  ;;  %v1015_v14 = vmul.f32 %v977_v25, %v2700_v8  ;;  %v1050_v13 = vsel %vm452_vm8, %v1033_v0, 0 }
 0x53a   : > { %v1036_v56 = vpack.c.bf16 %v1016_v54, %v1016_v54  ;;  %v1034_v47 = vpack.c.bf16 %v1014_v2, %v1014_v2  ;;  %v1035_v53 = vpack.c.bf16 %v1015_v14, %v1015_v14 }
 0x53c   : > { %2147 = vmatprep.subr.msk.bf16.mxu0 %vm452_vm8, %v1034_v47  ;;  %2149 = vmatprep.subr.msk.bf16.mxu1 %vm452_vm8, %v1036_v56  ;;  %v1056_v58 = vsel %vm452_vm8, %v1035_v53, 0 }
 0x53d   : > { %1070 = vmatpush1.bf16.msra.mxu0 %v1050_v13  ;;  %1111 = vmatpush1.bf16.msra.mxu1 %v1056_v58 }
 0x540   : > { %2148 = vmatmul.mubr.msk.bf16.vlgmr.msra.gmra.mrb[8].mxu0 %vm448_vm9, %v2145_v5  ;;  %2150 = vmatmul.mubr.msk.bf16.vlgmr.msra.gmra.mrb[8].mxu1 %vm448_vm9, %v2145_v5 }
 0x541   : > { %1391 = vmatprep.mubr.bf16.mxu0 %v3891_v4  ;;  %1432 = vmatprep.mubr.bf16.mxu1 %v3891_v4 }
 0x547   : > { %v1044_v6 = vpop.permute.xlu1 %1043 }
 0x613   : > { %v1095_v7 = vpop.f32.mrb[8].mxu0  ;;  %v1136_v8 = vpop.f32.mrb[8].mxu1 }
 0x614   : > { %v1097_v55 = vpop.f32.mrb[9].mxu0  ;;  %v1138_v11 = vpop.f32.mrb[9].mxu1  ;;  %v1137_v46 = vadd.f32 %v1136_v8, %v1044_v6  ;;  %v1096_v26 = vadd.f32 %v1095_v7, %v1044_v6 }
 0x615   : > { %v1098_v33 = vadd.f32 %v1097_v55, %v1044_v6  ;;  %v1139_v52 = vadd.f32 %v1138_v11, %v1044_v6  ;;  %v1099_v27 = vpop.f32.mrb[10].mxu0  ;;  %v1140_v18 = vpop.f32.mrb[10].mxu1 }
 0x616   : > { %v1100_v23 = vpop.f32.mrb[11].mxu0  ;;  %v1141_v31 = vpop.f32.mrb[11].mxu1  ;;  %v1146_v35 = vmul.f32 %v1096_v26, %v1096_v26  ;;  %v1164_v38 = vmul.f32 %v1137_v46, %v1137_v46 }
 0x617   : > { %v1147_v43 = vmul.f32 %v1098_v33, %v1098_v33  ;;  %v1161_v10 = vadd.f32 %v1139_v52, %v1137_v46  ;;  %v1143_v12 = vadd.f32 %v1098_v33, %v1096_v26  ;;  %v1165_v17 = vmul.f32 %v1139_v52, %v1139_v52 }
 0x619   : > { %1162 = vadd.xlane.f32.xlu1 %v1161_v10  ;;  %1144 = vadd.xlane.f32.xlu0 %v1143_v12  ;;  %v1148_v36 = vadd.f32 %v1147_v43, %v1146_v35  ;;  %v1166_v42 = vadd.f32 %v1165_v17, %v1164_v38 }
 0x61d   : > { %1149 = vadd.xlane.f32.xlu0 %v1148_v36 }
 0x621   : > { %1167 = vadd.xlane.f32.xlu0 %v1166_v42 }
 0x6a6   : > { %v1145_v39 = vpop.xlane.xlu0 %1144  ;;  %v1163_v40 = vpop.xlane.xlu1 %1162 }
 0x6a7   : > { %v1151_v50 = vmul.f32 0.00390625, %v1145_v39  ;;  %v1169_v16 = vmul.f32 0.00390625, %v1163_v40 }
 0x6a9   : > { %v1153_v21 = vmul.f32 %v1151_v50, %v1151_v50  ;;  %v1171_v54 = vmul.f32 %v1169_v16, %v1169_v16  ;;  %v1155_v47 = vsub.f32 %v1096_v26, %v1151_v50  ;;  %v1156_v53 = vsub.f32 %v1098_v33, %v1151_v50 }
 0x6aa   : > { %v1150_v60 = vpop.xlane.xlu0 %1149  ;;  %v1173_v6 = vsub.f32 %v1137_v46, %v1169_v16  ;;  %v1174_v11 = vsub.f32 %v1139_v52, %v1169_v16 }
 0x6ab   : > { %v1152_v22 = vmul.f32 0.00390625, %v1150_v60 }
 0x6ad   : > { %v1154_v25 = vsub.f32 %v1152_v22, %v1153_v21 }
 0x6ae   : > { %v1168_v29 = vpop.xlane.xlu0 %1167 }
 0x6af   : > { %v1157_v0 = vadd.f32 1e-05, %v1154_v25  ;;  %v1170_v2 = vmul.f32 0.00390625, %v1168_v29 }
 0x6b1   : > { %2202 = vrsqrt.f32 %v1157_v0  ;;  %v1172_v14 = vsub.f32 %v1170_v2, %v1171_v54 }
 0x6b3   : > { %v1175_v56 = vadd.f32 1e-05, %v1172_v14 }
 0x6b5   : > { %2204 = vrsqrt.f32 %v1175_v56 }
 0x6bb   : > { %v2203_v13 = vpop.eup %2202 }
 0x6bc   : > { %v1159_v58 = vmul.f32 %v2203_v13, %v1155_v47  ;;  %v1160_v5 = vmul.f32 %v2203_v13, %v1156_v53 }
 0x6be   : > { %v3189_v7 = vadd.f32 %v1159_v58, %v2726_v44  ;;  %v3192_v8 = vadd.f32 %v1160_v5, %v2728_v45  ;;  %v2152_v45 = vld [vmem:[%s2410_s6 + $0x18] sm:$0xff] }
 0x6bf   : > { %v2205_v55 = vpop.eup %2204 }
 0x6c0   : > { %3896 = vst [vmem:[#allocation2_spill] sm:$0xff] %v3192_v8  ;;  %v1177_v27 = vmul.f32 %v2205_v55, %v1173_v6  ;;  %1185 = vrot.lane.b32.xlu0 %v3192_v8, %s2284_s21  ;;  %1183 = vrot.lane.b32.xlu1 %v3189_v7, %s2284_s21  ;;  %v1178_v26 = vmul.f32 %v2205_v55, %v1174_v11 }
 0x6c2   : > { %v3199_v33 = vadd.f32 %v1177_v27, %v2734_v3  ;;  %v3206_v44 = vadd.f32 %v1178_v26, %v2740_v1 }
 0x6c4   : > { %3897 = vst [vmem:[#allocation3_spill] sm:$0xff] %v3199_v33  ;;  %1195 = vrot.lane.b32.xlu0 %v3189_v7, %s2285_s22  ;;  %1187 = vrot.lane.b32.xlu1 %v3199_v33, %s2284_s21  ;;  %3898 = vst [vmem:[#allocation4_spill] sm:$0xff] %v3206_v44 }
 0x6c8   : > { %1199 = vrot.lane.b32.xlu0 %v3199_v33, %s2285_s22  ;;  %1189 = vrot.lane.b32.xlu1 %v3206_v44, %s2284_s21 }
 0x6cc   : > { %1207 = vrot.lane.b32.xlu0 %v3189_v7, %s2286_s23  ;;  %1197 = vrot.lane.b32.xlu1 %v3192_v8, %s2285_s22 }
 0x6d0   : > { %1211 = vrot.lane.b32.xlu0 %v3199_v33, %s2286_s23  ;;  %1201 = vrot.lane.b32.xlu1 %v3206_v44, %s2285_s22 }
 0x6d4   : > { %1219 = vrot.lane.b32.xlu0 %v3189_v7, %s2287_s24  ;;  %1209 = vrot.lane.b32.xlu1 %v3192_v8, %s2286_s23 }
 0x6d8   : > { %1223 = vrot.lane.b32.xlu0 %v3199_v33, %s2287_s24  ;;  %1213 = vrot.lane.b32.xlu1 %v3206_v44, %s2286_s23 }
 0x6dc   : > { %1231 = vrot.lane.b32.xlu0 %v3189_v7, %s2288_s25  ;;  %1221 = vrot.lane.b32.xlu1 %v3192_v8, %s2287_s24 }
 0x6e0   : > { %1235 = vrot.lane.b32.xlu0 %v3199_v33, %s2288_s25  ;;  %1225 = vrot.lane.b32.xlu1 %v3206_v44, %s2287_s24 }
 0x6e4   : > { %1243 = vrot.lane.b32.xlu0 %v3189_v7, %s2289_s26  ;;  %1233 = vrot.lane.b32.xlu1 %v3192_v8, %s2288_s25 }
 0x6e8   : > { %1247 = vrot.lane.b32.xlu0 %v3199_v33, %s2289_s26  ;;  %1237 = vrot.lane.b32.xlu1 %v3206_v44, %s2288_s25 }
 0x6ec   : > { %1255 = vrot.lane.b32.xlu0 %v3189_v7, %s2290_s27  ;;  %1245 = vrot.lane.b32.xlu1 %v3192_v8, %s2289_s26 }
 0x6f0   : > { %1259 = vrot.lane.b32.xlu0 %v3199_v33, %s2290_s27  ;;  %1249 = vrot.lane.b32.xlu1 %v3206_v44, %s2289_s26 }
 0x6f4   : > { %1267 = vrot.lane.b32.xlu0 %v3189_v7, %s2292_s28  ;;  %1257 = vrot.lane.b32.xlu1 %v3192_v8, %s2290_s27 }
 0x6f8   : > { %1271 = vrot.lane.b32.xlu0 %v3199_v33, %s2292_s28  ;;  %1261 = vrot.lane.b32.xlu1 %v3206_v44, %s2290_s27 }
 0x6fc   : > { %1341 = vperm.xlu0 %2192, %v2152_v45   ;;  %1269 = vrot.lane.b32.xlu1 %v3192_v8, %s2292_s28 }
 0x700   : > { %1273 = vrot.lane.b32.xlu1 %v3206_v44, %s2292_s28 }
 0x732   : > { %v1184_v3 = vpop.permute.xlu1 %1183  ;;  %v1186_v1 = vpop.permute.xlu0 %1185 }
 0x733   : > { %v1193_v31 = vsel %vm253_vm0, %v1184_v3, %v1186_v1 }
 0x734   : > { %v1280_v35 = vmul.f32 %v2994_v62, %v1193_v31 }
 0x736   : > { %v1188_v46 = vpop.permute.xlu1 %1187  ;;  %v1196_v52 = vpop.permute.xlu0 %1195 }
 0x737   : > { %v1192_v39 = vsel %vm253_vm0, %v1186_v1, %v1188_v46 }
 0x738   : > { %v1281_v2 = vmul.f32 %v3016_v19, %v1192_v39 }
 0x73a   : > { %v1190_v18 = vpop.permute.xlu1 %1189  ;;  %v1200_v23 = vpop.permute.xlu0 %1199 }
 0x73b   : > { %v1191_v38 = vsel %vm253_vm0, %v1188_v46, %v1190_v18  ;;  %v1194_v42 = vsel %vm253_vm0, %v1190_v18, %v1184_v3 }
 0x73c   : > { %v1279_v25 = vmul.f32 %v3010_v61, %v1194_v42  ;;  %v1282_v29 = vmul.f32 %v3028_v15, %v1191_v38 }
 0x73e   : > { %v1198_v43 = vpop.permute.xlu1 %1197  ;;  %v1208_v10 = vpop.permute.xlu0 %1207 }
 0x73f   : > { %v1205_v12 = vsel %vm266_vm1, %v1196_v52, %v1198_v43  ;;  %v1204_v17 = vsel %vm266_vm1, %v1198_v43, %v1200_v23 }
 0x740   : > { %v1284_v36 = vmul.f32 %v3002_v57, %v1205_v12  ;;  %v1285_v16 = vmul.f32 %v3040_v30, %v1204_v17 }
 0x742   : > { %v1202_v50 = vpop.permute.xlu1 %1201  ;;  %v1212_v40 = vpop.permute.xlu0 %1211  ;;  %v1316_v60 = vpack.c.bf16 %v1284_v36, %v1280_v35  ;;  %v1317_v13 = vpack.c.bf16 %v1285_v16, %v1281_v2 }
 0x743   : > { %v1203_v21 = vsel %vm266_vm1, %v1200_v23, %v1202_v50  ;;  %v1206_v22 = vsel %vm266_vm1, %v1202_v50, %v1196_v52 }
 0x744   : > { %v1283_v0 = vmul.f32 %v3034_v20, %v1206_v22  ;;  %v1286_v54 = vmul.f32 %v3046_v37, %v1203_v21  ;;  %1359 = vmatprep.subr.bf16.mxu0 %v1316_v60  ;;  %v1295_v21 = vmul.f32 %v3139_v51, %v3189_v7 }
 0x746   : > { %v1315_v14 = vpack.c.bf16 %v1283_v0, %v1279_v25  ;;  %v1210_v56 = vpop.permute.xlu1 %1209  ;;  %v1220_v47 = vpop.permute.xlu0 %1219  ;;  %v1318_v53 = vpack.c.bf16 %v1286_v54, %v1282_v29  ;;  %v3322_v29 = vld [vmem:[%s3889_s3 + $0xa0] sm:$0xff]  ;;  %v3328_v54 = vld [vmem:[%s3889_s3 + $0xa8] sm:$0xff] }
 0x747   : > { %v1217_v6 = vsel %vm279_vm2, %v1208_v10, %v1210_v56  ;;  %v1216_v52 = vsel %vm279_vm2, %v1210_v56, %v1212_v40 }
 0x748   : > { %1360 = vmatpush1.bf16.msra.mxu0 %v1315_v14  ;;  %1400 = vmatprep.subr.bf16.mxu1 %v1318_v53  ;;  %v1288_v26 = vmul.f32 %v3058_v59, %v1217_v6  ;;  %v1289_v42 = vmul.f32 %v3080_v24, %v1216_v52  ;;  %v1296_v14 = vmul.f32 %v3132_v34, %v3192_v8  ;;  %v3340_v6 = vld [vmem:[%s3889_s3 + $0x90] sm:$0xff] }
 0x749   : > { %1401 = vmatpush1.bf16.msra.mxu1 %v1317_v13 }
 0x74a   : > { %v1214_v58 = vpop.permute.xlu1 %1213  ;;  %v1224_v5 = vpop.permute.xlu0 %1223 }
 0x74b   : > { %v1215_v1 = vsel %vm279_vm2, %v1212_v40, %v1214_v58  ;;  %v1218_v46 = vsel %vm279_vm2, %v1214_v58, %v1208_v10 }
 0x74c   : > { %v1287_v17 = vmul.f32 %v3074_v32, %v1218_v46  ;;  %v1290_v36 = vmul.f32 %v3092_v48, %v1215_v1 }
 0x74e   : > { %v1222_v55 = vpop.permute.xlu1 %1221  ;;  %v1232_v11 = vpop.permute.xlu0 %1231 }
 0x74f   : > { %v1229_v27 = vsel %vm292_vm3, %v1220_v47, %v1222_v55  ;;  %v1228_v45 = vsel %vm292_vm3, %v1222_v55, %v1224_v5  ;;  %v1297_v55 = vmul.f32 %v3340_v6, %v3199_v33 }
 0x750   : > { %v1292_v3 = vmul.f32 %v3066_v28, %v1229_v27  ;;  %v1293_v43 = vmul.f32 %v3104_v41, %v1228_v45  ;;  %v3347_v27 = vld [vmem:[%s3889_s3 + $0xb0] sm:$0xff]  ;;  %v3353_v45 = vld [vmem:[%s3889_s3 + $0xb8] sm:$0xff] }
 0x752   : > { %v1226_v18 = vpop.permute.xlu1 %1225  ;;  %v1236_v23 = vpop.permute.xlu0 %1235  ;;  %v1320_v31 = vpack.c.bf16 %v1292_v3, %v1288_v26  ;;  %v1321_v16 = vpack.c.bf16 %v1293_v43, %v1289_v42  ;;  %v3359_v3 = vld [vmem:[%s3889_s3 + $0x98] sm:$0xff] }
 0x753   : > { %v1227_v12 = vsel %vm292_vm3, %v1224_v5, %v1226_v18  ;;  %v1230_v35 = vsel %vm292_vm3, %v1226_v18, %v1220_v47  ;;  %v1298_v1 = vmul.f32 %v3359_v3, %v3206_v44 }
 0x754   : > { %v1291_v10 = vmul.f32 %v3098_v49, %v1230_v35  ;;  %v1294_v38 = vmul.f32 %v3110_v63, %v1227_v12  ;;  %1361 = vmatprep.subr.bf16.mxu0 %v1320_v31 }
 0x756   : > { %v1319_v39 = vpack.c.bf16 %v1291_v10, %v1287_v17  ;;  %v1234_v50 = vpop.permute.xlu1 %1233  ;;  %v1244_v40 = vpop.permute.xlu0 %1243  ;;  %v1322_v60 = vpack.c.bf16 %v1294_v38, %v1290_v36  ;;  %v3374_v38 = vld [vmem:[%s3889_s3 + $0xc0] sm:$0xff] }
 0x757   : > { %v1240_v22 = vsel %vm305_vm4, %v1234_v50, %v1236_v23  ;;  %v1241_v25 = vsel %vm305_vm4, %v1232_v11, %v1234_v50 }
 0x758   : > { %v1299_v0 = vmul.f32 %v3322_v29, %v1241_v25  ;;  %v1300_v2 = vmul.f32 %v3328_v54, %v1240_v22  ;;  %1362 = vmatpush1.bf16.msra.mxu0 %v1319_v39  ;;  %1402 = vmatprep.subr.bf16.mxu1 %v1322_v60  ;;  %v3380_v39 = vld [vmem:[%s3889_s3 + $0xc8] sm:$0xff]  ;;  %v3386_v60 = vld [vmem:[%s3889_s3 + $0xe0] sm:$0xff] }
 0x759   : > { %1403 = vmatpush1.bf16.msra.mxu1 %v1321_v16 }
 0x75a   : > { %v1323_v56 = vpack.c.bf16 %v1299_v0, %v1295_v21  ;;  %v1238_v47 = vpop.permute.xlu1 %1237  ;;  %v1248_v53 = vpop.permute.xlu0 %1247  ;;  %v1324_v13 = vpack.c.bf16 %v1300_v2, %v1296_v14  ;;  %v3392_v21 = vld [vmem:[%s3889_s3 + $0xe8] sm:$0xff] }
 0x75b   : > { %v1239_v58 = vsel %vm305_vm4, %v1236_v23, %v1238_v47  ;;  %v1242_v5 = vsel %vm305_vm4, %v1238_v47, %v1232_v11 }
 0x75c   : > { %v1301_v26 = vmul.f32 %v3347_v27, %v1239_v58  ;;  %v1302_v11 = vmul.f32 %v3353_v45, %v1242_v5  ;;  %1363 = vmatprep.subr.bf16.mxu0 %v1324_v13  ;;  %v3406_v5 = vld [vmem:[%s3889_s3 + $0xd0] sm:$0xff] }
 0x75d   : > { %1364 = vmatpush1.bf16.msra.mxu0 %v1323_v56 }
 0x75e   : > { %v1325_v46 = vpack.c.bf16 %v1301_v26, %v1297_v55  ;;  %v1246_v52 = vpop.permute.xlu1 %1245  ;;  %v1256_v18 = vpop.permute.xlu0 %1255  ;;  %v1326_v23 = vpack.c.bf16 %v1302_v11, %v1298_v1  ;;  %v3418_v26 = vld [vmem:[%s3889_s3 + $0xf0] sm:$0xff]  ;;  %v3424_v1 = vld [vmem:[%s3889_s3 + $0xf8] sm:$0xff] }
 0x75f   : > { %v1252_v12 = vsel %vm318_vm6, %v1246_v52, %v1248_v53  ;;  %v1253_v35 = vsel %vm318_vm6, %v1244_v40, %v1246_v52 }
 0x760   : > { %1404 = vmatprep.subr.bf16.mxu1 %v1326_v23  ;;  %v1303_v42 = vmul.f32 %v3374_v38, %v1253_v35  ;;  %v1304_v50 = vmul.f32 %v3380_v39, %v1252_v12  ;;  %v3434_v35 = vld [vmem:[%s3889_s3 + $0x100] sm:$0xff] }
 0x761   : > { %1405 = vmatpush1.bf16.msra.mxu1 %v1325_v46 }
 0x762   : > { %v1250_v31 = vpop.permute.xlu1 %1249  ;;  %v1260_v43 = vpop.permute.xlu0 %1259 }
 0x763   : > { %v1251_v0 = vsel %vm318_vm6, %v1248_v53, %v1250_v31  ;;  %v1254_v2 = vsel %vm318_vm6, %v1250_v31, %v1244_v40  ;;  %v3412_v40 = vld [vmem:[%s3889_s3 + $0xd8] sm:$0xff] }
 0x764   : > { %v1305_v55 = vmul.f32 %v3406_v5, %v1251_v0  ;;  %v1306_v53 = vmul.f32 %v3412_v40, %v1254_v2  ;;  %v3450_v2 = vld [vmem:[%s3889_s3 + $0x110] sm:$0xff] }
 0x766   : > { %v1258_v17 = vpop.permute.xlu1 %1257  ;;  %v1268_v25 = vpop.permute.xlu0 %1267 }
 0x767   : > { %v1264_v36 = vsel %vm331_vm5, %v1258_v17, %v1260_v43  ;;  %v1265_v10 = vsel %vm331_vm5, %v1256_v18, %v1258_v17 }
 0x768   : > { %v1307_v16 = vmul.f32 %v3386_v60, %v1265_v10  ;;  %v1308_v22 = vmul.f32 %v3392_v21, %v1264_v36  ;;  %v3440_v36 = vld [vmem:[%s3889_s3 + $0x108] sm:$0xff] }
 0x76a   : > { %v1327_v14 = vpack.c.bf16 %v1307_v16, %v1303_v42  ;;  %v1262_v56 = vpop.permute.xlu1 %1261  ;;  %v1328_v47 = vpack.c.bf16 %v1308_v22, %v1304_v50 }
 0x76b   : > { %v1263_v13 = vsel %vm331_vm5, %v1260_v43, %v1262_v56  ;;  %v1266_v58 = vsel %vm331_vm5, %v1262_v56, %v1256_v18  ;;  %v1272_v18 = vpop.permute.xlu0 %1271  ;;  %v3456_v56 = vld [vmem:[%s3889_s3 + $0x118] sm:$0xff] }
 0x76c   : > { %v1309_v11 = vmul.f32 %v3418_v26, %v1263_v13  ;;  %v1310_v46 = vmul.f32 %v3424_v1, %v1266_v58  ;;  %1365 = vmatprep.subr.bf16.mxu0 %v1328_v47 }
 0x76d   : > { %1366 = vmatpush1.bf16.msra.mxu0 %v1327_v14 }
 0x76e   : > { %v1329_v52 = vpack.c.bf16 %v1309_v11, %v1305_v55  ;;  %v1270_v23 = vpop.permute.xlu1 %1269  ;;  %v1330_v31 = vpack.c.bf16 %v1310_v46, %v1306_v53 }
 0x76f   : > { %v1276_v43 = vsel %vm344_vm7, %v1270_v23, %v1272_v18  ;;  %v1277_v12 = vsel %vm344_vm7, %v1268_v25, %v1270_v23 }
 0x770   : > { %v1311_v17 = vmul.f32 %v3434_v35, %v1277_v12  ;;  %v1312_v10 = vmul.f32 %v3440_v36, %v1276_v43  ;;  %1406 = vmatprep.subr.bf16.mxu1 %v1330_v31 }
 0x771   : > { %1407 = vmatpush1.bf16.msra.mxu1 %v1329_v52 }
 0x772   : > { %v1331_v42 = vpack.c.bf16 %v1311_v17, %v1311_v17  ;;  %v1332_v50 = vpack.c.bf16 %v1312_v10, %v1312_v10  ;;  %v1274_v16 = vpop.permute.xlu1 %1273 }
 0x773   : > { %v1275_v22 = vsel %vm344_vm7, %v1272_v18, %v1274_v16  ;;  %v1278_v0 = vsel %vm344_vm7, %v1274_v16, %v1268_v25  ;;  %v2151_v25 = vld [vmem:[%s2715_s12 + $0xc] sm:$0xf] }
 0x774   : > { %v1313_v14 = vmul.f32 %v3450_v2, %v1275_v22  ;;  %v1314_v47 = vmul.f32 %v3456_v56, %v1278_v0  ;;  %2153 = vmatprep.subr.msk.bf16.mxu0 %vm452_vm8, %v1332_v50  ;;  %v1348_v13 = vsel %vm452_vm8, %v1331_v42, 0 }
 0x775   : > { %1368 = vmatpush1.bf16.msra.mxu0 %v1348_v13 }
 0x776   : > { %v1333_v58 = vpack.c.bf16 %v1313_v14, %v1313_v14  ;;  %v1334_v55 = vpack.c.bf16 %v1314_v47, %v1314_v47 }
 0x778   : > { %2154 = vmatmul.mubr.msk.bf16.vlgmr.msra.gmra.mrb[12].mxu0 %vm448_vm9, %v2151_v25  ;;  %2155 = vmatprep.subr.msk.bf16.mxu1 %vm452_vm8, %v1334_v55  ;;  %v1354_v53 = vsel %vm452_vm8, %v1333_v58, 0 }
 0x779   : > { %1409 = vmatpush1.bf16.msra.mxu1 %v1354_v53  ;;  %1689 = vmatprep.mubr.bf16.mxu0 %v3891_v4 }
 0x77b   : > { %v1342_v11 = vpop.permute.xlu0 %1341 }
 0x77c   : > { %2156 = vmatmul.mubr.msk.bf16.vlgmr.msra.gmra.mrb[12].mxu1 %vm448_vm9, %v2151_v25 }
 0x77d   : > { %1730 = vmatprep.mubr.bf16.mxu1 %v3891_v4 }
 0x84b   : > { %v1393_v46 = vpop.f32.mrb[12].mxu0 }
 0x84c   : > { %v1394_v52 = vadd.f32 %v1393_v46, %v1342_v11  ;;  %v1395_v18 = vpop.f32.mrb[13].mxu0 }
 0x84d   : > { %v1396_v23 = vadd.f32 %v1395_v18, %v1342_v11  ;;  %v1397_v31 = vpop.f32.mrb[14].mxu0 }
 0x84e   : > { %v1398_v43 = vpop.f32.mrb[15].mxu0  ;;  %v1444_v14 = vmul.f32 %v1394_v52, %v1394_v52 }
 0x84f   : > { %v1434_v12 = vpop.f32.mrb[12].mxu1  ;;  %v1441_v17 = vadd.f32 %v1396_v23, %v1394_v52  ;;  %v1445_v47 = vmul.f32 %v1396_v23, %v1396_v23 }
 0x850   : > { %v1435_v10 = vadd.f32 %v1434_v12, %v1342_v11  ;;  %v1436_v42 = vpop.f32.mrb[13].mxu1 }
 0x851   : > { %v1437_v50 = vadd.f32 %v1436_v42, %v1342_v11  ;;  %v1438_v16 = vpop.f32.mrb[14].mxu1  ;;  %1442 = vadd.xlane.f32.xlu1 %v1441_v17  ;;  %v1446_v55 = vadd.f32 %v1445_v47, %v1444_v14 }
 0x852   : > { %v1462_v22 = vmul.f32 %v1435_v10, %v1435_v10  ;;  %v1439_v0 = vpop.f32.mrb[15].mxu1 }
 0x853   : > { %v1463_v13 = vmul.f32 %v1437_v50, %v1437_v50  ;;  %v1459_v25 = vadd.f32 %v1437_v50, %v1435_v10 }
 0x855   : > { %1460 = vadd.xlane.f32.xlu0 %v1459_v25  ;;  %v1464_v58 = vadd.f32 %v1463_v13, %v1462_v22 }
 0x857   : > { %1465 = vadd.xlane.f32.xlu1 %v1464_v58 }
 0x859   : > { %1447 = vadd.xlane.f32.xlu0 %v1446_v55 }
 0x8de   : > { %v1443_v53 = vpop.xlane.xlu1 %1442 }
 0x8df   : > { %v1449_v18 = vmul.f32 0.00390625, %v1443_v53 }
 0x8e1   : > { %v1451_v0 = vmul.f32 %v1449_v18, %v1449_v18  ;;  %v1453_v13 = vsub.f32 %v1394_v52, %v1449_v18  ;;  %v1454_v14 = vsub.f32 %v1396_v23, %v1449_v18 }
 0x8e2   : > { %v1461_v46 = vpop.xlane.xlu0 %1460 }
 0x8e3   : > { %v1467_v31 = vmul.f32 0.00390625, %v1461_v46 }
 0x8e4   : > { %v1466_v43 = vpop.xlane.xlu1 %1465 }
 0x8e5   : > { %v1469_v12 = vmul.f32 %v1467_v31, %v1467_v31  ;;  %v1468_v11 = vmul.f32 0.00390625, %v1466_v43  ;;  %v1471_v25 = vsub.f32 %v1435_v10, %v1467_v31  ;;  %v1472_v58 = vsub.f32 %v1437_v50, %v1467_v31 }
 0x8e6   : > { %v1448_v42 = vpop.xlane.xlu0 %1447 }
 0x8e7   : > { %v1470_v17 = vsub.f32 %v1468_v11, %v1469_v12  ;;  %v1450_v16 = vmul.f32 0.00390625, %v1448_v42 }
 0x8e9   : > { %v1473_v4 = vadd.f32 1e-05, %v1470_v17  ;;  %v1452_v44 = vsub.f32 %v1450_v16, %v1451_v0 }
 0x8eb   : > { %v1455_v33 = vadd.f32 1e-05, %v1452_v44  ;;  %2206 = vrsqrt.f32 %v1473_v4 }
 0x8ed   : > { %2208 = vrsqrt.f32 %v1455_v33 }
 0x8f5   : > { %v2207_v22 = vpop.eup %2206 }
 0x8f6   : > { %v1475_v46 = vmul.f32 %v2207_v22, %v1471_v25  ;;  %v1476_v8 = vmul.f32 %v2207_v22, %v1472_v58 }
 0x8f7   : > { %v2209_v47 = vpop.eup %2208 }
 0x8f8   : > { %v1457_v55 = vmul.f32 %v2209_v47, %v1453_v13  ;;  %v1458_v53 = vmul.f32 %v2209_v47, %v1454_v14  ;;  %v3476_v4 = vmax.f32 %v1475_v46, 0.0  ;;  %v3478_v33 = vmax.f32 %v1476_v8, 0.0  ;;  %v2158_v8 = vld [vmem:[%s2410_s6 + $0x20] sm:$0xff] }
 0x8fa   : > { %v3468_v43 = vmax.f32 %v1457_v55, 0.0  ;;  %v3470_v12 = vmax.f32 %v1458_v53, 0.0 }
 0x8fc   : > { %1483 = vrot.lane.b32.xlu1 %v3470_v12, %s2284_s21  ;;  %1481 = vrot.lane.b32.xlu0 %v3468_v43, %s2284_s21 }
 0x900   : > { %1487 = vrot.lane.b32.xlu0 %v3478_v33, %s2284_s21  ;;  %1485 = vrot.lane.b32.xlu1 %v3476_v4, %s2284_s21 }
 0x904   : > { %1495 = vrot.lane.b32.xlu0 %v3470_v12, %s2285_s22  ;;  %1493 = vrot.lane.b32.xlu1 %v3468_v43, %s2285_s22 }
 0x908   : > { %1499 = vrot.lane.b32.xlu0 %v3478_v33, %s2285_s22  ;;  %1497 = vrot.lane.b32.xlu1 %v3476_v4, %s2285_s22 }
 0x90c   : > { %1507 = vrot.lane.b32.xlu0 %v3470_v12, %s2286_s23  ;;  %1505 = vrot.lane.b32.xlu1 %v3468_v43, %s2286_s23 }
 0x910   : > { %1511 = vrot.lane.b32.xlu0 %v3478_v33, %s2286_s23  ;;  %1509 = vrot.lane.b32.xlu1 %v3476_v4, %s2286_s23 }
 0x914   : > { %1519 = vrot.lane.b32.xlu0 %v3470_v12, %s2287_s24  ;;  %1517 = vrot.lane.b32.xlu1 %v3468_v43, %s2287_s24 }
 0x918   : > { %1523 = vrot.lane.b32.xlu0 %v3478_v33, %s2287_s24  ;;  %1521 = vrot.lane.b32.xlu1 %v3476_v4, %s2287_s24 }
 0x91c   : > { %1531 = vrot.lane.b32.xlu0 %v3470_v12, %s2288_s25  ;;  %1529 = vrot.lane.b32.xlu1 %v3468_v43, %s2288_s25 }
 0x920   : > { %1535 = vrot.lane.b32.xlu0 %v3478_v33, %s2288_s25  ;;  %1533 = vrot.lane.b32.xlu1 %v3476_v4, %s2288_s25 }
 0x924   : > { %1543 = vrot.lane.b32.xlu0 %v3470_v12, %s2289_s26  ;;  %1541 = vrot.lane.b32.xlu1 %v3468_v43, %s2289_s26 }
 0x928   : > { %1547 = vrot.lane.b32.xlu0 %v3478_v33, %s2289_s26  ;;  %1545 = vrot.lane.b32.xlu1 %v3476_v4, %s2289_s26 }
 0x92c   : > { %1555 = vrot.lane.b32.xlu0 %v3470_v12, %s2290_s27  ;;  %1553 = vrot.lane.b32.xlu1 %v3468_v43, %s2290_s27 }
 0x930   : > { %1559 = vrot.lane.b32.xlu0 %v3478_v33, %s2290_s27  ;;  %1557 = vrot.lane.b32.xlu1 %v3476_v4, %s2290_s27 }
 0x934   : > { %1567 = vrot.lane.b32.xlu0 %v3470_v12, %s2292_s28  ;;  %1565 = vrot.lane.b32.xlu1 %v3468_v43, %s2292_s28 }
 0x938   : > { %1571 = vrot.lane.b32.xlu0 %v3478_v33, %s2292_s28  ;;  %1569 = vrot.lane.b32.xlu1 %v3476_v4, %s2292_s28 }
 0x93c   : > { %1639 = vperm.xlu1 %2193, %v2158_v8  }
 0x96e   : > { %v1482_v44 = vpop.permute.xlu0 %1481  ;;  %v1484_v52 = vpop.permute.xlu1 %1483 }
 0x96f   : > { %v1491_v50 = vsel %vm253_vm0, %v1482_v44, %v1484_v52 }
 0x970   : > { %v1578_v17 = vmul.f32 %v2994_v62, %v1491_v50 }
 0x972   : > { %v1488_v23 = vpop.permute.xlu0 %1487  ;;  %v1486_v10 = vpop.permute.xlu1 %1485 }
 0x973   : > { %v1492_v11 = vsel %vm253_vm0, %v1488_v23, %v1482_v44  ;;  %v1490_v16 = vsel %vm253_vm0, %v1484_v52, %v1486_v10  ;;  %v1489_v22 = vsel %vm253_vm0, %v1486_v10, %v1488_v23 }
 0x974   : > { %v1577_v13 = vmul.f32 %v3010_v61, %v1492_v11  ;;  %v1579_v58 = vmul.f32 %v3016_v19, %v1490_v16 }
 0x976   : > { %v1496_v18 = vpop.permute.xlu0 %1495  ;;  %v1494_v31 = vpop.permute.xlu1 %1493 }
 0x977   : > { %v1503_v42 = vsel %vm266_vm1, %v1494_v31, %v1496_v18 }
 0x978   : > { %v1582_v0 = vmul.f32 %v3002_v57, %v1503_v42  ;;  %v1580_v57 = vmul.f32 %v3028_v15, %v1489_v22 }
 0x97a   : > { %v1500_v14 = vpop.permute.xlu0 %1499  ;;  %v1498_v47 = vpop.permute.xlu1 %1497  ;;  %v1614_v25 = vpack.c.bf16 %v1582_v0, %v1578_v17 }
 0x97b   : > { %v1504_v55 = vsel %vm266_vm1, %v1500_v14, %v1494_v31  ;;  %v1501_v62 = vsel %vm266_vm1, %v1498_v47, %v1500_v14  ;;  %v1502_v53 = vsel %vm266_vm1, %v1496_v18, %v1498_v47 }
 0x97c   : > { %v1581_v46 = vmul.f32 %v3034_v20, %v1504_v55  ;;  %v1583_v61 = vmul.f32 %v3040_v30, %v1502_v53  ;;  %v1584_v8 = vmul.f32 %v3046_v37, %v1501_v62  ;;  %1657 = vmatprep.subr.bf16.mxu0 %v1614_v25 }
 0x97e   : > { %v1613_v44 = vpack.c.bf16 %v1581_v46, %v1577_v13  ;;  %v1615_v19 = vpack.c.bf16 %v1583_v61, %v1579_v58  ;;  %v1508_v52 = vpop.permute.xlu0 %1507  ;;  %v1506_v23 = vpop.permute.xlu1 %1505  ;;  %v1616_v10 = vpack.c.bf16 %v1584_v8, %v1580_v57 }
 0x97f   : > { %v1515_v15 = vsel %vm279_vm2, %v1506_v23, %v1508_v52 }
 0x980   : > { %1658 = vmatpush1.bf16.msra.mxu0 %v1613_v44  ;;  %1698 = vmatprep.subr.bf16.mxu1 %v1616_v10  ;;  %v1586_v11 = vmul.f32 %v3058_v59, %v1515_v15 }
 0x981   : > { %1699 = vmatpush1.bf16.msra.mxu1 %v1615_v19 }
 0x982   : > { %v1512_v50 = vpop.permute.xlu0 %1511  ;;  %v1510_v31 = vpop.permute.xlu1 %1509 }
 0x983   : > { %v1516_v30 = vsel %vm279_vm2, %v1512_v50, %v1506_v23  ;;  %v1514_v42 = vsel %vm279_vm2, %v1508_v52, %v1510_v31  ;;  %v1513_v16 = vsel %vm279_vm2, %v1510_v31, %v1512_v50  ;;  %v1593_v31 = vmul.f32 %v3139_v51, %v3468_v43 }
 0x984   : > { %v1585_v0 = vmul.f32 %v3074_v32, %v1516_v30  ;;  %v1587_v47 = vmul.f32 %v3080_v24, %v1514_v42 }
 0x986   : > { %v1520_v18 = vpop.permute.xlu0 %1519  ;;  %v1518_v20 = vpop.permute.xlu1 %1517 }
 0x987   : > { %v1527_v37 = vsel %vm292_vm3, %v1518_v20, %v1520_v18 }
 0x988   : > { %v1590_v17 = vmul.f32 %v3066_v28, %v1527_v37  ;;  %v1588_v28 = vmul.f32 %v3092_v48, %v1513_v16  ;;  %v1595_v48 = vmul.f32 %v3340_v6, %v3476_v4 }
 0x98a   : > { %v1524_v22 = vpop.permute.xlu0 %1523  ;;  %v1522_v13 = vpop.permute.xlu1 %1521  ;;  %v1618_v14 = vpack.c.bf16 %v1590_v17, %v1586_v11 }
 0x98b   : > { %v1528_v25 = vsel %vm292_vm3, %v1524_v22, %v1518_v20  ;;  %v1525_v59 = vsel %vm292_vm3, %v1522_v13, %v1524_v22  ;;  %v1526_v58 = vsel %vm292_vm3, %v1520_v18, %v1522_v13 }
 0x98c   : > { %v1589_v55 = vmul.f32 %v3098_v49, %v1528_v25  ;;  %v1591_v32 = vmul.f32 %v3104_v41, %v1526_v58  ;;  %v1592_v62 = vmul.f32 %v3110_v63, %v1525_v59  ;;  %1659 = vmatprep.subr.bf16.mxu0 %v1618_v14  ;;  %v1596_v41 = vmul.f32 %v3359_v3, %v3478_v33 }
 0x98d   : > { %v1594_v33 = vmul.f32 %v3132_v34, %v3470_v12 }
 0x98e   : > { %v1617_v53 = vpack.c.bf16 %v1589_v55, %v1585_v0  ;;  %v1619_v24 = vpack.c.bf16 %v1591_v32, %v1587_v47  ;;  %v1532_v57 = vpop.permute.xlu0 %1531  ;;  %v1530_v46 = vpop.permute.xlu1 %1529  ;;  %v1620_v61 = vpack.c.bf16 %v1592_v62, %v1588_v28 }
 0x98f   : > { %v1539_v8 = vsel %vm305_vm4, %v1530_v46, %v1532_v57 }
 0x990   : > { %1660 = vmatpush1.bf16.msra.mxu0 %v1617_v53  ;;  %1700 = vmatprep.subr.bf16.mxu1 %v1620_v61  ;;  %v1597_v63 = vmul.f32 %v3322_v29, %v1539_v8 }
 0x991   : > { %1701 = vmatpush1.bf16.msra.mxu1 %v1619_v24 }
 0x992   : > { %v1536_v44 = vpop.permute.xlu0 %1535  ;;  %v1534_v49 = vpop.permute.xlu1 %1533  ;;  %v1621_v11 = vpack.c.bf16 %v1597_v63, %v1593_v31 }
 0x993   : > { %v1540_v19 = vsel %vm305_vm4, %v1536_v44, %v1530_v46  ;;  %v1537_v52 = vsel %vm305_vm4, %v1534_v49, %v1536_v44  ;;  %v1538_v23 = vsel %vm305_vm4, %v1532_v57, %v1534_v49 }
 0x994   : > { %v1600_v10 = vmul.f32 %v3353_v45, %v1540_v19  ;;  %v1598_v50 = vmul.f32 %v3328_v54, %v1538_v23  ;;  %v1599_v4 = vmul.f32 %v3347_v27, %v1537_v52 }
 0x996   : > { %v1623_v15 = vpack.c.bf16 %v1599_v4, %v1595_v48  ;;  %v1544_v18 = vpop.permute.xlu0 %1543  ;;  %v1542_v20 = vpop.permute.xlu1 %1541  ;;  %v1622_v30 = vpack.c.bf16 %v1598_v50, %v1594_v33  ;;  %v1624_v37 = vpack.c.bf16 %v1600_v10, %v1596_v41 }
 0x997   : > { %v1551_v22 = vsel %vm318_vm6, %v1542_v20, %v1544_v18 }
 0x998   : > { %1661 = vmatprep.subr.bf16.mxu0 %v1622_v30  ;;  %1702 = vmatprep.subr.bf16.mxu1 %v1624_v37  ;;  %v1601_v57 = vmul.f32 %v3374_v38, %v1551_v22 }
 0x999   : > { %1662 = vmatpush1.bf16.msra.mxu0 %v1621_v11  ;;  %1703 = vmatpush1.bf16.msra.mxu1 %v1623_v15 }
 0x99a   : > { %v1548_v42 = vpop.permute.xlu0 %1547  ;;  %v1546_v17 = vpop.permute.xlu1 %1545 }
 0x99b   : > { %v1552_v34 = vsel %vm318_vm6, %v1548_v42, %v1542_v20  ;;  %v1550_v51 = vsel %vm318_vm6, %v1544_v18, %v1546_v17  ;;  %v1549_v12 = vsel %vm318_vm6, %v1546_v17, %v1548_v42  ;;  %v2157_v42 = vld [vmem:[%s2715_s12 + $0x10] sm:$0xf]  ;;  %v3899_v17 = vmov 0  }
 0x99c   : > { %v1604_v13 = vmul.f32 %v3412_v40, %v1552_v34  ;;  %v1602_v14 = vmul.f32 %v3380_v39, %v1550_v51  ;;  %v1603_v32 = vmul.f32 %v3406_v5, %v1549_v12 }
 0x99e   : > { %v1556_v16 = vpop.permute.xlu0 %1555  ;;  %v1554_v0 = vpop.permute.xlu1 %1553 }
 0x99f   : > { %v1563_v43 = vsel %vm331_vm5, %v1554_v0, %v1556_v16 }
 0x9a0   : > { %v1605_v59 = vmul.f32 %v3386_v60, %v1563_v43 }
 0x9a2   : > { %v1560_v47 = vpop.permute.xlu0 %1559  ;;  %v1558_v25 = vpop.permute.xlu1 %1557  ;;  %v1625_v49 = vpack.c.bf16 %v1605_v59, %v1601_v57 }
 0x9a3   : > { %v1564_v58 = vsel %vm331_vm5, %v1560_v47, %v1554_v0  ;;  %v1561_v28 = vsel %vm331_vm5, %v1558_v25, %v1560_v47  ;;  %v1562_v55 = vsel %vm331_vm5, %v1556_v16, %v1558_v25 }
 0x9a4   : > { %v1608_v62 = vmul.f32 %v3424_v1, %v1564_v58  ;;  %v1606_v53 = vmul.f32 %v3392_v21, %v1562_v55  ;;  %v1607_v24 = vmul.f32 %v3418_v26, %v1561_v28 }
 0x9a6   : > { %v1627_v46 = vpack.c.bf16 %v1607_v24, %v1603_v32  ;;  %v1568_v61 = vpop.permute.xlu0 %1567  ;;  %v1566_v8 = vpop.permute.xlu1 %1565  ;;  %v1626_v44 = vpack.c.bf16 %v1606_v53, %v1602_v14  ;;  %v1628_v48 = vpack.c.bf16 %v1608_v62, %v1604_v13 }
 0x9a7   : > { %v1575_v41 = vsel %vm344_vm7, %v1566_v8, %v1568_v61 }
 0x9a8   : > { %v1609_v63 = vmul.f32 %v3434_v35, %v1575_v41  ;;  %1663 = vmatprep.subr.bf16.mxu0 %v1626_v44  ;;  %1704 = vmatprep.subr.bf16.mxu1 %v1628_v48 }
 0x9a9   : > { %1664 = vmatpush1.bf16.msra.mxu0 %v1625_v49  ;;  %1705 = vmatpush1.bf16.msra.mxu1 %v1627_v46 }
 0x9aa   : > { %v1572_v19 = vpop.permute.xlu0 %1571  ;;  %v1570_v52 = vpop.permute.xlu1 %1569  ;;  %v1629_v4 = vpack.c.bf16 %v1609_v63, %v1609_v63 }
 0x9ab   : > { %v1576_v23 = vsel %vm344_vm7, %v1572_v19, %v1566_v8  ;;  %v1573_v10 = vsel %vm344_vm7, %v1570_v52, %v1572_v19  ;;  %v1574_v50 = vsel %vm344_vm7, %v1568_v61, %v1570_v52 }
 0x9ac   : > { %v1612_v33 = vmul.f32 %v3456_v56, %v1576_v23  ;;  %v1610_v31 = vmul.f32 %v3440_v36, %v1574_v50  ;;  %v1611_v15 = vmul.f32 %v3450_v2, %v1573_v10  ;;  %v1646_v37 = vsel %vm452_vm8, %v1629_v4, 0 }
 0x9ae   : > { %v1632_v18 = vpack.c.bf16 %v1612_v33, %v1612_v33  ;;  %v1630_v20 = vpack.c.bf16 %v1610_v31, %v1610_v31  ;;  %v1631_v30 = vpack.c.bf16 %v1611_v15, %v1611_v15 }
 0x9b0   : > { %2159 = vmatprep.subr.msk.bf16.mxu0 %vm452_vm8, %v1630_v20  ;;  %2161 = vmatprep.subr.msk.bf16.mxu1 %vm452_vm8, %v1632_v18  ;;  %v1652_v11 = vsel %vm452_vm8, %v1631_v30, 0 }
 0x9b1   : > { %1666 = vmatpush1.bf16.msra.mxu0 %v1646_v37  ;;  %1707 = vmatpush1.bf16.msra.mxu1 %v1652_v11 }
 0x9b4   : > { %2160 = vmatmul.mubr.msk.bf16.vlgmr.msra.gmra.mrb[16].mxu0 %vm448_vm9, %v2157_v42  ;;  %2162 = vmatmul.mubr.msk.bf16.vlgmr.msra.gmra.mrb[16].mxu1 %vm448_vm9, %v2157_v42  ;;  %v3900_v42 = vld [vmem:[#allocation2_spill] sm:$0xff] }
 0x9b5   : > { %1987 = vmatprep.mubr.bf16.mxu0 %v3899_v17  ;;  %2028 = vmatprep.mubr.bf16.mxu1 %v3899_v17 }
 0x9bb   : > { %v1640_v16 = vpop.permute.xlu1 %1639 }
 0xa87   : > { %v1691_v0 = vpop.f32.mrb[16].mxu0  ;;  %v1732_v34 = vpop.f32.mrb[16].mxu1 }
 0xa88   : > { %v1692_v51 = vadd.f32 %v1691_v0, %v1640_v16  ;;  %v1733_v43 = vadd.f32 %v1732_v34, %v1640_v16  ;;  %v1693_v12 = vpop.f32.mrb[17].mxu0  ;;  %v1734_v22 = vpop.f32.mrb[17].mxu1 }
 0xa89   : > { %v1694_v13 = vadd.f32 %v1693_v12, %v1640_v16  ;;  %v1735_v14 = vadd.f32 %v1734_v22, %v1640_v16  ;;  %v1695_v47 = vpop.f32.mrb[18].mxu0  ;;  %v1736_v25 = vpop.f32.mrb[18].mxu1  ;;  %v3901_v12 = vld [vmem:[#allocation3_spill] sm:$0xff] }
 0xa8a   : > { %v1696_v59 = vpop.f32.mrb[19].mxu0  ;;  %v1737_v58 = vpop.f32.mrb[19].mxu1  ;;  %v1742_v28 = vmul.f32 %v1692_v51, %v1692_v51  ;;  %v1760_v53 = vmul.f32 %v1733_v43, %v1733_v43 }
 0xa8b   : > { %v1743_v55 = vmul.f32 %v1694_v13, %v1694_v13  ;;  %v1757_v32 = vadd.f32 %v1735_v14, %v1733_v43  ;;  %v1739_v62 = vadd.f32 %v1694_v13, %v1692_v51  ;;  %v1761_v24 = vmul.f32 %v1735_v14, %v1735_v14 }
 0xa8d   : > { %1758 = vadd.xlane.f32.xlu1 %v1757_v32  ;;  %1740 = vadd.xlane.f32.xlu0 %v1739_v62  ;;  %v1744_v57 = vadd.f32 %v1743_v55, %v1742_v28  ;;  %v1762_v46 = vadd.f32 %v1761_v24, %v1760_v53  ;;  %v2258_v24 = vld [vmem:[%s3889_s3 + $0x8] sm:$0xff] }
 0xa91   : > { %1745 = vadd.xlane.f32.xlu0 %v1744_v57 }
 0xa95   : > { %1763 = vadd.xlane.f32.xlu0 %v1762_v46 }
 0xb1a   : > { %v1741_v61 = vpop.xlane.xlu0 %1740  ;;  %v1759_v44 = vpop.xlane.xlu1 %1758 }
 0xb1b   : > { %v1747_v8 = vmul.f32 0.00390625, %v1741_v61  ;;  %v1765_v49 = vmul.f32 0.00390625, %v1759_v44  ;;  %v2259_v61 = vld [vmem:[%s3889_s3 + $0x28] sm:$0xff] }
 0xb1d   : > { %v1749_v41 = vmul.f32 %v1747_v8, %v1747_v8  ;;  %v1767_v10 = vmul.f32 %v1765_v49, %v1765_v49  ;;  %v1751_v31 = vsub.f32 %v1692_v51, %v1747_v8  ;;  %v1752_v15 = vsub.f32 %v1694_v13, %v1747_v8  ;;  %v2164_v13 = vld [vmem:[%s2410_s6 + $0x28] sm:$0xff] }
 0xb1e   : > { %v1746_v48 = vpop.xlane.xlu0 %1745  ;;  %v1769_v37 = vsub.f32 %v1733_v43, %v1765_v49  ;;  %v1770_v0 = vsub.f32 %v1735_v14, %v1765_v49 }
 0xb1f   : > { %v1748_v63 = vmul.f32 0.00390625, %v1746_v48 }
 0xb21   : > { %v1750_v19 = vsub.f32 %v1748_v63, %v1749_v41 }
 0xb22   : > { %v1764_v52 = vpop.xlane.xlu0 %1763 }
 0xb23   : > { %v1753_v23 = vadd.f32 1e-05, %v1750_v19  ;;  %v1766_v50 = vmul.f32 0.00390625, %v1764_v52  ;;  %v2260_v52 = vld [vmem:[%s3889_s3 + $0x30] sm:$0xff] }
 0xb25   : > { %2210 = vrsqrt.f32 %v1753_v23  ;;  %v1768_v4 = vsub.f32 %v1766_v50, %v1767_v10 }
 0xb27   : > { %v1771_v33 = vadd.f32 1e-05, %v1768_v4  ;;  %v2261_v4 = vld [vmem:[%s3889_s3] sm:$0xff] }
 0xb29   : > { %2212 = vrsqrt.f32 %v1771_v33 }
 0xb2f   : > { %v2211_v18 = vpop.eup %2210 }
 0xb30   : > { %v1755_v20 = vmul.f32 %v2211_v18, %v1751_v31  ;;  %v1756_v30 = vmul.f32 %v2211_v18, %v1752_v15  ;;  %v2262_v31 = vld [vmem:[%s3889_s3 + $0x18] sm:$0xff]  ;;  %v2263_v18 = vld [vmem:[%s3889_s3 + $0x20] sm:$0xff] }
 0xb32   : > { %v3655_v11 = vadd.f32 %v1755_v20, %v3189_v7  ;;  %v3658_v17 = vadd.f32 %v1756_v30, %v3900_v42  ;;  %v3902_v7 = vld [vmem:[#allocation4_spill] sm:$0xff]  ;;  %v2264_v30 = vld [vmem:[%s3889_s3 + $0x38] sm:$0xff] }
 0xb33   : > { %v2213_v16 = vpop.eup %2212  ;;  %v2265_v42 = vld [vmem:[%s3889_s3 + $0x10] sm:$0xff] }
 0xb34   : > { %v1773_v34 = vmul.f32 %v2213_v16, %v1769_v37  ;;  %1781 = vrot.lane.b32.xlu0 %v3658_v17, %s2284_s21  ;;  %1779 = vrot.lane.b32.xlu1 %v3655_v11, %s2284_s21  ;;  %v1774_v51 = vmul.f32 %v2213_v16, %v1770_v0 }
 0xb36   : > { %v3665_v22 = vadd.f32 %v1773_v34, %v3901_v12  ;;  %v3672_v43 = vadd.f32 %v1774_v51, %v3902_v7 }
 0xb38   : > { %1791 = vrot.lane.b32.xlu0 %v3655_v11, %s2285_s22  ;;  %1783 = vrot.lane.b32.xlu1 %v3665_v22, %s2284_s21 }
 0xb3c   : > { %1795 = vrot.lane.b32.xlu0 %v3665_v22, %s2285_s22  ;;  %1785 = vrot.lane.b32.xlu1 %v3672_v43, %s2284_s21 }
 0xb40   : > { %1803 = vrot.lane.b32.xlu0 %v3655_v11, %s2286_s23  ;;  %1793 = vrot.lane.b32.xlu1 %v3658_v17, %s2285_s22 }
 0xb44   : > { %1807 = vrot.lane.b32.xlu0 %v3665_v22, %s2286_s23  ;;  %1797 = vrot.lane.b32.xlu1 %v3672_v43, %s2285_s22 }
 0xb48   : > { %1815 = vrot.lane.b32.xlu0 %v3655_v11, %s2287_s24  ;;  %1805 = vrot.lane.b32.xlu1 %v3658_v17, %s2286_s23 }
 0xb4c   : > { %1819 = vrot.lane.b32.xlu0 %v3665_v22, %s2287_s24  ;;  %1809 = vrot.lane.b32.xlu1 %v3672_v43, %s2286_s23 }
 0xb50   : > { %1827 = vrot.lane.b32.xlu0 %v3655_v11, %s2288_s25  ;;  %1817 = vrot.lane.b32.xlu1 %v3658_v17, %s2287_s24 }
 0xb54   : > { %1831 = vrot.lane.b32.xlu0 %v3665_v22, %s2288_s25  ;;  %1821 = vrot.lane.b32.xlu1 %v3672_v43, %s2287_s24 }
 0xb58   : > { %1839 = vrot.lane.b32.xlu0 %v3655_v11, %s2289_s26  ;;  %1829 = vrot.lane.b32.xlu1 %v3658_v17, %s2288_s25 }
 0xb5c   : > { %1843 = vrot.lane.b32.xlu0 %v3665_v22, %s2289_s26  ;;  %1833 = vrot.lane.b32.xlu1 %v3672_v43, %s2288_s25 }
 0xb60   : > { %1851 = vrot.lane.b32.xlu0 %v3655_v11, %s2290_s27  ;;  %1841 = vrot.lane.b32.xlu1 %v3658_v17, %s2289_s26 }
 0xb64   : > { %1855 = vrot.lane.b32.xlu0 %v3665_v22, %s2290_s27  ;;  %1845 = vrot.lane.b32.xlu1 %v3672_v43, %s2289_s26 }
 0xb68   : > { %1863 = vrot.lane.b32.xlu0 %v3655_v11, %s2292_s28  ;;  %1853 = vrot.lane.b32.xlu1 %v3658_v17, %s2290_s27 }
 0xb6c   : > { %1867 = vrot.lane.b32.xlu0 %v3665_v22, %s2292_s28  ;;  %1857 = vrot.lane.b32.xlu1 %v3672_v43, %s2290_s27 }
 0xb70   : > { %1937 = vperm.xlu0 %2192, %v2164_v13   ;;  %1865 = vrot.lane.b32.xlu1 %v3658_v17, %s2292_s28 }
 0xb74   : > { %1869 = vrot.lane.b32.xlu1 %v3672_v43, %s2292_s28 }
 0xba6   : > { %v1780_v14 = vpop.permute.xlu1 %1779  ;;  %v1782_v47 = vpop.permute.xlu0 %1781 }
 0xba7   : > { %v1789_v55 = vsel %vm253_vm0, %v1780_v14, %v1782_v47 }
 0xba8   : > { %v1876_v57 = vmul.f32 %v2258_v24, %v1789_v55 }
 0xbaa   : > { %v1784_v25 = vpop.permute.xlu1 %1783  ;;  %v1792_v59 = vpop.permute.xlu0 %1791 }
 0xbab   : > { %v1788_v49 = vsel %vm253_vm0, %v1782_v47, %v1784_v25 }
 0xbac   : > { %v1877_v16 = vmul.f32 %v2265_v42, %v1788_v49  ;;  %v2268_v49 = vld [vmem:[%s3889_s3 + $0x70] sm:$0xff] }
 0xbae   : > { %v1786_v58 = vpop.permute.xlu1 %1785  ;;  %v1796_v28 = vpop.permute.xlu0 %1795 }
 0xbaf   : > { %v1787_v44 = vsel %vm253_vm0, %v1784_v25, %v1786_v58  ;;  %v1790_v48 = vsel %vm253_vm0, %v1786_v58, %v1780_v14 }
 0xbb0   : > { %v1875_v33 = vmul.f32 %v2261_v4, %v1790_v48  ;;  %v1878_v15 = vmul.f32 %v2262_v31, %v1787_v44 }
 0xbb2   : > { %v1794_v32 = vpop.permute.xlu1 %1793  ;;  %v1804_v62 = vpop.permute.xlu0 %1803 }
 0xbb3   : > { %v1801_v53 = vsel %vm266_vm1, %v1792_v59, %v1794_v32  ;;  %v1800_v46 = vsel %vm266_vm1, %v1794_v32, %v1796_v28 }
 0xbb4   : > { %v1880_v8 = vmul.f32 %v2259_v61, %v1801_v53  ;;  %v1881_v23 = vmul.f32 %v2260_v52, %v1800_v46  ;;  %v2267_v53 = vld [vmem:[%s3889_s3 + $0x68] sm:$0xff] }
 0xbb6   : > { %v1798_v41 = vpop.permute.xlu1 %1797  ;;  %v1808_v63 = vpop.permute.xlu0 %1807  ;;  %v1912_v19 = vpack.c.bf16 %v1880_v8, %v1876_v57  ;;  %v1913_v7 = vpack.c.bf16 %v1881_v23, %v1877_v16 }
 0xbb7   : > { %v1799_v10 = vsel %vm266_vm1, %v1796_v28, %v1798_v41  ;;  %v1802_v50 = vsel %vm266_vm1, %v1798_v41, %v1792_v59  ;;  %v2266_v28 = vld [vmem:[%s3889_s3 + $0x48] sm:$0xff] }
 0xbb8   : > { %v1879_v20 = vmul.f32 %v2263_v18, %v1802_v50  ;;  %v1882_v37 = vmul.f32 %v2264_v30, %v1799_v10  ;;  %1955 = vmatprep.subr.bf16.mxu0 %v1912_v19  ;;  %v2271_v50 = vld [vmem:[%s3889_s3 + $0x60] sm:$0xff] }
 0xbba   : > { %v1911_v0 = vpack.c.bf16 %v1879_v20, %v1875_v33  ;;  %v1806_v34 = vpop.permute.xlu1 %1805  ;;  %v1816_v51 = vpop.permute.xlu0 %1815  ;;  %v1914_v12 = vpack.c.bf16 %v1882_v37, %v1878_v15  ;;  %v2272_v33 = vld [vmem:[%s3889_s3 + $0x78] sm:$0xff]  ;;  %v2273_v15 = vld [vmem:[%s3889_s3 + $0x50] sm:$0xff] }
 0xbbb   : > { %v1813_v47 = vsel %vm279_vm2, %v1804_v62, %v1806_v34  ;;  %v1812_v61 = vsel %vm279_vm2, %v1806_v34, %v1808_v63 }
 0xbbc   : > { %1956 = vmatpush1.bf16.msra.mxu0 %v1911_v0  ;;  %1996 = vmatprep.subr.bf16.mxu1 %v1914_v12  ;;  %v1884_v55 = vmul.f32 %v2266_v28, %v1813_v47  ;;  %v1885_v18 = vmul.f32 %v2273_v15, %v1812_v61  ;;  %v2274_v0 = vld [vmem:[%s3889_s3 + $0x80] sm:$0xff] }
 0xbbd   : > { %1997 = vmatpush1.bf16.msra.mxu1 %v1913_v7  ;;  %v1891_v34 = vmul.f32 %v2274_v0, %v3655_v11 }
 0xbbe   : > { %v1810_v13 = vpop.permute.xlu1 %1809  ;;  %v1820_v14 = vpop.permute.xlu0 %1819 }
 0xbbf   : > { %v1811_v57 = vsel %vm279_vm2, %v1808_v63, %v1810_v13  ;;  %v1814_v46 = vsel %vm279_vm2, %v1810_v13, %v1804_v62  ;;  %v2269_v62 = vld [vmem:[%s3889_s3 + $0x40] sm:$0xff]  ;;  %v2270_v63 = vld [vmem:[%s3889_s3 + $0x58] sm:$0xff] }
 0xbc0   : > { %v1883_v23 = vmul.f32 %v2269_v62, %v1814_v46  ;;  %v1886_v10 = vmul.f32 %v2270_v63, %v1811_v57 }
 0xbc2   : > { %v1818_v25 = vpop.permute.xlu1 %1817  ;;  %v1828_v59 = vpop.permute.xlu0 %1827 }
 0xbc3   : > { %v1825_v58 = vsel %vm292_vm3, %v1816_v51, %v1818_v25  ;;  %v1824_v32 = vsel %vm292_vm3, %v1818_v25, %v1820_v14 }
 0xbc4   : > { %v1888_v24 = vmul.f32 %v2267_v53, %v1825_v58  ;;  %v1889_v41 = vmul.f32 %v2268_v49, %v1824_v32 }
 0xbc6   : > { %v1822_v8 = vpop.permute.xlu1 %1821  ;;  %v1832_v44 = vpop.permute.xlu0 %1831  ;;  %v1916_v48 = vpack.c.bf16 %v1888_v24, %v1884_v55  ;;  %v1917_v16 = vpack.c.bf16 %v1889_v41, %v1885_v18 }
 0xbc7   : > { %v1823_v19 = vsel %vm292_vm3, %v1820_v14, %v1822_v8  ;;  %v1826_v52 = vsel %vm292_vm3, %v1822_v8, %v1816_v51  ;;  %v2275_v14 = vld [vmem:[%s3889_s3 + $0x88] sm:$0xff] }
 0xbc8   : > { %v1887_v4 = vmul.f32 %v2271_v50, %v1826_v52  ;;  %v1890_v31 = vmul.f32 %v2272_v33, %v1823_v19  ;;  %1957 = vmatprep.subr.bf16.mxu0 %v1916_v48  ;;  %v1892_v47 = vmul.f32 %v2275_v14, %v3658_v17  ;;  %v1894_v17 = vmul.f32 %v3359_v3, %v3672_v43 }
 0xbca   : > { %v1915_v20 = vpack.c.bf16 %v1887_v4, %v1883_v23  ;;  %v1830_v30 = vpop.permute.xlu1 %1829  ;;  %v1840_v37 = vpop.permute.xlu0 %1839  ;;  %v1918_v42 = vpack.c.bf16 %v1890_v31, %v1886_v10 }
 0xbcb   : > { %v1836_v51 = vsel %vm305_vm4, %v1830_v30, %v1832_v44  ;;  %v1837_v12 = vsel %vm305_vm4, %v1828_v59, %v1830_v30 }
 0xbcc   : > { %v1895_v7 = vmul.f32 %v3322_v29, %v1837_v12  ;;  %v1896_v13 = vmul.f32 %v3328_v54, %v1836_v51  ;;  %1958 = vmatpush1.bf16.msra.mxu0 %v1915_v20  ;;  %1998 = vmatprep.subr.bf16.mxu1 %v1918_v42  ;;  %v1893_v54 = vmul.f32 %v3340_v6, %v3665_v22 }
 0xbcd   : > { %1999 = vmatpush1.bf16.msra.mxu1 %v1917_v16 }
 0xbce   : > { %v1919_v11 = vpack.c.bf16 %v1895_v7, %v1891_v34  ;;  %v1834_v25 = vpop.permute.xlu1 %1833  ;;  %v1844_v58 = vpop.permute.xlu0 %1843  ;;  %v1920_v28 = vpack.c.bf16 %v1896_v13, %v1892_v47 }
 0xbcf   : > { %v1835_v55 = vsel %vm305_vm4, %v1832_v44, %v1834_v25  ;;  %v1838_v29 = vsel %vm305_vm4, %v1834_v25, %v1828_v59 }
 0xbd0   : > { %v1897_v32 = vmul.f32 %v3347_v27, %v1835_v55  ;;  %v1898_v53 = vmul.f32 %v3353_v45, %v1838_v29  ;;  %1959 = vmatprep.subr.bf16.mxu0 %v1920_v28 }
 0xbd1   : > { %1960 = vmatpush1.bf16.msra.mxu0 %v1919_v11 }
 0xbd2   : > { %v1921_v24 = vpack.c.bf16 %v1897_v32, %v1893_v54  ;;  %v1842_v57 = vpop.permute.xlu1 %1841  ;;  %v1852_v46 = vpop.permute.xlu0 %1851  ;;  %v1922_v61 = vpack.c.bf16 %v1898_v53, %v1894_v17 }
 0xbd3   : > { %v1848_v6 = vsel %vm318_vm6, %v1842_v57, %v1844_v58  ;;  %v1849_v27 = vsel %vm318_vm6, %v1840_v37, %v1842_v57 }
 0xbd4   : > { %2000 = vmatprep.subr.bf16.mxu1 %v1922_v61  ;;  %v1899_v43 = vmul.f32 %v3374_v38, %v1849_v27  ;;  %v1900_v44 = vmul.f32 %v3380_v39, %v1848_v6 }
 0xbd5   : > { %2001 = vmatpush1.bf16.msra.mxu1 %v1921_v24 }
 0xbd6   : > { %v1846_v8 = vpop.permute.xlu1 %1845  ;;  %v1856_v59 = vpop.permute.xlu0 %1855 }
 0xbd7   : > { %v1847_v19 = vsel %vm318_vm6, %v1844_v58, %v1846_v8  ;;  %v1850_v52 = vsel %vm318_vm6, %v1846_v8, %v1840_v37 }
 0xbd8   : > { %v1901_v39 = vmul.f32 %v3406_v5, %v1847_v19 }
 0xbda   : > { %v1854_v45 = vpop.permute.xlu1 %1853  ;;  %v1864_v41 = vpop.permute.xlu0 %1863 }
 0xbdb   : > { %v1860_v22 = vsel %vm331_vm5, %v1854_v45, %v1856_v59  ;;  %v1861_v3 = vsel %vm331_vm5, %v1852_v46, %v1854_v45 }
 0xbdc   : > { %v1903_v48 = vmul.f32 %v3386_v60, %v1861_v3  ;;  %v1904_v49 = vmul.f32 %v3392_v21, %v1860_v22  ;;  %v1902_v60 = vmul.f32 %v3412_v40, %v1850_v52 }
 0xbde   : > { %v1923_v62 = vpack.c.bf16 %v1903_v48, %v1899_v43  ;;  %v1858_v23 = vpop.permute.xlu1 %1857  ;;  %v1924_v63 = vpack.c.bf16 %v1904_v49, %v1900_v44  ;;  %v1868_v33 = vpop.permute.xlu0 %1867 }
 0xbdf   : > { %v1859_v10 = vsel %vm331_vm5, %v1856_v59, %v1858_v23  ;;  %v1862_v38 = vsel %vm331_vm5, %v1858_v23, %v1852_v46 }
 0xbe0   : > { %v1905_v21 = vmul.f32 %v3418_v26, %v1859_v10  ;;  %v1906_v50 = vmul.f32 %v3424_v1, %v1862_v38  ;;  %1961 = vmatprep.subr.bf16.mxu0 %v1924_v63 }
 0xbe1   : > { %1962 = vmatpush1.bf16.msra.mxu0 %v1923_v62 }
 0xbe2   : > { %v1925_v4 = vpack.c.bf16 %v1905_v21, %v1901_v39  ;;  %v1866_v31 = vpop.permute.xlu1 %1865  ;;  %v1926_v15 = vpack.c.bf16 %v1906_v50, %v1902_v60 }
 0xbe3   : > { %v1872_v18 = vsel %vm344_vm7, %v1866_v31, %v1868_v33  ;;  %v1873_v20 = vsel %vm344_vm7, %v1864_v41, %v1866_v31 }
 0xbe4   : > { %v1907_v5 = vmul.f32 %v3434_v35, %v1873_v20  ;;  %v1908_v40 = vmul.f32 %v3440_v36, %v1872_v18  ;;  %2002 = vmatprep.subr.bf16.mxu1 %v1926_v15  ;;  %v2163_v36 = vld [vmem:[%s2715_s12 + $0x14] sm:$0xf] }
 0xbe5   : > { %2003 = vmatpush1.bf16.msra.mxu1 %v1925_v4 }
 0xbe6   : > { %v1927_v26 = vpack.c.bf16 %v1907_v5, %v1907_v5  ;;  %v1928_v1 = vpack.c.bf16 %v1908_v40, %v1908_v40  ;;  %v1870_v30 = vpop.permute.xlu1 %1869 }
 0xbe7   : > { %v1871_v37 = vsel %vm344_vm7, %v1868_v33, %v1870_v30  ;;  %v1874_v42 = vsel %vm344_vm7, %v1870_v30, %v1864_v41 }
 0xbe8   : > { %v1909_v16 = vmul.f32 %v3450_v2, %v1871_v37  ;;  %v1910_v0 = vmul.f32 %v3456_v56, %v1874_v42  ;;  %2165 = vmatprep.subr.msk.bf16.mxu0 %vm452_vm8, %v1928_v1  ;;  %v1944_v35 = vsel %vm452_vm8, %v1927_v26, 0 }
 0xbe9   : > { %1964 = vmatpush1.bf16.msra.mxu0 %v1944_v35 }
 0xbea   : > { %v1929_v34 = vpack.c.bf16 %v1909_v16, %v1909_v16  ;;  %v1930_v51 = vpack.c.bf16 %v1910_v0, %v1910_v0 }
 0xbec   : > { %2166 = vmatmul.mubr.msk.bf16.vlgmr.msra.gmra.mrb[20].mxu0 %vm448_vm9, %v2163_v36  ;;  %2167 = vmatprep.subr.msk.bf16.mxu1 %vm452_vm8, %v1930_v51  ;;  %v1950_v12 = vsel %vm452_vm8, %v1929_v34, 0 }
 0xbed   : > { %2005 = vmatpush1.bf16.msra.mxu1 %v1950_v12 }
 0xbef   : > { %v1938_v9 = vpop.permute.xlu0 %1937 }
 0xbf0   : > { %2168 = vmatmul.mubr.msk.bf16.vlgmr.msra.gmra.mrb[20].mxu1 %vm448_vm9, %v2163_v36 }
 0xcbf   : > { %v1989_v2 = vpop.f32.mrb[20].mxu0 }
 0xcc0   : > { %v1990_v56 = vadd.f32 %v1989_v2, %v1938_v9  ;;  %v1991_v7 = vpop.f32.mrb[21].mxu0 }
 0xcc1   : > { %v1992_v13 = vadd.f32 %v1991_v7, %v1938_v9  ;;  %v1993_v14 = vpop.f32.mrb[22].mxu0 }
 0xcc2   : > { %2214 = vtanh.f32 %v1990_v56  ;;  %v1994_v47 = vpop.f32.mrb[23].mxu0 }
 0xcc3   : > { %2216 = vtanh.f32 %v1992_v13  ;;  %v2030_v11 = vpop.f32.mrb[20].mxu1 }
 0xcc4   : > { %v2031_v25 = vadd.f32 %v2030_v11, %v1938_v9  ;;  %v2032_v58 = vpop.f32.mrb[21].mxu1 }
 0xcc5   : > { %v2033_v28 = vadd.f32 %v2032_v58, %v1938_v9  ;;  %v2034_v55 = vpop.f32.mrb[22].mxu1 }
 0xcc6   : > { %2218 = vtanh.f32 %v2031_v25  ;;  %v2035_v29 = vpop.f32.mrb[23].mxu1 }
 0xcc7   : > { %2220 = vtanh.f32 %v2033_v28 }
 0xccc   : > { %v2215_v54 = vpop.eup %2214 }
 0xccd   : > { %v2217_v32 = vpop.eup %2216  ;;  %2041 = vst [vmem:[%s237_s13] sm:$0xff] %v2215_v54 }
 0xcce   : > { %2042 = vst [vmem:[%s237_s13 + $0x8] sm:$0xff] %v2217_v32 }
 0xcd0   : > { %v2219_v53 = vpop.eup %2218 }
 0xcd1   : > { %v2221_v17 = vpop.eup %2220  ;;  %2043 = vst [vmem:[%s237_s13 + $0x10] sm:$0xff] %v2219_v53 }
 0xcd2   : > { %2044 = vst [vmem:[%s237_s13 + $0x18] sm:$0xff] %v2221_v17 }
 0xcd3 PF: > { %s14_s15 = sadd.s32 1, %s2282_s15  }
 0xcd4   : > { %p11_p4 = scmp.ge.s32.totalorder %s14_s15, 4  }
 0xcd6   :  { %13 = sbr.rel (!%p11_p4) target bundleno = 1 (0x1), region = 82 }

</bundles_post_ra>
